<compile_context>
chip_gen: v6e
topology: v6e:2x2x1
jax: 0.10.0
libtpu: 0.0.40
codegen_flags: <defaults>
</compile_context>

<pallas_src>
import math
from functools import partial

import jax
import jax.numpy as jnp
from jax.experimental import pallas as pl
from jax.experimental.pallas import tpu as pltpu


def _layer_norm(y, w, b, eps=1e-5):
    # One-pass LayerNorm: mean and mean-of-squares together (var = E[x^2] - mu^2).
    mu = jnp.mean(y, axis=-1, keepdims=True)
    ms = jnp.mean(y * y, axis=-1, keepdims=True)
    var = ms - mu * mu
    return (y - mu) * jax.lax.rsqrt(var + eps) * w + b


# ----------------------------- Pallas kernel ------------------------------ #
def fused_encoder_kernel(
    x_ref, c_ref,
    wqk_ref, bqk_ref, wv_ref, bv_ref, wo_ref, bo_ref,
    w1_ref, b1_ref, w2_ref, b2_ref,
    ln1w_ref, ln1b_ref, ln2w_ref, ln2b_ref,
    out_ref,
    act_ref,
    *, nhead: int, block_b: int, seq: int,
):
    """One encoder layer applied to one (block_b, S, D) batch block.

    grid = (B // block_b, num_layers).  Activation persists in `act_ref` (VMEM
    scratch) across the layer axis; per-layer weights stream via BlockSpec.
    """
    l = pl.program_id(1)
    num_layers = pl.num_programs(1)

    D = x_ref.shape[-1]
    H = nhead
    dh = D // H
    S = seq
    M = block_b * S

    # --- init persistent activation at the first layer --------------------- #
    @pl.when(l == 0)
    def _():
        act_ref[...] = x_ref[...].reshape(M, D).astype(jnp.float32)

    x = act_ref[...]                                       # (M, D) f32
    c = c_ref[...].reshape(M, D).astype(jnp.float32)       # (M, D) f32

    # --- fused Q/K projection (scale pre-folded into Wq/bq), V projection -- #
    qk_in = (x + c).astype(jnp.bfloat16)
    qk = jnp.dot(qk_in, wqk_ref[0],
                 preferred_element_type=jnp.float32) + bqk_ref[0]      # (M, 2D)
    q = qk[:, :D]
    k = qk[:, D:]
    v = jnp.dot(x.astype(jnp.bfloat16), wv_ref[0],
                preferred_element_type=jnp.float32) + bv_ref[0]        # (M, D)

    # --- multi-head self attention, per sequence (heads batched on MXU) ---- #
    attn_blocks = []
    for b in range(block_b):                 # small static unroll (block_b <= 8)
        r0 = b * S
        qh = q[r0:r0 + S].reshape(S, H, dh).transpose(1, 0, 2).astype(jnp.bfloat16)
        kh = k[r0:r0 + S].reshape(S, H, dh).transpose(1, 0, 2).astype(jnp.bfloat16)
        vh = v[r0:r0 + S].reshape(S, H, dh).transpose(1, 0, 2).astype(jnp.bfloat16)

        s = jnp.einsum('hqd,hkd->hqk', qh, kh,
                       preferred_element_type=jnp.float32)             # (H, S, S)
        # TODO(synk): additive attention / key-padding mask not wired (mask=None only).
        s = s - jnp.max(s, axis=-1, keepdims=True)
        p = jnp.exp(s)
        p = p * pl.reciprocal(jnp.sum(p, axis=-1, keepdims=True), approx=True)
        o = jnp.einsum('hqk,hkd->hqd', p.astype(jnp.bfloat16), vh,
                       preferred_element_type=jnp.float32)             # (H, S, dh)
        attn_blocks.append(o.transpose(1, 0, 2).reshape(S, D))
    attn = attn_blocks[0] if block_b == 1 else jnp.concatenate(attn_blocks, axis=0)
    attn = jnp.dot(attn.astype(jnp.bfloat16), wo_ref[0],
                   preferred_element_type=jnp.float32) + bo_ref[0]     # (M, D)

    # --- residual + LayerNorm 1 --------------------------------------------- #
    x1 = _layer_norm(x + attn, ln1w_ref[0], ln1b_ref[0])

    # --- feed forward -------------------------------------------------------- #
    h1 = jnp.dot(x1.astype(jnp.bfloat16), w1_ref[0],
                 preferred_element_type=jnp.float32) + b1_ref[0]
    h1 = jnp.maximum(h1, 0.0)
    ff = jnp.dot(h1.astype(jnp.bfloat16), w2_ref[0],
                 preferred_element_type=jnp.float32) + b2_ref[0]

    # --- residual + LayerNorm 2, persist activation -------------------------- #
    y = _layer_norm(x1 + ff, ln2w_ref[0], ln2b_ref[0])
    act_ref[...] = y

    @pl.when(l == num_layers - 1)
    def _():
        out_ref[...] = y.reshape(block_b, S, D).astype(out_ref.dtype)


# ------------------------------ wrapper ----------------------------------- #
def transformer_encoder(x, coords_x, layer_params, *, nhead, mask=None, block_b=None):
    """x, coords_x: (B, S, D) float32.  layer_params: list of per-layer dicts.

    Returns (B, S, D).  mask=None path only (eval-mode, dropout = identity).
    """
    if mask is not None:
        # TODO(synk): additive / key-padding attention mask not supported in this kernel.
        raise NotImplementedError("mask is not supported; use mask=None")

    B, S, D = x.shape
    L = len(layer_params)
    F = layer_params[0]["w1"].shape[0]
    H = nhead
    assert D % H == 0
    dh = D // H
    scale = 1.0 / math.sqrt(dh)
    bf16 = jnp.bfloat16

    # Batch block: aim for >=128..256 MXU rows per projection/FFN matmul, but keep the
    # static per-sequence attention unroll small.  (Tiny demo B cannot reach 128 rows.)
    if block_b is None:
        cap = max(1, min(B, 8, max(1, 256 // S)))
        block_b = 1
        for cand in range(cap, 0, -1):
            if B % cand == 0:
                block_b = cand
                break
    assert B % block_b == 0

    # --- per-layer parameter stacks (leading L axis); pre-transpose & cast once in HBM.
    # Q and K projections fused into one (D, 2D) weight; 1/sqrt(dh) folded into Wq / bq.
    wqkT = jnp.stack([jnp.concatenate([p["wq"].T * scale, p["wk"].T], axis=1)
                      for p in layer_params]).astype(bf16)             # (L, D, 2D)
    bqk = jnp.stack([jnp.concatenate([p["bq"] * scale, p["bk"]], axis=-1)
                     for p in layer_params])                           # (L, 1, 2D) f32
    wvT = jnp.stack([p["wv"].T for p in layer_params]).astype(bf16)    # (L, D, D)
    woT = jnp.stack([p["wo"].T for p in layer_params]).astype(bf16)    # (L, D, D)
    w1T = jnp.stack([p["w1"].T for p in layer_params]).astype(bf16)    # (L, D, F)
    w2T = jnp.stack([p["w2"].T for p in layer_params]).astype(bf16)    # (L, F, D)
    bv = jnp.stack([p["bv"] for p in layer_params])                    # (L, 1, D)
    bo = jnp.stack([p["bo"] for p in layer_params])
    b1 = jnp.stack([p["b1"] for p in layer_params])                    # (L, 1, F)
    b2 = jnp.stack([p["b2"] for p in layer_params])
    ln1w = jnp.stack([p["ln1w"] for p in layer_params])
    ln1b = jnp.stack([p["ln1b"] for p in layer_params])
    ln2w = jnp.stack([p["ln2w"] for p in layer_params])
    ln2b = jnp.stack([p["ln2b"] for p in layer_params])

    # Per-layer streamed weight spec: block index follows the layer grid axis, so the
    # default double buffering prefetches layer l+1 weights under layer-l compute.
    def wspec(*tail):
        nz = len(tail)
        return pl.BlockSpec((1, *tail), lambda b, l, _nz=nz: (l,) + (0,) * _nz)

    act_spec = pl.BlockSpec((block_b, S, D), lambda b, l: (b, 0, 0))

    in_specs = [
        act_spec,                       # x
        act_spec,                       # coords
        wspec(D, 2 * D), wspec(1, 2 * D),   # fused Wqk, bqk
        wspec(D, D), wspec(1, D),           # Wv, bv
        wspec(D, D), wspec(1, D),           # Wo, bo
        wspec(D, F), wspec(1, F),           # W1, b1
        wspec(F, D), wspec(1, D),           # W2, b2
        wspec(1, D), wspec(1, D),           # LN1 w/b
        wspec(1, D), wspec(1, D),           # LN2 w/b
    ]

    # --- VMEM budget (per-layer weights x2 buffers + io blocks + scratch + live temps).
    w_bytes = (2 * D * D + 2 * D * D + 2 * D * F) * 2          # bf16 matmul weights / layer
    p_bytes = (2 * D + 3 * D + F + 4 * D) * 4                  # biases + LN params / layer
    io_bytes = 3 * block_b * S * D * 4                         # x, coords, out blocks
    scratch_bytes = block_b * S * D * 4
    live_bytes = block_b * S * (3 * D + F) * 4 + block_b * H * S * S * 4
    est = 2 * (w_bytes + p_bytes) + 2 * io_bytes + scratch_bytes + live_bytes
    vmem_limit = int(min(max(32 << 20, 2 * est), 64 << 20))

    # Advisory cost hint for XLA scheduling around the kernel.
    flops = 2 * L * B * (4 * S * D * D + 2 * S * S * D + 2 * S * D * F)
    transcendentals = L * B * H * S * S
    bytes_accessed = (3 * B * S * D * 4
                      + L * ((4 * D * D + 2 * D * F) * 2 + (7 * D + F) * 4))
    cost = pl.CostEstimate(flops=flops, transcendentals=transcendentals,
                           bytes_accessed=bytes_accessed)

    fn = pl.pallas_call(
        partial(fused_encoder_kernel, nhead=nhead, block_b=block_b, seq=S),
        out_shape=jax.ShapeDtypeStruct((B, S, D), x.dtype),
        grid=(B // block_b, L),
        in_specs=in_specs,
        out_specs=act_spec,
        scratch_shapes=[pltpu.VMEM((block_b * S, D), jnp.float32)],
        compiler_params=pltpu.CompilerParams(
            dimension_semantics=("parallel", "arbitrary"),
            vmem_limit_bytes=vmem_limit),
        cost_estimate=cost,
    )
    return fn(
        x, coords_x,
        wqkT, bqk, wvT, bv, woT, bo,
        w1T, b1, w2T, b2,
        ln1w, ln1b, ln2w, ln2b,
    )


# ----------------------------- param init --------------------------------- #
def init_params(key, d_model, dim_ff):
    keys = jax.random.split(key, 10)
    u = lambda k, shape, fan: jax.random.uniform(
        k, shape, jnp.float32, -1.0 / math.sqrt(fan), 1.0 / math.sqrt(fan))
    D, F = d_model, dim_ff
    return {
        "wq": u(keys[0], (D, D), D), "bq": jnp.zeros((1, D), jnp.float32),
        "wk": u(keys[1], (D, D), D), "bk": jnp.zeros((1, D), jnp.float32),
        "wv": u(keys[2], (D, D), D), "bv": jnp.zeros((1, D), jnp.float32),
        "wo": u(keys[3], (D, D), D), "bo": jnp.zeros((1, D), jnp.float32),
        "w1": u(keys[4], (F, D), D), "b1": u(keys[5], (1, F), D),
        "w2": u(keys[6], (D, F), F), "b2": u(keys[7], (1, D), F),
        "ln1w": jnp.ones((1, D), jnp.float32), "ln1b": jnp.zeros((1, D), jnp.float32),
        "ln2w": jnp.ones((1, D), jnp.float32), "ln2b": jnp.zeros((1, D), jnp.float32),
    }


if __name__ == "__main__":
    B, S, D = 2, 16, 128        # batch, sequence length, d_model (lane-dense D)
    NHEAD, FF = 4, 256          # attention heads, feedforward width
    NUM_LAYERS = 2

    key = jax.random.PRNGKey(0)
    kx, kc, kp = jax.random.split(key, 3)
    x = jax.random.normal(kx, (B, S, D), jnp.float32)
    coords_x = jax.random.normal(kc, (B, S, D), jnp.float32)

    # copy.deepcopy(encoder_layer) => every layer starts with identical weights.
    params = init_params(kp, D, FF)
    layer_params = [params] * NUM_LAYERS

    out = transformer_encoder(x, coords_x, layer_params, nhead=NHEAD, mask=None)
    out = jax.block_until_ready(out)
    assert out.shape == (B, S, D)
    assert bool(jnp.all(jnp.isfinite(out)))
    print("KERNEL_OK")
</pallas_src>

<mosaic_0001>
module attributes {stable_mosaic.version = 11 : i64} {
  func.func @fused_encoder_kernel(%arg0: i32, %arg1: i32, %arg2: memref<2x16x128xf32, #tpu.memory_space<vmem>>, %arg3: memref<2x16x128xf32, #tpu.memory_space<vmem>>, %arg4: memref<1x128x256xbf16, #tpu.memory_space<vmem>>, %arg5: memref<1x1x256xf32, #tpu.memory_space<vmem>>, %arg6: memref<1x128x128xbf16, #tpu.memory_space<vmem>>, %arg7: memref<1x1x128xf32, #tpu.memory_space<vmem>>, %arg8: memref<1x128x128xbf16, #tpu.memory_space<vmem>>, %arg9: memref<1x1x128xf32, #tpu.memory_space<vmem>>, %arg10: memref<1x128x256xbf16, #tpu.memory_space<vmem>>, %arg11: memref<1x1x256xf32, #tpu.memory_space<vmem>>, %arg12: memref<1x256x128xbf16, #tpu.memory_space<vmem>>, %arg13: memref<1x1x128xf32, #tpu.memory_space<vmem>>, %arg14: memref<1x1x128xf32, #tpu.memory_space<vmem>>, %arg15: memref<1x1x128xf32, #tpu.memory_space<vmem>>, %arg16: memref<1x1x128xf32, #tpu.memory_space<vmem>>, %arg17: memref<1x1x128xf32, #tpu.memory_space<vmem>>, %arg18: memref<2x16x128xf32, #tpu.memory_space<vmem>>, %arg19: memref<32x128xf32, #tpu.memory_space<vmem>>) attributes {dimension_semantics = [#tpu.dimension_semantics<parallel>, #tpu.dimension_semantics<arbitrary>], iteration_bounds = array<i64: 1, 2>, scalar_prefetch = 0 : i64, scratch_operands = 1 : i64, tpu.core_type = #tpu.core_type<tc>, window_params = [{transform_indices = @transform_0, window_bounds = array<i64: 2, 16, 128>}, {transform_indices = @transform_1, window_bounds = array<i64: 2, 16, 128>}, {transform_indices = @transform_2, window_bounds = array<i64: 1, 128, 256>}, {transform_indices = @transform_3, window_bounds = array<i64: 1, 1, 256>}, {transform_indices = @transform_4, window_bounds = array<i64: 1, 128, 128>}, {transform_indices = @transform_5, window_bounds = array<i64: 1, 1, 128>}, {transform_indices = @transform_6, window_bounds = array<i64: 1, 128, 128>}, {transform_indices = @transform_7, window_bounds = array<i64: 1, 1, 128>}, {transform_indices = @transform_8, window_bounds = array<i64: 1, 128, 256>}, {transform_indices = @transform_9, window_bounds = array<i64: 1, 1, 256>}, {transform_indices = @transform_10, window_bounds = array<i64: 1, 256, 128>}, {transform_indices = @transform_11, window_bounds = array<i64: 1, 1, 128>}, {transform_indices = @transform_12, window_bounds = array<i64: 1, 1, 128>}, {transform_indices = @transform_13, window_bounds = array<i64: 1, 1, 128>}, {transform_indices = @transform_14, window_bounds = array<i64: 1, 1, 128>}, {transform_indices = @transform_15, window_bounds = array<i64: 1, 1, 128>}, {transform_indices = @transform_16, window_bounds = array<i64: 2, 16, 128>}]} {
    %c0_i32 = arith.constant 0 : i32
    %0 = arith.cmpi eq, %arg1, %c0_i32 : i32
    %1 = arith.extui %0 : i1 to i32
    %c0_i32_0 = arith.constant 0 : i32
    %2 = arith.cmpi ne, %1, %c0_i32_0 : i32
    scf.if %2 {
      %c0_73 = arith.constant 0 : index
      %c0_74 = arith.constant 0 : index
      %c0_75 = arith.constant 0 : index
      %164 = vector.load %arg2[%c0_73, %c0_74, %c0_75] : memref<2x16x128xf32, #tpu.memory_space<vmem>>, vector<2x16x128xf32>
      %165 = vector.shape_cast %164 : vector<2x16x128xf32> to vector<32x128xf32>
      %c0_76 = arith.constant 0 : index
      %c0_77 = arith.constant 0 : index
      %166 = vector.load %arg19[%c0_76, %c0_77] : memref<32x128xf32, #tpu.memory_space<vmem>>, vector<32x128xf32>
      tpu.vector_store %arg19[%c0_76, %c0_77], %165 {strides = array<i32>} : memref<32x128xf32, #tpu.memory_space<vmem>>, vector<32x128xf32>,
    } else {
    }
    %c0 = arith.constant 0 : index
    %c0_1 = arith.constant 0 : index
    %3 = vector.load %arg19[%c0, %c0_1] : memref<32x128xf32, #tpu.memory_space<vmem>>, vector<32x128xf32>
    %c0_2 = arith.constant 0 : index
    %c0_3 = arith.constant 0 : index
    %c0_4 = arith.constant 0 : index
    %4 = vector.load %arg3[%c0_2, %c0_3, %c0_4] : memref<2x16x128xf32, #tpu.memory_space<vmem>>, vector<2x16x128xf32>
    %5 = vector.shape_cast %4 : vector<2x16x128xf32> to vector<32x128xf32>
    %6 = arith.addf %3, %5 : vector<32x128xf32>
    %7 = arith.truncf %6 : vector<32x128xf32> to vector<32x128xbf16>
    %c0_5 = arith.constant 0 : index
    %c0_6 = arith.constant 0 : index
    %c0_7 = arith.constant 0 : index
    %8 = vector.load %arg4[%c0_5, %c0_6, %c0_7] : memref<1x128x256xbf16, #tpu.memory_space<vmem>>, vector<1x128x256xbf16>
    %9 = vector.shape_cast %8 : vector<1x128x256xbf16> to vector<128x256xbf16>
    %cst = arith.constant dense<0.000000e+00> : vector<32x256xf32>
    %10 = tpu.matmul %7, %9, %cst {dimension_numbers = #tpu.dot_dimension_numbers<[1], [0], [0], [1], [0, 0, 1, 1], [], []>} : vector<32x128xbf16>, vector<128x256xbf16>, vector<32x256xf32> -> vector<32x256xf32>
    %c0_8 = arith.constant 0 : index
    %c0_9 = arith.constant 0 : index
    %c0_10 = arith.constant 0 : index
    %11 = vector.load %arg5[%c0_8, %c0_9, %c0_10] : memref<1x1x256xf32, #tpu.memory_space<vmem>>, vector<1x1x256xf32>
    %12 = vector.shape_cast %11 : vector<1x1x256xf32> to vector<1x256xf32>
    %13 = vector.broadcast %12 : vector<1x256xf32> to vector<32x256xf32>
    %14 = arith.addf %10, %13 : vector<32x256xf32>
    %15 = vector.extract_strided_slice %14 {offsets = [0, 0], sizes = [32, 128], strides = [1, 1]} : vector<32x256xf32> to vector<32x128xf32>
    %16 = vector.extract_strided_slice %14 {offsets = [0, 128], sizes = [32, 128], strides = [1, 1]} : vector<32x256xf32> to vector<32x128xf32>
    %17 = arith.truncf %3 : vector<32x128xf32> to vector<32x128xbf16>
    %c0_11 = arith.constant 0 : index
    %c0_12 = arith.constant 0 : index
    %c0_13 = arith.constant 0 : index
    %18 = vector.load %arg6[%c0_11, %c0_12, %c0_13] : memref<1x128x128xbf16, #tpu.memory_space<vmem>>, vector<1x128x128xbf16>
    %19 = vector.shape_cast %18 : vector<1x128x128xbf16> to vector<128x128xbf16>
    %cst_14 = arith.constant dense<0.000000e+00> : vector<32x128xf32>
    %20 = tpu.matmul %17, %19, %cst_14 {dimension_numbers = #tpu.dot_dimension_numbers<[1], [0], [0], [1], [0, 0, 1, 1], [], []>} : vector<32x128xbf16>, vector<128x128xbf16>, vector<32x128xf32> -> vector<32x128xf32>
    %c0_15 = arith.constant 0 : index
    %c0_16 = arith.constant 0 : index
    %c0_17 = arith.constant 0 : index
    %21 = vector.load %arg7[%c0_15, %c0_16, %c0_17] : memref<1x1x128xf32, #tpu.memory_space<vmem>>, vector<1x1x128xf32>
    %22 = vector.shape_cast %21 : vector<1x1x128xf32> to vector<1x128xf32>
    %23 = vector.broadcast %22 : vector<1x128xf32> to vector<32x128xf32>
    %24 = arith.addf %20, %23 : vector<32x128xf32>
    %25 = vector.extract_strided_slice %15 {offsets = [0, 0], sizes = [16, 128], strides = [1, 1]} : vector<32x128xf32> to vector<16x128xf32>
    %26 = vector.shape_cast %25 : vector<16x128xf32> to vector<16x4x32xf32>
    %27 = tpu.transpose %26, [1, 0, 2] : vector<16x4x32xf32> -> vector<4x16x32xf32>
    %28 = arith.truncf %27 : vector<4x16x32xf32> to vector<4x16x32xbf16>
    %29 = vector.extract_strided_slice %16 {offsets = [0, 0], sizes = [16, 128], strides = [1, 1]} : vector<32x128xf32> to vector<16x128xf32>
    %30 = vector.shape_cast %29 : vector<16x128xf32> to vector<16x4x32xf32>
    %31 = tpu.transpose %30, [1, 0, 2] : vector<16x4x32xf32> -> vector<4x16x32xf32>
    %32 = arith.truncf %31 : vector<4x16x32xf32> to vector<4x16x32xbf16>
    %33 = vector.extract_strided_slice %24 {offsets = [0, 0], sizes = [16, 128], strides = [1, 1]} : vector<32x128xf32> to vector<16x128xf32>
    %34 = vector.shape_cast %33 : vector<16x128xf32> to vector<16x4x32xf32>
    %35 = tpu.transpose %34, [1, 0, 2] : vector<16x4x32xf32> -> vector<4x16x32xf32>
    %36 = arith.truncf %35 : vector<4x16x32xf32> to vector<4x16x32xbf16>
    "tpu.trace_start"() <{level = 10 : i32, message = "hqd,hkd->hqk"}> : () -> ()
    %cst_18 = arith.constant dense<0.000000e+00> : vector<4x16x16xf32>
    %37 = tpu.matmul %28, %32, %cst_18 {dimension_numbers = #tpu.dot_dimension_numbers<[2], [2], [1], [1], [0, 0, 0, 1, 1, 1], [0], [0]>} : vector<4x16x32xbf16>, vector<4x16x32xbf16>, vector<4x16x16xf32> -> vector<4x16x16xf32>
    "tpu.trace_stop"() : () -> ()
    %cst_19 = arith.constant dense<0xFF800000> : vector<4x16xf32>
    %38 = vector.multi_reduction <maximumf>, %37, %cst_19 [2] : vector<4x16x16xf32> to vector<4x16xf32>
    %39 = vector.shape_cast %38 : vector<4x16xf32> to vector<4x16x1xf32>
    %40 = vector.broadcast %39 : vector<4x16x1xf32> to vector<4x16x16xf32>
    %41 = arith.subf %37, %40 : vector<4x16x16xf32>
    %42 = math.exp %41 : vector<4x16x16xf32>
    %cst_20 = arith.constant dense<0.000000e+00> : vector<4x16xf32>
    %43 = vector.multi_reduction <add>, %42, %cst_20 [2] : vector<4x16x16xf32> to vector<4x16xf32>
    %44 = vector.shape_cast %43 : vector<4x16xf32> to vector<4x16x1xf32>
    %45 = tpu.reciprocal %44 {approx = true} : vector<4x16x1xf32> -> vector<4x16x1xf32>
    %46 = vector.broadcast %45 : vector<4x16x1xf32> to vector<4x16x16xf32>
    %47 = arith.mulf %42, %46 : vector<4x16x16xf32>
    %48 = arith.truncf %47 : vector<4x16x16xf32> to vector<4x16x16xbf16>
    "tpu.trace_start"() <{level = 10 : i32, message = "hqk,hkd->hqd"}> : () -> ()
    %cst_21 = arith.constant dense<0.000000e+00> : vector<4x16x32xf32>
    %49 = tpu.matmul %48, %36, %cst_21 {dimension_numbers = #tpu.dot_dimension_numbers<[2], [1], [1], [2], [0, 0, 0, 1, 1, 2], [0], [0]>} : vector<4x16x16xbf16>, vector<4x16x32xbf16>, vector<4x16x32xf32> -> vector<4x16x32xf32>
    "tpu.trace_stop"() : () -> ()
    %50 = tpu.transpose %49, [1, 0, 2] : vector<4x16x32xf32> -> vector<16x4x32xf32>
    %51 = vector.shape_cast %50 : vector<16x4x32xf32> to vector<16x128xf32>
    %52 = vector.extract_strided_slice %15 {offsets = [16, 0], sizes = [16, 128], strides = [1, 1]} : vector<32x128xf32> to vector<16x128xf32>
    %53 = vector.shape_cast %52 : vector<16x128xf32> to vector<16x4x32xf32>
    %54 = tpu.transpose %53, [1, 0, 2] : vector<16x4x32xf32> -> vector<4x16x32xf32>
    %55 = arith.truncf %54 : vector<4x16x32xf32> to vector<4x16x32xbf16>
    %56 = vector.extract_strided_slice %16 {offsets = [16, 0], sizes = [16, 128], strides = [1, 1]} : vector<32x128xf32> to vector<16x128xf32>
    %57 = vector.shape_cast %56 : vector<16x128xf32> to vector<16x4x32xf32>
    %58 = tpu.transpose %57, [1, 0, 2] : vector<16x4x32xf32> -> vector<4x16x32xf32>
    %59 = arith.truncf %58 : vector<4x16x32xf32> to vector<4x16x32xbf16>
    %60 = vector.extract_strided_slice %24 {offsets = [16, 0], sizes = [16, 128], strides = [1, 1]} : vector<32x128xf32> to vector<16x128xf32>
    %61 = vector.shape_cast %60 : vector<16x128xf32> to vector<16x4x32xf32>
    %62 = tpu.transpose %61, [1, 0, 2] : vector<16x4x32xf32> -> vector<4x16x32xf32>
    %63 = arith.truncf %62 : vector<4x16x32xf32> to vector<4x16x32xbf16>
    "tpu.trace_start"() <{level = 10 : i32, message = "hqd,hkd->hqk"}> : () -> ()
    %cst_22 = arith.constant dense<0.000000e+00> : vector<4x16x16xf32>
    %64 = tpu.matmul %55, %59, %cst_22 {dimension_numbers = #tpu.dot_dimension_numbers<[2], [2], [1], [1], [0, 0, 0, 1, 1, 1], [0], [0]>} : vector<4x16x32xbf16>, vector<4x16x32xbf16>, vector<4x16x16xf32> -> vector<4x16x16xf32>
    "tpu.trace_stop"() : () -> ()
    %cst_23 = arith.constant dense<0xFF800000> : vector<4x16xf32>
    %65 = vector.multi_reduction <maximumf>, %64, %cst_23 [2] : vector<4x16x16xf32> to vector<4x16xf32>
    %66 = vector.shape_cast %65 : vector<4x16xf32> to vector<4x16x1xf32>
    %67 = vector.broadcast %66 : vector<4x16x1xf32> to vector<4x16x16xf32>
    %68 = arith.subf %64, %67 : vector<4x16x16xf32>
    %69 = math.exp %68 : vector<4x16x16xf32>
    %cst_24 = arith.constant dense<0.000000e+00> : vector<4x16xf32>
    %70 = vector.multi_reduction <add>, %69, %cst_24 [2] : vector<4x16x16xf32> to vector<4x16xf32>
    %71 = vector.shape_cast %70 : vector<4x16xf32> to vector<4x16x1xf32>
    %72 = tpu.reciprocal %71 {approx = true} : vector<4x16x1xf32> -> vector<4x16x1xf32>
    %73 = vector.broadcast %72 : vector<4x16x1xf32> to vector<4x16x16xf32>
    %74 = arith.mulf %69, %73 : vector<4x16x16xf32>
    %75 = arith.truncf %74 : vector<4x16x16xf32> to vector<4x16x16xbf16>
    "tpu.trace_start"() <{level = 10 : i32, message = "hqk,hkd->hqd"}> : () -> ()
    %cst_25 = arith.constant dense<0.000000e+00> : vector<4x16x32xf32>
    %76 = tpu.matmul %75, %63, %cst_25 {dimension_numbers = #tpu.dot_dimension_numbers<[2], [1], [1], [2], [0, 0, 0, 1, 1, 2], [0], [0]>} : vector<4x16x16xbf16>, vector<4x16x32xbf16>, vector<4x16x32xf32> -> vector<4x16x32xf32>
    "tpu.trace_stop"() : () -> ()
    %77 = tpu.transpose %76, [1, 0, 2] : vector<4x16x32xf32> -> vector<16x4x32xf32>
    %78 = vector.shape_cast %77 : vector<16x4x32xf32> to vector<16x128xf32>
    %79 = tpu.concatenate %51, %78 in 0 : vector<16x128xf32>, vector<16x128xf32> -> vector<32x128xf32>
    %80 = arith.truncf %79 : vector<32x128xf32> to vector<32x128xbf16>
    %c0_26 = arith.constant 0 : index
    %c0_27 = arith.constant 0 : index
    %c0_28 = arith.constant 0 : index
    %81 = vector.load %arg8[%c0_26, %c0_27, %c0_28] : memref<1x128x128xbf16, #tpu.memory_space<vmem>>, vector<1x128x128xbf16>
    %82 = vector.shape_cast %81 : vector<1x128x128xbf16> to vector<128x128xbf16>
    %cst_29 = arith.constant dense<0.000000e+00> : vector<32x128xf32>
    %83 = tpu.matmul %80, %82, %cst_29 {dimension_numbers = #tpu.dot_dimension_numbers<[1], [0], [0], [1], [0, 0, 1, 1], [], []>} : vector<32x128xbf16>, vector<128x128xbf16>, vector<32x128xf32> -> vector<32x128xf32>
    %c0_30 = arith.constant 0 : index
    %c0_31 = arith.constant 0 : index
    %c0_32 = arith.constant 0 : index
    %84 = vector.load %arg9[%c0_30, %c0_31, %c0_32] : memref<1x1x128xf32, #tpu.memory_space<vmem>>, vector<1x1x128xf32>
    %85 = vector.shape_cast %84 : vector<1x1x128xf32> to vector<1x128xf32>
    %86 = vector.broadcast %85 : vector<1x128xf32> to vector<32x128xf32>
    %87 = arith.addf %83, %86 : vector<32x128xf32>
    %88 = arith.addf %3, %87 : vector<32x128xf32>
    %c0_33 = arith.constant 0 : index
    %c0_34 = arith.constant 0 : index
    %c0_35 = arith.constant 0 : index
    %89 = vector.load %arg14[%c0_33, %c0_34, %c0_35] : memref<1x1x128xf32, #tpu.memory_space<vmem>>, vector<1x1x128xf32>
    %90 = vector.shape_cast %89 : vector<1x1x128xf32> to vector<1x128xf32>
    %c0_36 = arith.constant 0 : index
    %c0_37 = arith.constant 0 : index
    %c0_38 = arith.constant 0 : index
    %91 = vector.load %arg15[%c0_36, %c0_37, %c0_38] : memref<1x1x128xf32, #tpu.memory_space<vmem>>, vector<1x1x128xf32>
    %92 = vector.shape_cast %91 : vector<1x1x128xf32> to vector<1x128xf32>
    %cst_39 = arith.constant dense<0.000000e+00> : vector<32xf32>
    %93 = vector.multi_reduction <add>, %88, %cst_39 [1] : vector<32x128xf32> to vector<32xf32>
    %94 = vector.shape_cast %93 : vector<32xf32> to vector<32x1xf32>
    %cst_40 = arith.constant 1.280000e+02 : f32
    %95 = vector.broadcast %cst_40 : f32 to vector<32x1xf32>
    %96 = arith.divf %94, %95 : vector<32x1xf32>
    %97 = arith.mulf %88, %88 : vector<32x128xf32>
    %cst_41 = arith.constant dense<0.000000e+00> : vector<32xf32>
    %98 = vector.multi_reduction <add>, %97, %cst_41 [1] : vector<32x128xf32> to vector<32xf32>
    %99 = vector.shape_cast %98 : vector<32xf32> to vector<32x1xf32>
    %cst_42 = arith.constant 1.280000e+02 : f32
    %100 = vector.broadcast %cst_42 : f32 to vector<32x1xf32>
    %101 = arith.divf %99, %100 : vector<32x1xf32>
    %102 = arith.mulf %96, %96 : vector<32x1xf32>
    %103 = arith.subf %101, %102 : vector<32x1xf32>
    %104 = vector.broadcast %96 : vector<32x1xf32> to vector<32x128xf32>
    %105 = arith.subf %88, %104 : vector<32x128xf32>
    %cst_43 = arith.constant 9.99999974E-6 : f32
    %106 = vector.broadcast %cst_43 : f32 to vector<32x1xf32>
    %107 = arith.addf %103, %106 : vector<32x1xf32>
    %108 = math.rsqrt %107 : vector<32x1xf32>
    %109 = vector.broadcast %108 : vector<32x1xf32> to vector<32x128xf32>
    %110 = arith.mulf %105, %109 : vector<32x128xf32>
    %111 = vector.broadcast %90 : vector<1x128xf32> to vector<32x128xf32>
    %112 = arith.mulf %110, %111 : vector<32x128xf32>
    %113 = vector.broadcast %92 : vector<1x128xf32> to vector<32x128xf32>
    %114 = arith.addf %112, %113 : vector<32x128xf32>
    %115 = arith.truncf %114 : vector<32x128xf32> to vector<32x128xbf16>
    %c0_44 = arith.constant 0 : index
    %c0_45 = arith.constant 0 : index
    %c0_46 = arith.constant 0 : index
    %116 = vector.load %arg10[%c0_44, %c0_45, %c0_46] : memref<1x128x256xbf16, #tpu.memory_space<vmem>>, vector<1x128x256xbf16>
    %117 = vector.shape_cast %116 : vector<1x128x256xbf16> to vector<128x256xbf16>
    %cst_47 = arith.constant dense<0.000000e+00> : vector<32x256xf32>
    %118 = tpu.matmul %115, %117, %cst_47 {dimension_numbers = #tpu.dot_dimension_numbers<[1], [0], [0], [1], [0, 0, 1, 1], [], []>} : vector<32x128xbf16>, vector<128x256xbf16>, vector<32x256xf32> -> vector<32x256xf32>
    %c0_48 = arith.constant 0 : index
    %c0_49 = arith.constant 0 : index
    %c0_50 = arith.constant 0 : index
    %119 = vector.load %arg11[%c0_48, %c0_49, %c0_50] : memref<1x1x256xf32, #tpu.memory_space<vmem>>, vector<1x1x256xf32>
    %120 = vector.shape_cast %119 : vector<1x1x256xf32> to vector<1x256xf32>
    %121 = vector.broadcast %120 : vector<1x256xf32> to vector<32x256xf32>
    %122 = arith.addf %118, %121 : vector<32x256xf32>
    %cst_51 = arith.constant 0.000000e+00 : f32
    %123 = vector.broadcast %cst_51 : f32 to vector<32x256xf32>
    %124 = arith.maximumf %122, %123 : vector<32x256xf32>
    %125 = arith.truncf %124 : vector<32x256xf32> to vector<32x256xbf16>
    %c0_52 = arith.constant 0 : index
    %c0_53 = arith.constant 0 : index
    %c0_54 = arith.constant 0 : index
    %126 = vector.load %arg12[%c0_52, %c0_53, %c0_54] : memref<1x256x128xbf16, #tpu.memory_space<vmem>>, vector<1x256x128xbf16>
    %127 = vector.shape_cast %126 : vector<1x256x128xbf16> to vector<256x128xbf16>
    %cst_55 = arith.constant dense<0.000000e+00> : vector<32x128xf32>
    %128 = tpu.matmul %125, %127, %cst_55 {dimension_numbers = #tpu.dot_dimension_numbers<[1], [0], [0], [1], [0, 0, 1, 1], [], []>} : vector<32x256xbf16>, vector<256x128xbf16>, vector<32x128xf32> -> vector<32x128xf32>
    %c0_56 = arith.constant 0 : index
    %c0_57 = arith.constant 0 : index
    %c0_58 = arith.constant 0 : index
    %129 = vector.load %arg13[%c0_56, %c0_57, %c0_58] : memref<1x1x128xf32, #tpu.memory_space<vmem>>, vector<1x1x128xf32>
    %130 = vector.shape_cast %129 : vector<1x1x128xf32> to vector<1x128xf32>
    %131 = vector.broadcast %130 : vector<1x128xf32> to vector<32x128xf32>
    %132 = arith.addf %128, %131 : vector<32x128xf32>
    %133 = arith.addf %114, %132 : vector<32x128xf32>
    %c0_59 = arith.constant 0 : index
    %c0_60 = arith.constant 0 : index
    %c0_61 = arith.constant 0 : index
    %134 = vector.load %arg16[%c0_59, %c0_60, %c0_61] : memref<1x1x128xf32, #tpu.memory_space<vmem>>, vector<1x1x128xf32>
    %135 = vector.shape_cast %134 : vector<1x1x128xf32> to vector<1x128xf32>
    %c0_62 = arith.constant 0 : index
    %c0_63 = arith.constant 0 : index
    %c0_64 = arith.constant 0 : index
    %136 = vector.load %arg17[%c0_62, %c0_63, %c0_64] : memref<1x1x128xf32, #tpu.memory_space<vmem>>, vector<1x1x128xf32>
    %137 = vector.shape_cast %136 : vector<1x1x128xf32> to vector<1x128xf32>
    %cst_65 = arith.constant dense<0.000000e+00> : vector<32xf32>
    %138 = vector.multi_reduction <add>, %133, %cst_65 [1] : vector<32x128xf32> to vector<32xf32>
    %139 = vector.shape_cast %138 : vector<32xf32> to vector<32x1xf32>
    %cst_66 = arith.constant 1.280000e+02 : f32
    %140 = vector.broadcast %cst_66 : f32 to vector<32x1xf32>
    %141 = arith.divf %139, %140 : vector<32x1xf32>
    %142 = arith.mulf %133, %133 : vector<32x128xf32>
    %cst_67 = arith.constant dense<0.000000e+00> : vector<32xf32>
    %143 = vector.multi_reduction <add>, %142, %cst_67 [1] : vector<32x128xf32> to vector<32xf32>
    %144 = vector.shape_cast %143 : vector<32xf32> to vector<32x1xf32>
    %cst_68 = arith.constant 1.280000e+02 : f32
    %145 = vector.broadcast %cst_68 : f32 to vector<32x1xf32>
    %146 = arith.divf %144, %145 : vector<32x1xf32>
    %147 = arith.mulf %141, %141 : vector<32x1xf32>
    %148 = arith.subf %146, %147 : vector<32x1xf32>
    %149 = vector.broadcast %141 : vector<32x1xf32> to vector<32x128xf32>
    %150 = arith.subf %133, %149 : vector<32x128xf32>
    %cst_69 = arith.constant 9.99999974E-6 : f32
    %151 = vector.broadcast %cst_69 : f32 to vector<32x1xf32>
    %152 = arith.addf %148, %151 : vector<32x1xf32>
    %153 = math.rsqrt %152 : vector<32x1xf32>
    %154 = vector.broadcast %153 : vector<32x1xf32> to vector<32x128xf32>
    %155 = arith.mulf %150, %154 : vector<32x128xf32>
    %156 = vector.broadcast %135 : vector<1x128xf32> to vector<32x128xf32>
    %157 = arith.mulf %155, %156 : vector<32x128xf32>
    %158 = vector.broadcast %137 : vector<1x128xf32> to vector<32x128xf32>
    %159 = arith.addf %157, %158 : vector<32x128xf32>
    %c0_70 = arith.constant 0 : index
    %c0_71 = arith.constant 0 : index
    %160 = vector.load %arg19[%c0_70, %c0_71] : memref<32x128xf32, #tpu.memory_space<vmem>>, vector<32x128xf32>
    tpu.vector_store %arg19[%c0_70, %c0_71], %159 {strides = array<i32>} : memref<32x128xf32, #tpu.memory_space<vmem>>, vector<32x128xf32>,
    %c1_i32 = arith.constant 1 : i32
    %161 = arith.cmpi eq, %arg1, %c1_i32 : i32
    %162 = arith.extui %161 : i1 to i32
    %c0_i32_72 = arith.constant 0 : i32
    %163 = arith.cmpi ne, %162, %c0_i32_72 : i32
    scf.if %163 {
      %164 = vector.shape_cast %159 : vector<32x128xf32> to vector<2x16x128xf32>
      %c0_73 = arith.constant 0 : index
      %c0_74 = arith.constant 0 : index
      %c0_75 = arith.constant 0 : index
      %165 = vector.load %arg18[%c0_73, %c0_74, %c0_75] : memref<2x16x128xf32, #tpu.memory_space<vmem>>, vector<2x16x128xf32>
      tpu.vector_store %arg18[%c0_73, %c0_74, %c0_75], %164 {strides = array<i32>} : memref<2x16x128xf32, #tpu.memory_space<vmem>>, vector<2x16x128xf32>,
    } else {
    }
    return
  }
  func.func @transform_0(%arg0: i32, %arg1: i32) -> (i32, i32, i32) {
    %c0_i32 = arith.constant 0 : i32
    %c0_i32_0 = arith.constant 0 : i32
    %c0_i32_1 = arith.constant 0 : i32
    return %arg0, %c0_i32, %c0_i32_0 : i32, i32, i32
  }
  func.func @transform_1(%arg0: i32, %arg1: i32) -> (i32, i32, i32) {
    %c0_i32 = arith.constant 0 : i32
    %c0_i32_0 = arith.constant 0 : i32
    %c0_i32_1 = arith.constant 0 : i32
    return %arg0, %c0_i32, %c0_i32_0 : i32, i32, i32
  }
  func.func @transform_2(%arg0: i32, %arg1: i32) -> (i32, i32, i32) {
    %c0_i32 = arith.constant 0 : i32
    %c0_i32_0 = arith.constant 0 : i32
    %c0_i32_1 = arith.constant 0 : i32
    return %arg1, %c0_i32, %c0_i32_0 : i32, i32, i32
  }
  func.func @transform_3(%arg0: i32, %arg1: i32) -> (i32, i32, i32) {
    %c0_i32 = arith.constant 0 : i32
    %c0_i32_0 = arith.constant 0 : i32
    %c0_i32_1 = arith.constant 0 : i32
    return %arg1, %c0_i32, %c0_i32_0 : i32, i32, i32
  }
  func.func @transform_4(%arg0: i32, %arg1: i32) -> (i32, i32, i32) {
    %c0_i32 = arith.constant 0 : i32
    %c0_i32_0 = arith.constant 0 : i32
    %c0_i32_1 = arith.constant 0 : i32
    return %arg1, %c0_i32, %c0_i32_0 : i32, i32, i32
  }
  func.func @transform_5(%arg0: i32, %arg1: i32) -> (i32, i32, i32) {
    %c0_i32 = arith.constant 0 : i32
    %c0_i32_0 = arith.constant 0 : i32
    %c0_i32_1 = arith.constant 0 : i32
    return %arg1, %c0_i32, %c0_i32_0 : i32, i32, i32
  }
  func.func @transform_6(%arg0: i32, %arg1: i32) -> (i32, i32, i32) {
    %c0_i32 = arith.constant 0 : i32
    %c0_i32_0 = arith.constant 0 : i32
    %c0_i32_1 = arith.constant 0 : i32
    return %arg1, %c0_i32, %c0_i32_0 : i32, i32, i32
  }
  func.func @transform_7(%arg0: i32, %arg1: i32) -> (i32, i32, i32) {
    %c0_i32 = arith.constant 0 : i32
    %c0_i32_0 = arith.constant 0 : i32
    %c0_i32_1 = arith.constant 0 : i32
    return %arg1, %c0_i32, %c0_i32_0 : i32, i32, i32
  }
  func.func @transform_8(%arg0: i32, %arg1: i32) -> (i32, i32, i32) {
    %c0_i32 = arith.constant 0 : i32
    %c0_i32_0 = arith.constant 0 : i32
    %c0_i32_1 = arith.constant 0 : i32
    return %arg1, %c0_i32, %c0_i32_0 : i32, i32, i32
  }
  func.func @transform_9(%arg0: i32, %arg1: i32) -> (i32, i32, i32) {
    %c0_i32 = arith.constant 0 : i32
    %c0_i32_0 = arith.constant 0 : i32
    %c0_i32_1 = arith.constant 0 : i32
    return %arg1, %c0_i32, %c0_i32_0 : i32, i32, i32
  }
  func.func @transform_10(%arg0: i32, %arg1: i32) -> (i32, i32, i32) {
    %c0_i32 = arith.constant 0 : i32
    %c0_i32_0 = arith.constant 0 : i32
    %c0_i32_1 = arith.constant 0 : i32
    return %arg1, %c0_i32, %c0_i32_0 : i32, i32, i32
  }
  func.func @transform_11(%arg0: i32, %arg1: i32) -> (i32, i32, i32) {
    %c0_i32 = arith.constant 0 : i32
    %c0_i32_0 = arith.constant 0 : i32
    %c0_i32_1 = arith.constant 0 : i32
    return %arg1, %c0_i32, %c0_i32_0 : i32, i32, i32
  }
  func.func @transform_12(%arg0: i32, %arg1: i32) -> (i32, i32, i32) {
    %c0_i32 = arith.constant 0 : i32
    %c0_i32_0 = arith.constant 0 : i32
    %c0_i32_1 = arith.constant 0 : i32
    return %arg1, %c0_i32, %c0_i32_0 : i32, i32, i32
  }
  func.func @transform_13(%arg0: i32, %arg1: i32) -> (i32, i32, i32) {
    %c0_i32 = arith.constant 0 : i32
    %c0_i32_0 = arith.constant 0 : i32
    %c0_i32_1 = arith.constant 0 : i32
    return %arg1, %c0_i32, %c0_i32_0 : i32, i32, i32
  }
  func.func @transform_14(%arg0: i32, %arg1: i32) -> (i32, i32, i32) {
    %c0_i32 = arith.constant 0 : i32
    %c0_i32_0 = arith.constant 0 : i32
    %c0_i32_1 = arith.constant 0 : i32
    return %arg1, %c0_i32, %c0_i32_0 : i32, i32, i32
  }
  func.func @transform_15(%arg0: i32, %arg1: i32) -> (i32, i32, i32) {
    %c0_i32 = arith.constant 0 : i32
    %c0_i32_0 = arith.constant 0 : i32
    %c0_i32_1 = arith.constant 0 : i32
    return %arg1, %c0_i32, %c0_i32_0 : i32, i32, i32
  }
  func.func @transform_16(%arg0: i32, %arg1: i32) -> (i32, i32, i32) {
    %c0_i32 = arith.constant 0 : i32
    %c0_i32_0 = arith.constant 0 : i32
    %c0_i32_1 = arith.constant 0 : i32
    return %arg0, %c0_i32, %c0_i32_0 : i32, i32, i32
  }
}

</mosaic_0001>

<bundles_post_ra>
// kernel: tpu_custom_call.1
= control target key start
LH: loop header
LB: loop body
LE: loop exit
PB: predicated region body
PF: predicated region fallthrough
CT: control target
= control target key end

     0   :  { %s7680_s0 = inlined_call_operand.hbm [shape: f32[2,16,128], index: 0, kind: input, shape index: {}]   ;;  %s7681_s1 = inlined_call_operand.hbm [shape: f32[2,16,128], index: 1, kind: input, shape index: {}]   ;;  %s7682_s2 = inlined_call_operand.hbm [shape: bf16[2,128,256], index: 2, kind: input, shape index: {}]   ;;  %s7683_s3 = inlined_call_operand.vmem [shape: f32[2,1,256], index: 3, kind: input, shape index: {}]   ;;  %s7684_s4 = inlined_call_operand.hbm [shape: bf16[2,128,128], index: 4, kind: input, shape index: {}]   ;;  %s7685_s5 = inlined_call_operand.hbm [shape: f32[2,1,128], index: 5, kind: input, shape index: {}]   ;;  %s7686_s6 = inlined_call_operand.hbm [shape: bf16[2,128,128], index: 6, kind: input, shape index: {}]   ;;  %s7687_s7 = inlined_call_operand.vmem [shape: f32[2,1,128], index: 7, kind: input, shape index: {}]   ;;  %s7688_s8 = inlined_call_operand.hbm [shape: bf16[2,128,256], index: 8, kind: input, shape index: {}]   ;;  %s7689_s9 = inlined_call_operand.vmem [shape: f32[2,1,256], index: 9, kind: input, shape index: {}]   ;;  %s7690_s10 = inlined_call_operand.hbm [shape: bf16[2,256,128], index: 10, kind: input, shape index: {}]   ;;  %s7691_s11 = inlined_call_operand.vmem [shape: f32[2,1,128], index: 11, kind: input, shape index: {}]   ;;  %s7692_s12 = inlined_call_operand.vmem [shape: f32[2,1,128], index: 12, kind: input, shape index: {}]   ;;  %s7693_s13 = inlined_call_operand.vmem [shape: f32[2,1,128], index: 13, kind: input, shape index: {}]   ;;  %s7694_s14 = inlined_call_operand.vmem [shape: f32[2,1,128], index: 14, kind: input, shape index: {}]   ;;  %s7695_s15 = inlined_call_operand.vmem [shape: f32[2,1,128], index: 15, kind: input, shape index: {}]   ;;  %s7696_s16 = inlined_call_operand.hbm [shape: f32[2,16,128], index: 16, kind: output, shape index: {}]  }
   0x1   :  { %7714 = sst [smem:[#allocation26_spill]] %s7680_s0 }
   0x2   :  { %7715 = sst [smem:[#allocation27_spill]] %s7681_s1 }
   0x3   :  { %7716 = sst [smem:[#allocation28_spill]] %s7682_s2 }
   0x4   :  { %7717 = sst [smem:[#allocation29_spill]] %s7683_s3 }
   0x5   :  { %7718 = sst [smem:[#allocation30_spill]] %s7684_s4 }
   0x6   :  { %7719 = sst [smem:[#allocation31_spill]] %s7685_s5 }
   0x7   :  { %7720 = sst [smem:[#allocation32_spill]] %s7686_s6 }
   0x8   :  { %7721 = sst [smem:[#allocation33_spill]] %s7687_s7 }
   0x9   :  { %7722 = sst [smem:[#allocation34_spill]] %s7688_s8 }
   0xa   :  { %7723 = sst [smem:[#allocation35_spill]] %s7689_s9 }
   0xb   :  { %7724 = sst [smem:[#allocation36_spill]] %s7690_s10 }
   0xc   :  { %7725 = sst [smem:[#allocation37_spill]] %s7691_s11 }
   0xd   :  { %7726 = sst [smem:[#allocation38_spill]] %s7692_s12 }
   0xe   :  { %7727 = sst [smem:[#allocation39_spill]] %s7693_s13 }
   0xf   :  { %7728 = sst [smem:[#allocation40_spill]] %s7694_s14 }
  0x10   :  { %7729 = sst [smem:[#allocation41_spill]] %s7695_s15 }
  0x11   :  { %7730 = sst [smem:[#allocation42_spill]] %s7696_s16 }
  0x12   :  { %21 = vsyncpa [#allocation4], 0 }
  0x13   :  { %22 = vsyncpa [#allocation7], 0 }
  0x14   :  { %23 = vsyncpa [#allocation5], 0  ;;  %s6527_s21 = smov 0   ;;  %s6529_s22 = smov 0  }
  0x15   :  { %s6531_s23 = smov 0   ;;  %s6533_s24 = smov 0  }
  0x16   :  { %s6535_s25 = smov 0   ;;  %s6537_s26 = smov 0  }
  0x17 LB: > { %7731 = sst [smem:[#allocation19_spill]] %s6401_s22  ;;  %s6556_s27 = sadd.s32 4294967295, %s6417_s26   ;;  %s6417_s26 = sphi %s6537_s26, %s29_s26   ;;  %s6413_s25 = sphi %s6535_s25, %s7789_s25   ;;  %s6409_s24 = sphi %s6533_s24, %s7788_s24   ;;  %s6405_s23 = sphi %s6531_s23, %s7786_s23   ;;  %s6401_s22 = sphi %s6529_s22, %s7785_s22   ;;  %s6397_s21 = sphi %s6527_s21, %s7784_s21  }
  0x18   : > { %7732 = sst [smem:[#allocation20_spill]] %s6405_s23  ;;  %p107_p0 = scmp.ne.s32.totalorder %s6405_s23, %s6401_s22 }
  0x19   : > { %7733 = sst [smem:[#allocation21_spill]] %s6409_s24  ;;  %p108_p1 = scmp.eq.s32.totalorder %s6417_s26, 0 }
  0x1a   : > { %7734 = sst [smem:[#allocation22_spill]] %s6417_s26  ;;  %p113_p2 = scmp.ne.s32.totalorder %s6401_s22, %s6397_s21 }
  0x1b   : > { %p7697_p3 = scmp.eq.s32.totalorder %s6556_s27, 0  ;;  %p109_p4 = por %p108_p1, %p107_p0 }
  0x1c   : > { %p5419_p5 = scmp.ge.s32.totalorder %s6417_s26, 1  ;;  %p488_p7 = scmp.lt.s32.totalorder %s6417_s26, 3 }
  0x1d   : > { %p6567_p6 = por %p7697_p3, %p113_p2  ;;  %s6419_s0 = smov [#allocation3]  }
  0x1e   : > { %p6572_p8 = pnand %p5419_p5, %p488_p7  ;;  %s504_s17 = sshll.u32 %s6419_s0, 4  ;;  %s505_s17 = int_to_ptr.vmem [resolvable:$true] %s504_s17 }
  0x1f   : > { %s7735_s29 = scalar_select %p6567_p6, 1, 0 }
  0x20   : > { %p5819_p9 = pneg %p6572_p8  ;;  %p5847_p10 = scmp.lt.s32.totalorder %s6417_s26, 2 }
  0x21   : > { %7736 = sst [smem:[#allocation23_spill]] %s7735_s29  ;;  %s38_s20 = sadd.s32 1, %s6413_s25 }
  0x22   : > { %p6581_p11 = pnand %p5819_p9, %p7697_p3  ;;  %p6585_p12 = pnand %p5847_p10, %p109_p4 }
  0x23   : > { %s6122_s21 = scalar_lea.vmem %s505_s17, 512  ;;  %p6130_p5 = scmp.lt.s32.totalorder %s505_s17, %s505_s17 }
  0x24   : > { %p6113_p13 = pneg %p6581_p11  ;;  %p6123_p0 = scmp.ne.s32.totalorder %s505_s17, %s6122_s21 }
  0x25   : > { %p6131_p7 = scmp.lt.s32.totalorder %s6122_s21, %s6122_s21 }
  0x26   : > { %p6125_p1 = pnand %p6123_p0, %p6113_p13 }
  0x27   : > { %p6132_p9 = por %p6131_p7, %p6130_p5 }
  0x28   : > { %p6126_p2 = pneg %p6125_p1 }
  0x2a   : > { %p6133_p3 = pnand %p6132_p9, %p6126_p2 }
  0x2c   : > { %6136 = shalt.err (!%p6133_p3)
}
  0x2d   : > { %s7698_s0 = smov 128   ;;  %s7700_s28 = smov 8  }
  0x2e   : > { %s7740_s14 = sld [smem:[#allocation26_spill]]  ;;  %p39_p4 = scmp.ge.s32.totalorder %s38_s20, 2 }
  0x2f   : > { %s535_s21 = sand.u32 1, %s6417_s26   ;;  %s6605_s13 = sand.u32 1, %s6405_s23  }
  0x30   : > { %s7791_s20 = smov (%p39_p4, %s38_s20), 0  ;;  %s6610_s12 = sshll.u32 %s6605_s13, 7 }
  0x31   : > { %7741 = sst [smem:[#allocation24_spill]] %s7791_s20  ;;  %s97_s11 = ssub.s32 %s6413_s25, %s7791_s20 }
  0x32   : > { %p98_p3 = scmp.eq.s32.totalorder %s97_s11, 0  ;;  %s6615_s9 = sshll.u32 %s6413_s25, 11 }
  0x33   : > { %s7742_s2 = sld [smem:[#allocation28_spill]]  ;;  %s6628_s7 = scalar_lea.sflag [#allocation4], %s535_s21 }
  0x34   : > { %5822 = dma.hbm_to_vmem [thread:$0]  (!%p6581_p11), %s7740_s14, 512, %s505_s17, [#allocation4], %s7698_s0, %s7698_s0, %s7700_s28  }
  0x35   : > { %s539_s17 = scalar_lea.vmem [#allocation8], %s6610_s12  ;;  %s7743_s28 = sadd.s32 1, %s6405_s23 }
  0x36   : > { %s546_s0 = sshll.u32 %s539_s17, 4  ;;  %p6632_p10 = pneg %p6585_p12  ;;  %s547_s0 = int_to_ptr.vmem [resolvable:$true] %s546_s0 }
  0x37   : > { %s6625_s26 = scalar_select %p98_p3, %s6405_s23, %s7743_s28  }
  0x38   : > { %s6150_s11 = scalar_lea.vmem %s547_s0, 2048  ;;  %s6422_s15 = smov [#allocation8]  }
  0x39   : > { %s545_s16 = scalar_lea.hbm %s7742_s2, %s6615_s9  ;;  %7744 = sst [smem:[#allocation25_spill]] %s6625_s26 }
  0x3a   : > { %p6151_p0 = scmp.ne.s32.totalorder %s547_s0, %s6150_s11  ;;  %s6155_s14 = sshll.u32 %s6422_s15, 4  ;;  %s6156_s14 = int_to_ptr.vmem [resolvable:$false] %s6155_s14 }
  0x3b   : > { %s6157_s28 = scalar_lea.vmem %s6156_s14, 4096  ;;  %p6158_p5 = scmp.lt.s32.totalorder %s547_s0, %s6156_s14 }
  0x3c   : > { %p6153_p1 = pnand %p6151_p0, %p6632_p10  ;;  %p6159_p7 = scmp.lt.s32.totalorder %s6157_s28, %s6150_s11 }
  0x3e   : > { %p6154_p2 = pneg %p6153_p1  ;;  %p6160_p9 = por %p6159_p7, %p6158_p5 }
  0x40   : > { %p6161_p4 = pnand %p6160_p9, %p6154_p2 }
  0x42   : > { %6164 = shalt.err (!%p6161_p4)
}
  0x43   : > { %s7746_s21 = smov 8   ;;  %s7747_s17 = smov 128  }
  0x44   : > { %5829 = dma.hbm_to_vmem [thread:$0]  (!%p6585_p12), %s545_s16, 2048, %s547_s0, %s6628_s7, %s7747_s17, %s7747_s17, %s7746_s21  }
  0x45   : > { %s7709_s3 = sshll.u32 %s6413_s25, 10  ;;  %s7748_s4 = sld [smem:[#allocation30_spill]] }
  0x46   : > { %s7749_s14 = sshll.u32 %s6605_s13, 6  ;;  %s6423_s24 = smov [#allocation9]  }
  0x47   : > { %s567_s28 = scalar_lea.vmem [#allocation9], %s7749_s14  ;;  %s6183_s29 = sshll.u32 %s6423_s24, 4  ;;  %s6184_s29 = int_to_ptr.vmem [resolvable:$false] %s6183_s29 }
  0x48   : > { %s574_s26 = sshll.u32 %s567_s28, 4  ;;  %s6185_s22 = scalar_lea.vmem %s6184_s29, 2048  ;;  %s575_s26 = int_to_ptr.vmem [resolvable:$true] %s574_s26 }
  0x49   : > { %s6178_s23 = scalar_lea.vmem %s575_s26, 1024  ;;  %p6186_p2 = scmp.lt.s32.totalorder %s575_s26, %s6184_s29 }
  0x4a   : > { %p6179_p3 = scmp.ne.s32.totalorder %s575_s26, %s6178_s23  ;;  %p6187_p5 = scmp.lt.s32.totalorder %s6185_s22, %s6178_s23 }
  0x4b   : > { %s573_s11 = scalar_lea.hbm %s7748_s4, %s7709_s3 }
  0x4c   : > { %p6181_p0 = pnand %p6179_p3, %p6632_p10  ;;  %p6188_p7 = por %p6187_p5, %p6186_p2 }
  0x4e   : > { %p6182_p1 = pneg %p6181_p0 }
  0x50   : > { %p6189_p9 = pnand %p6188_p7, %p6182_p1 }
  0x52   : > { %6192 = shalt.err (!%p6189_p9)
}
  0x53   : > { %s7710_s2 = smov 64   ;;  %s7712_s0 = smov 4  }
  0x54   : > { %5832 = dma.hbm_to_vmem [thread:$0]  (!%p6585_p12), %s573_s11, 1024, %s575_s26, %s6628_s7, %s7710_s2, %s7710_s2, %s7712_s0  }
  0x55   : > { %s5429_s24 = sshll.u32 %s6413_s25, 4  ;;  %s587_s16 = scalar_lea.vmem [#allocation10], %s6605_s13 }
  0x56   : > { %s594_s15 = sshll.u32 %s587_s16, 4  ;;  %s7750_s5 = sld [smem:[#allocation31_spill]]  ;;  %s595_s15 = int_to_ptr.vmem [resolvable:$true] %s594_s15 }
  0x57   : > { %s6206_s14 = scalar_lea.vmem %s595_s15, 16  ;;  %s6426_s28 = smov [#allocation10]  }
  0x58   : > { %p6207_p4 = scmp.ne.s32.totalorder %s595_s15, %s6206_s14  ;;  %s6211_s3 = sshll.u32 %s6426_s28, 4  ;;  %s6212_s3 = int_to_ptr.vmem [resolvable:$false] %s6211_s3 }
  0x59   : > { %s6213_s4 = scalar_lea.vmem %s6212_s3, 32  ;;  %p6214_p1 = scmp.lt.s32.totalorder %s595_s15, %s6212_s3 }
  0x5a   : > { %p6209_p3 = pnand %p6207_p4, %p6632_p10  ;;  %p6215_p2 = scmp.lt.s32.totalorder %s6213_s4, %s6206_s14 }
  0x5c   : > { %s592_s23 = scalar_lea.hbm %s7750_s5, %s5429_s24  ;;  %p6210_p0 = pneg %p6209_p3 }
  0x5d   : > { %p6216_p5 = por %p6215_p2, %p6214_p1 }
  0x5f   : > { %p6217_p7 = pnand %p6216_p5, %p6210_p0 }
  0x61   : > { %6220 = shalt.err (!%p6217_p7)
}
  0x62   : > { %5835 = dma.hbm_to_vmem [thread:$0]  (!%p6585_p12), %s592_s23, 16, %s595_s15, %s6628_s7  }
  0x63   : > { %s7751_s26 = sshll.u32 %s6413_s25, 10  ;;  %s7752_s6 = sld [smem:[#allocation32_spill]] }
  0x64   : > { %s7753_s29 = sshll.u32 %s6605_s13, 6  ;;  %s7754_s8 = sld [smem:[#allocation34_spill]] }
  0x65   : > { %s605_s22 = scalar_lea.vmem [#allocation11], %s7753_s29  ;;  %s6427_s0 = smov [#allocation11]  }
  0x66   : > { %s612_s3 = sshll.u32 %s605_s22, 4  ;;  %s6239_s15 = sshll.u32 %s6427_s0, 4  ;;  %s613_s3 = int_to_ptr.vmem [resolvable:$true] %s612_s3  ;;  %s6240_s15 = int_to_ptr.vmem [resolvable:$false] %s6239_s15 }
  0x67   : > { %s6234_s2 = scalar_lea.vmem %s613_s3, 1024  ;;  %s6241_s23 = scalar_lea.vmem %s6240_s15, 2048 }
  0x68   : > { %p6235_p9 = scmp.ne.s32.totalorder %s613_s3, %s6234_s2  ;;  %p6242_p0 = scmp.lt.s32.totalorder %s613_s3, %s6240_s15 }
  0x69   : > { %s611_s16 = scalar_lea.hbm %s7752_s6, %s7751_s26  ;;  %p6243_p1 = scmp.lt.s32.totalorder %s6241_s23, %s6234_s2 }
  0x6a   : > { %s638_s28 = scalar_lea.hbm %s7754_s8, %s6615_s9  ;;  %p6237_p4 = pnand %p6235_p9, %p6632_p10 }
  0x6b   : > { %p6244_p2 = por %p6243_p1, %p6242_p0 }
  0x6c   : > { %p6238_p3 = pneg %p6237_p4 }
  0x6e   : > { %p6245_p5 = pnand %p6244_p2, %p6238_p3 }
  0x70   : > { %6248 = shalt.err (!%p6245_p5)
}
  0x71   : > { %s7755_s13 = smov 4   ;;  %s7756_s26 = smov 64  }
  0x72   : > { %5838 = dma.hbm_to_vmem [thread:$0]  (!%p6585_p12), %s611_s16, 1024, %s613_s3, %s6628_s7, %s7756_s26, %s7756_s26, %s7755_s13  }
  0x73   : > { %s632_s11 = scalar_lea.vmem [#allocation12], %s6610_s12  ;;  %s6428_s0 = smov [#allocation6]  }
  0x74   : > { %s639_s24 = sshll.u32 %s632_s11, 4  ;;  %s521_s29 = sshll.u32 %s6428_s0, 4  ;;  %s640_s24 = int_to_ptr.vmem [resolvable:$true] %s639_s24  ;;  %s522_s29 = int_to_ptr.vmem [resolvable:$true] %s521_s29 }
  0x75   : > { %s6262_s22 = scalar_lea.vmem %s640_s24, 2048  ;;  %s6429_s2 = smov [#allocation12]  }
  0x76   : > { %p6263_p7 = scmp.ne.s32.totalorder %s640_s24, %s6262_s22  ;;  %s6267_s4 = sshll.u32 %s6429_s2, 4  ;;  %s6268_s4 = int_to_ptr.vmem [resolvable:$false] %s6267_s4 }
  0x77   : > { %s6269_s14 = scalar_lea.vmem %s6268_s4, 4096  ;;  %p6270_p3 = scmp.lt.s32.totalorder %s640_s24, %s6268_s4 }
  0x78   : > { %p6265_p9 = pnand %p6263_p7, %p6632_p10  ;;  %p6271_p0 = scmp.lt.s32.totalorder %s6269_s14, %s6262_s22 }
  0x7a   : > { %p6266_p4 = pneg %p6265_p9  ;;  %p6272_p1 = por %p6271_p0, %p6270_p3 }
  0x7c   : > { %p6273_p2 = pnand %p6272_p1, %p6266_p4 }
  0x7e   : > { %6276 = shalt.err (!%p6273_p2)
}
  0x7f   : > { %5841 = dma.hbm_to_vmem [thread:$0]  (!%p6585_p12), %s638_s28, 2048, %s640_s24, %s6628_s7, %s7747_s17, %s7747_s17, %s7746_s21  }
  0x80   : > { %s6288_s15 = scalar_lea.vmem %s522_s29, 512  ;;  %p6296_p4 = scmp.lt.s32.totalorder %s522_s29, %s522_s29 }
  0x81   : > { %p6289_p5 = scmp.ne.s32.totalorder %s522_s29, %s6288_s15  ;;  %p6297_p3 = scmp.lt.s32.totalorder %s6288_s15, %s6288_s15 }
  0x83   : > { %p6291_p7 = pnand %p6289_p5, %p6113_p13  ;;  %p6298_p0 = por %p6297_p3, %p6296_p4 }
  0x85   : > { %p6292_p9 = pneg %p6291_p7 }
  0x87   : > { %p6299_p1 = pnand %p6298_p0, %p6292_p9 }
  0x89   : > { %6302 = shalt.err (!%p6299_p1)
}
  0x8a   : > { %s7757_s1 = sld [smem:[#allocation27_spill]]  ;;  %s660_s22 = scalar_lea.vmem [#allocation13], %s6610_s12 }
  0x8b   : > { %s7758_s10 = sld [smem:[#allocation36_spill]]  ;;  %s667_s2 = sshll.u32 %s660_s22, 4  ;;  %s668_s2 = int_to_ptr.vmem [resolvable:$true] %s667_s2 }
  0x8c   : > { %s6316_s4 = scalar_lea.vmem %s668_s2, 2048  ;;  %s6430_s18 = smov [#allocation13]  }
  0x8d   : > { %p6317_p13 = scmp.ne.s32.totalorder %s668_s2, %s6316_s4  ;;  %s6321_s14 = sshll.u32 %s6430_s18, 4  ;;  %s6322_s14 = int_to_ptr.vmem [resolvable:$false] %s6321_s14 }
  0x8e   : > { %s6323_s16 = scalar_lea.vmem %s6322_s14, 4096  ;;  %p6324_p7 = scmp.lt.s32.totalorder %s668_s2, %s6322_s14 }
  0x8f   : > { %p6319_p2 = pnand %p6317_p13, %p6632_p10  ;;  %p6325_p9 = scmp.lt.s32.totalorder %s6323_s16, %s6316_s4 }
  0x90   : > { %5825 = dma.hbm_to_vmem [thread:$0]  (!%p6581_p11), %s7757_s1, 512, %s522_s29, [#allocation7], %s7747_s17, %s7747_s17, %s7746_s21  }
  0x91   : > { %s666_s0 = scalar_lea.hbm %s7758_s10, %s6615_s9  ;;  %p6320_p5 = pneg %p6319_p2 }
  0x92   : > { %p6326_p4 = por %p6325_p9, %p6324_p7 }
  0x94   : > { %p6327_p11 = pnand %p6326_p4, %p6320_p5 }
  0x96   : > { %6330 = shalt.err (!%p6327_p11)
}
  0x97   : > { %5844 = dma.hbm_to_vmem [thread:$0]  (!%p6585_p12), %s666_s0, 2048, %s668_s2, %s6628_s7, %s7756_s26, %s7756_s26, %s7755_s13  }
  0x98   : > { %709 = sbr.rel (%p6572_p8) target bundleno = 3066 (0xbfa), region = 84  ;;  %p7759_p10 = scmp.eq.s32.totalorder (!%p6572_p8), %s6556_s27, 0 }
  0x9d   : > { %6380 = dma.done.wait (%p7759_p10), [#allocation4], 512   ;;  %p7760_p3 = pmov %p7759_p10 }
  0x9f   : > { %6382 = vsyncadd (%p7760_p3), [#allocation4], 4294966784  ;;  %p7761_p0 = pmov %p7760_p3 }
  0xa1   : > { %6384 = dma.done.wait (%p7761_p0), [#allocation7], 512   ;;  %p7762_p1 = pmov %p7761_p0 }
  0xa2   : > { %s7763_s9 = sld [smem:[#allocation19_spill]]  ;;  %s719_s19 = sand.u32 1, %s6556_s27  }
  0xa3   : > { %6386 = vsyncadd (%p7762_p1), [#allocation7], 4294966784  ;;  %s720_s20 = scalar_lea.sflag [#allocation4], %s719_s19 }
  0xa8   : > { %s6739_s7 = sand.u32 1, %s7763_s9  }
  0xa9   : > { %s5442_s30 = sshll.u32 %s6739_s7, 7 }
  0xaa   : > { %s6742_s21 = scalar_lea.vmem [#allocation8], %s5442_s30 }
  0xab   : > { %6388 = dma.done.wait (%p6567_p6), %s720_s20, 8208  }
  0xac   : > { %6390 = vsyncadd (%p6567_p6), %s720_s20, 4294959088  ;;  %s7765_s17 = sld [smem:[#allocation21_spill]]  ;;  %s5443_s13 = sshll.u32 %s6739_s7, 6 }
  0xad   : > { %s7767_s0 = sld [smem:[#allocation29_spill]]  ;;  %s740_s16 = scalar_lea.vmem [#allocation10], %s6739_s7 }
  0xae   : > { %s7768_s18 = sld [smem:[#allocation35_spill]]  ;;  %s6791_s9 = scalar_lea.vmem [#allocation11], %s5443_s13 }
  0xaf   : > { %s7769_s12 = sld [smem:[#allocation37_spill]]  ;;  %s6795_s1 = scalar_lea.vmem [#allocation13], %s5442_s30 }
  0xb0   : > { %s7770_s5 = sld [smem:[#allocation38_spill]] }
  0xb1   : > { %s7771_s23 = sld [smem:[#allocation39_spill]] }
  0xb2   : > { %p863_p8 = scmp.lt.s32.totalorder %s7765_s17, 1  ;;  %p5449_p6 = scmp.ne.s32.totalorder %s7765_s17, 0 }
  0xb4   : > { %s6751_s26 = scalar_select %p863_p8, %s7765_s17, 1 }
  0xb6   : > { %s5447_s29 = sshll.u32 %s6751_s26, 1  ;;  %s876_s19 = scalar_lea.vmem %s7769_s12, %s6751_s26 }
  0xb7   : > { %s6761_s22 = scalar_lea.vmem %s7767_s0, %s5447_s29  ;;  %s6766_s14 = scalar_lea.vmem %s7768_s18, %s5447_s29 }
  0xb8   : > { %s879_s6 = scalar_lea.vmem %s7770_s5, %s6751_s26  ;;  %s882_s11 = scalar_lea.vmem %s7771_s23, %s6751_s26 }
  0xb9   : > { %s7772_s0 = sld [smem:[#allocation40_spill]]  ;;  %s6788_s18 = scalar_lea.vmem [#allocation9], %s5443_s13 }
  0xba   : > { %s7773_s29 = sld [smem:[#allocation41_spill]]  ;;  %s6793_s12 = scalar_lea.vmem [#allocation12], %s5442_s30 }
  0xbc   : > { %894 = sbr.rel (%p5449_p6) target bundleno = 196 (0xc4), region = 120 }
  0xbf   : > { %s885_s8 = scalar_lea.vmem %s7772_s0, %s6751_s26 }
  0xc0   : > { %s888_s4 = scalar_lea.vmem %s7773_s29, %s6751_s26 }
  0xc1   : > { %v895_v0 = vld [vmem:[#allocation3] sm:$0xff]  ;;  %v896_v1 = vld [vmem:[#allocation3 + $0x8] sm:$0xff]  ;;  %v897_v2 = vld [vmem:[#allocation3 + $0x10] sm:$0xff] }
  0xc2   : > { %899 = vst [vmem:[#allocation2 + $0x10] sm:$0xff] %v895_v0  ;;  %900 = vst [vmem:[#allocation2] sm:$0xff] %v896_v1  ;;  %v898_v3 = vld [vmem:[#allocation3 + $0x18] sm:$0xff] }
  0xc3   : > { %901 = vst [vmem:[#allocation2 + $0x18] sm:$0xff] %v897_v2  ;;  %902 = vst [vmem:[#allocation2 + $0x8] sm:$0xff] %v898_v3 }
  0xc4 PF: > { %v5947_v4 = vld [vmem:[%s6742_s21 + $0x74] ss:$8 sps:$4 sm:$0xff]   ;;  %v5949_v5 = vld [vmem:[%s6742_s21 + $0x70] ss:$8 sps:$4 sm:$0xff]   ;;  %v6431_v6 = vmov 0   ;;  %v5973_v21 = vld [vmem:[%s6788_s18 + $0x28] sm:$0xff]   ;;  %v935_v40 = vlaneseq }
  0xc5   : > { %1057 = vmatprep.mubr.bf16.mxu0 %v6431_v6  ;;  %1025 = vmatprep.subr.bf16.mxu0 %v5947_v4  ;;  %v5950_v7 = vld [vmem:[%s6742_s21 + $0x64] ss:$8 sps:$4 sm:$0xff]   ;;  %v5952_v8 = vld [vmem:[%s6742_s21 + $0x60] ss:$8 sps:$4 sm:$0xff]   ;;  %v5953_v9 = vld [vmem:[%s6742_s21 + $0x54] ss:$8 sps:$4 sm:$0xff]  }
  0xc6   : > { %1026 = vmatpush1.bf16.msra.mxu0 %v5949_v5  ;;  %v5955_v10 = vld [vmem:[%s6742_s21 + $0x50] ss:$8 sps:$4 sm:$0xff]   ;;  %v5956_v11 = vld [vmem:[%s6742_s21 + $0x44] ss:$8 sps:$4 sm:$0xff]   ;;  %v5958_v12 = vld [vmem:[%s6742_s21 + $0x40] ss:$8 sps:$4 sm:$0xff]  }
  0xc7   : > { %1027 = vmatprep.subr.bf16.mxu0 %v5950_v7  ;;  %v5959_v13 = vld [vmem:[%s6742_s21 + $0x34] ss:$8 sps:$4 sm:$0xff]   ;;  %v5961_v19 = vld [vmem:[%s6742_s21 + $0x30] ss:$8 sps:$4 sm:$0xff]   ;;  %v5962_v20 = vld [vmem:[%s6742_s21 + $0x24] ss:$8 sps:$4 sm:$0xff]  }
  0xc8   : > { %v5971_v16 = vld [vmem:[%s6788_s18 + $0x38] sm:$0xff]   ;;  %v5972_v18 = vld [vmem:[%s6788_s18 + $0x30] sm:$0xff]   ;;  %v5964_v22 = vld [vmem:[%s6742_s21 + $0x20] ss:$8 sps:$4 sm:$0xff]   ;;  %v6824_v45 = vshrl.u32 %v935_v40, 7  ;;  %s6432_s5 = smov 96  }
  0xc9   : > { %v903_v14 = vld [vmem:[#allocation2 + $0x10] sm:$0xff]  ;;  %v904_v15 = vld [vmem:[#allocation2] sm:$0xff]  ;;  %5659 = vmatprep.subr.bf16.mxu1 %v5971_v16  ;;  %v908_v27 = vld [vmem:[#allocation6 + $0x8] sm:$0xff]  ;;  %s6433_s10 = smov 64   ;;  %s6434_s30 = smov 32   ;;  %v6435_v60 = vmov 0.0  }
  0xca   : > { %1028 = vmatpush1.bf16.msra.mxu0 %v5952_v8  ;;  %v1078_v17 = vpack.c.bf16 %v904_v15, %v903_v14  ;;  %5660 = vmatpush3.bf16.msra.mxu1 %v5971_v16  ;;  %v5965_v23 = vld [vmem:[%s6742_s21 + $0x14] ss:$8 sps:$4 sm:$0xff]   ;;  %v5974_v24 = vld [vmem:[%s6788_s18 + $0x20] sm:$0xff]   ;;  %v5967_v25 = vld [vmem:[%s6742_s21 + $0x10] ss:$8 sps:$4 sm:$0xff]   ;;  %v912_v32 = vadd.f32 %v908_v27, %v904_v15  ;;  %v937_v47 = vsub.s32 0, %v6824_v45 }
  0xcb   : > { %1029 = vmatprep.subr.bf16.mxu0 %v5953_v9  ;;  %5661 = vmatprep.subr.bf16.mxu1 %v5972_v18  ;;  %v907_v26 = vld [vmem:[#allocation6] sm:$0xff]  ;;  %v5975_v29 = vld [vmem:[%s6788_s18 + $0x18] sm:$0xff]   ;;  %v5976_v33 = vld [vmem:[%s6788_s18 + $0x10] sm:$0xff]   ;;  %v941_v49 = vsub.s32 1, %v6824_v45  ;;  %vm6436_vm0 = vmmov 0   ;;  %vm2088_vm1 = vcmask 261120  }
  0xcc   : > { %5675 = vmatprep.mubr.bf16.mxu1 %v1078_v17  ;;  %v5968_v28 = vld [vmem:[%s6742_s21 + $0x4] ss:$8 sps:$4 sm:$0xff]   ;;  %v5970_v30 = vld [vmem:[%s6742_s21] ss:$8 sps:$4 sm:$0xff]   ;;  %v911_v31 = vadd.f32 %v907_v26, %v903_v14  ;;  %v905_v37 = vld [vmem:[#allocation2 + $0x18] sm:$0xff]  ;;  %vm2277_vm2 = vcmask 130048  }
  0xcd   : > { %v5977_v35 = vld [vmem:[%s6788_s18 + $0x8] sm:$0xff]   ;;  %v5978_v36 = vld [vmem:[%s6788_s18] sm:$0xff]   ;;  %v909_v41 = vld [vmem:[#allocation6 + $0x10] sm:$0xff]  ;;  %v6437_v7 = vmov 1983009808   ;;  %vm2844_vm3 = vcmask 523264  }
  0xce   : > { %1030 = vmatpush1.bf16.msra.mxu0 %v5955_v10  ;;  %5662 = vmatpush3.bf16.msra.mxu1 %v5972_v18  ;;  %v915_v34 = vpack.c.bf16 %v912_v32, %v911_v31  ;;  %v906_v38 = vld [vmem:[#allocation2 + $0x8] sm:$0xff]  ;;  %v910_v42 = vld [vmem:[#allocation6 + $0x18] sm:$0xff]  ;;  %v913_v43 = vadd.f32 %v909_v41, %v905_v37  ;;  %v933_v48 = vld [vmem:[%s6761_s22] sm:$0x3]  ;;  %v1223_v8 = vunpack.c.l.s4 %v6437_v7  ;;  %v6438_v10 = vmov 1934713408  }
  0xcf   : > { %1031 = vmatprep.subr.bf16.mxu0 %v5956_v11  ;;  %5663 = vmatprep.subr.bf16.mxu1 %v5973_v21  ;;  %v1079_v39 = vpack.c.bf16 %v906_v38, %v905_v37  ;;  %v914_v44 = vadd.f32 %v910_v42, %v906_v38  ;;  %v6831_v50 = vrot.slane %v933_v48, %v937_v47  ;;  %v5466_v62 = vld [vmem:[%s740_s16] ss:$0 sm:$0xff]  ;;  %v1255_v11 = vunpack.c.l.s4 %v6438_v10  ;;  %s7774_s17 = sld [smem:[#allocation33_spill]] }
  0xd0   : > { %v6835_v51 = vrot.slane %v933_v48, %v941_v49  ;;  %vm2847_vm4 = vcmask 785408  }
  0xd1   : > { %v916_v46 = vpack.c.bf16 %v914_v44, %v913_v43  ;;  %v1256_v15 = vunpack.c.0.s8 %v1255_v11 }
  0xd2   : > { %1032 = vmatpush1.bf16.msra.mxu0 %v5958_v12  ;;  %5664 = vmatpush3.bf16.msra.mxu1 %v5973_v21 }
  0xd3   : > { %1033 = vmatprep.subr.bf16.mxu0 %v5959_v13  ;;  %5665 = vmatprep.subr.bf16.mxu1 %v5974_v24  ;;  %v1224_v13 = vunpack.c.0.s8 %v1223_v8 }
  0xd5   : > { %v6901_v17 = vsub.s32 %v1224_v13, %v6824_v45  ;;  %s7775_s13 = scalar_lea.vmem %s7774_s17, %s6751_s26 }
  0xd6   : > { %1034 = vmatpush1.bf16.msra.mxu0 %v5961_v19  ;;  %5666 = vmatpush3.bf16.msra.mxu1 %v5974_v24 }
  0xd7   : > { %1035 = vmatprep.subr.bf16.mxu0 %v5962_v20  ;;  %5667 = vmatprep.subr.bf16.mxu1 %v5975_v29 }
  0xda   : > { %1036 = vmatpush1.bf16.msra.mxu0 %v5964_v22  ;;  %5668 = vmatpush3.bf16.msra.mxu1 %v5975_v29 }
  0xdb   : > { %1037 = vmatprep.subr.bf16.mxu0 %v5965_v23  ;;  %5669 = vmatprep.subr.bf16.mxu1 %v5976_v33  ;;  %v6904_v23 = vsub.s32 %v1256_v15, %v6824_v45 }
  0xde   : > { %1038 = vmatpush1.bf16.msra.mxu0 %v5967_v25  ;;  %5670 = vmatpush3.bf16.msra.mxu1 %v5976_v33 }
  0xdf   : > { %1039 = vmatprep.subr.bf16.mxu0 %v5968_v28  ;;  %5671 = vmatprep.subr.bf16.mxu1 %v5977_v35 }
  0xe2   : > { %1040 = vmatpush1.bf16.msra.mxu0 %v5970_v30  ;;  %5672 = vmatpush3.bf16.msra.mxu1 %v5977_v35 }
  0xe3   : > { %5673 = vmatprep.subr.bf16.mxu1 %v5978_v36  ;;  %5679 = vmatprep.subr.bf16.mxu0 %v6435_v60 }
  0xe5   : > { %1058 = vmatmul.mubr.bf16.vlgmr.msra.gmra.mxu0 %v915_v34 }
  0xe6   : > { %1067 = vmatprep.mubr.bf16.mxu0 %v6431_v6  ;;  %5674 = vmatpush3.bf16.msra.mxu1 %v5978_v36 }
  0xe7   : > { %5691 = vmatprep.subr.bf16.mxu1 %v6435_v60 }
  0xe9   : > { %5676 = vmatmul.mubr.bf16.vlgmr.msra.gmra.mxu1 %v1079_v39 }
  0xea   : > { %5693 = vmatprep.mubr.msk.bf16.mxu1 %vm6436_vm0, %v6435_v60 }
  0xed   : > { %1068 = vmatmul.mubr.bf16.gmra.mxu0 %v916_v46 }
  0xee   : > { %5681 = vmatprep.mubr.msk.bf16.mxu0 %vm6436_vm0, %v6435_v60 }
 0x1a5   : > { %v1059_v52 = vpop.f32.mrf.mxu0 }
 0x1a6   : > { %v6838_v53 = vadd.f32 %v1059_v52, %v6831_v50 }
 0x1a7   : > { %v1061_v54 = vpop.f32.mrf.mxu0 }
 0x1a8   : > { %v1062_v55 = vadd.f32 %v1061_v54, %v6835_v51  ;;  %1202 = vrot.lane.b32.xlu0 %v6838_v53, %s6432_s5 }
 0x1a9   : > { %v1063_v56 = vpop.f32.mrf.mxu0  ;;  %v5677_v61 = vpop.f32.mrf.mxu1 }
 0x1aa   : > { %1504 = vrot.lane.b32.xlu1 %v1062_v55, %s6433_s10  ;;  %v6845_v57 = vadd.f32 %v1063_v56, %v6831_v50  ;;  %v6876_v63 = vadd.f32 %v5677_v61, %v5466_v62 }
 0x1ab   : > { %v1065_v58 = vpop.f32.mrf.mxu0  ;;  %v1185_v0 = vpop.f32.mrf.mxu1 }
 0x1ac   : > { %1498 = vrot.lane.b32.xlu0 %v1062_v55, %s6432_s5  ;;  %v6851_v59 = vadd.f32 %v1065_v58, %v6835_v51  ;;  %v6878_v1 = vadd.f32 %v5466_v62, %v1185_v0 }
 0x1ad   : > { %v5678_v2 = vpop.f32.mrf.mxu1 }
 0x1ae   : > { %1204 = vrot.lane.b32.xlu1 %v6845_v57, %s6432_s5  ;;  %v6882_v3 = vadd.f32 %v5678_v2, %v5466_v62 }
 0x1af   : > { %v1188_v4 = vpop.f32.mrf.mxu1 }
 0x1b0   : > { %1510 = vrot.lane.b32.xlu0 %v1062_v55, %s6434_s30  ;;  %v6886_v5 = vadd.f32 %v5466_v62, %v1188_v4 }
 0x1b2   : > { %1506 = vrot.lane.b32.xlu1 %v6851_v59, %s6433_s10 }
 0x1b4   : > { %1500 = vrot.lane.b32.xlu0 %v6851_v59, %s6432_s5 }
 0x1b6   : > { %1512 = vrot.lane.b32.xlu1 %v6851_v59, %s6434_s30 }
 0x1b8   : > { %1208 = vrot.lane.b32.xlu0 %v6838_v53, %s6433_s10 }
 0x1ba   : > { %1210 = vrot.lane.b32.xlu1 %v6845_v57, %s6433_s10 }
 0x1bc   : > { %1214 = vrot.lane.b32.xlu0 %v6838_v53, %s6434_s30 }
 0x1be   : > { %1216 = vrot.lane.b32.xlu1 %v6845_v57, %s6434_s30 }
 0x1c0   : > { %1806 = vrot.lane.b32.xlu0 %v6878_v1, %s6434_s30 }
 0x1c2   : > { %1794 = vrot.lane.b32.xlu1 %v6878_v1, %s6432_s5 }
 0x1c4   : > { %1796 = vrot.lane.b32.xlu0 %v6886_v5, %s6432_s5 }
 0x1c6   : > { %1800 = vrot.lane.b32.xlu1 %v6878_v1, %s6433_s10 }
 0x1ca   : > { %1802 = vrot.lane.b32.xlu1 %v6886_v5, %s6433_s10 }
 0x1ce   : > { %1808 = vrot.lane.b32.xlu1 %v6886_v5, %s6434_s30 }
 0x21a   : > { %v6896_v9 = vpop.permute.xlu0 %1202 }
 0x21c   : > { %v1505_v12 = vpop.permute.xlu1 %1504 }
 0x21d   : > { %v1516_v18 = vcombine.low %v1062_v55, %v1505_v12  ;;  %v1517_v19 = vcombine.high %v1062_v55, %v1505_v12 }
 0x21e   : > { %v1499_v14 = vpop.permute.xlu0 %1498 }
 0x21f   : > { %v1524_v25 = vrot.slane %v1516_v18, %v6901_v17  ;;  %v1531_v26 = vrot.slane %v1517_v19, %v6901_v17 }
 0x220   : > { %v6898_v16 = vpop.permute.xlu1 %1204 }
 0x222   : > { %v1511_v20 = vpop.permute.xlu0 %1510 }
 0x223   : > { %v1532_v21 = vcombine.low %v1499_v14, %v1511_v20  ;;  %v1533_v22 = vcombine.high %v1499_v14, %v1511_v20 }
 0x224   : > { %v1507_v24 = vpop.permute.xlu1 %1506 }
 0x225   : > { %v1540_v27 = vrot.slane %v1532_v21, %v6901_v17  ;;  %v1547_v28 = vrot.slane %v1533_v22, %v6901_v17  ;;  %v1584_v29 = vcombine.low %v6851_v59, %v1507_v24  ;;  %v1585_v30 = vcombine.high %v6851_v59, %v1507_v24 }
 0x226   : > { %v1501_v31 = vpop.permute.xlu0 %1500 }
 0x227   : > { %v1548_v32 = vcombine.low %v1524_v25, %v1540_v27  ;;  %v1549_v33 = vcombine.high %v1524_v25, %v1540_v27  ;;  %v1564_v34 = vcombine.low %v1531_v26, %v1547_v28  ;;  %v1565_v35 = vcombine.high %v1531_v26, %v1547_v28 }
 0x228   : > { %v1513_v36 = vpop.permute.xlu1 %1512  ;;  %v1592_v44 = vrot.slane %v1584_v29, %v6901_v17  ;;  %v1599_v46 = vrot.slane %v1585_v30, %v6901_v17 }
 0x229   : > { %v1556_v37 = vrot.slane %v1548_v32, %v6904_v23  ;;  %v1563_v38 = vrot.slane %v1549_v33, %v6904_v23  ;;  %v1600_v39 = vcombine.low %v1501_v31, %v1513_v36  ;;  %v1601_v40 = vcombine.high %v1501_v31, %v1513_v36 }
 0x22a   : > { %v1209_v41 = vpop.permute.xlu0 %1208  ;;  %v1572_v42 = vrot.slane %v1564_v34, %v6904_v23  ;;  %v1579_v43 = vrot.slane %v1565_v35, %v6904_v23 }
 0x22b   : > { %v1652_v48 = vcombine.low %v1556_v37, %v1563_v38  ;;  %v1608_v52 = vrot.slane %v1600_v39, %v6901_v17  ;;  %v1615_v54 = vrot.slane %v1601_v40, %v6901_v17  ;;  %v1220_v55 = vcombine.low %v6838_v53, %v1209_v41 }
 0x22c   : > { %v1211_v56 = vpop.permute.xlu1 %1210  ;;  %v1221_v58 = vcombine.high %v6838_v53, %v1209_v41  ;;  %v5479_v4 = vcombine.high %v1556_v37, %v1563_v38  ;;  %v1668_v7 = vcombine.low %v1572_v42, %v1579_v43  ;;  %v5480_v10 = vcombine.high %v1572_v42, %v1579_v43 }
 0x22d   : > { %v1616_v59 = vcombine.low %v1592_v44, %v1608_v52  ;;  %v1617_v61 = vcombine.high %v1592_v44, %v1608_v52  ;;  %v1632_v62 = vcombine.low %v1599_v46, %v1615_v54  ;;  %v1633_v0 = vcombine.high %v1599_v46, %v1615_v54 }
 0x22e   : > { %v1215_v2 = vpop.permute.xlu0 %1214  ;;  %v6923_v8 = vrot.slane %v1652_v48, %v6901_v17  ;;  %v1228_v11 = vrot.slane %v1220_v55, %v6901_v17  ;;  %v1288_v12 = vcombine.low %v6845_v57, %v1211_v56  ;;  %v1235_v14 = vrot.slane %v1221_v58, %v6901_v17 }
 0x22f   : > { %v1289_v53 = vcombine.high %v6845_v57, %v1211_v56  ;;  %v1236_v15 = vcombine.low %v6896_v9, %v1215_v2  ;;  %v1237_v18 = vcombine.high %v6896_v9, %v1215_v2  ;;  %v1624_v19 = vrot.slane %v1616_v59, %v6904_v23 }
 0x230   : > { %v1217_v13 = vpop.permute.xlu1 %1216  ;;  %v1631_v20 = vrot.slane %v1617_v61, %v6904_v23  ;;  %v1640_v21 = vrot.slane %v1632_v62, %v6904_v23  ;;  %v1647_v22 = vrot.slane %v1633_v0, %v6904_v23  ;;  %v6940_v27 = vrot.slane %v5479_v4, %v6901_v17 }
 0x231   : > { %v1244_v24 = vrot.slane %v1236_v15, %v6901_v17  ;;  %v1251_v25 = vrot.slane %v1237_v18, %v6901_v17  ;;  %v1304_v26 = vcombine.low %v6898_v16, %v1217_v13  ;;  %v1305_v57 = vcombine.high %v6898_v16, %v1217_v13 }
 0x232   : > { %v6943_v9 = vrot.slane %v1668_v7, %v6901_v17  ;;  %v6946_v28 = vrot.slane %v5480_v10, %v6901_v17  ;;  %v1296_v29 = vrot.slane %v1288_v12, %v6901_v17  ;;  %v1720_v34 = vcombine.low %v1624_v19, %v1631_v20 }
 0x233   : > { %v1252_v30 = vcombine.low %v1228_v11, %v1244_v24  ;;  %v1253_v31 = vcombine.high %v1228_v11, %v1244_v24  ;;  %v1268_v32 = vcombine.low %v1235_v14, %v1251_v25  ;;  %v1269_v33 = vcombine.high %v1235_v14, %v1251_v25 }
 0x234   : > { %v1303_v35 = vrot.slane %v1289_v53, %v6901_v17  ;;  %v1312_v16 = vrot.slane %v1304_v26, %v6901_v17  ;;  %v1319_v36 = vrot.slane %v1305_v57, %v6901_v17  ;;  %v5481_v37 = vcombine.high %v1624_v19, %v1631_v20 }
 0x235   : > { %v1736_v38 = vcombine.low %v1640_v21, %v1647_v22  ;;  %v1260_v39 = vrot.slane %v1252_v30, %v6904_v23  ;;  %v1267_v40 = vrot.slane %v1253_v31, %v6904_v23  ;;  %v1276_v46 = vrot.slane %v1268_v32, %v6904_v23 }
 0x236   : > { %v1320_v41 = vcombine.low %v1296_v29, %v1312_v16  ;;  %v1321_v42 = vcombine.high %v1296_v29, %v1312_v16  ;;  %v1336_v43 = vcombine.low %v1303_v35, %v1319_v36  ;;  %v1337_v44 = vcombine.high %v1303_v35, %v1319_v36 }
 0x237   : > { %v1283_v48 = vrot.slane %v1269_v33, %v6904_v23  ;;  %v1356_v52 = vcombine.low %v1260_v39, %v1267_v40  ;;  %v5475_v54 = vcombine.high %v1260_v39, %v1267_v40  ;;  %v1727_v61 = vrot.slane %v1720_v34, %v6901_v17 }
 0x238   : > { %v1328_v55 = vrot.slane %v1320_v41, %v6904_v23  ;;  %v1335_v56 = vrot.slane %v1321_v42, %v6904_v23  ;;  %v1344_v58 = vrot.slane %v1336_v43, %v6904_v23  ;;  %v1351_v59 = vrot.slane %v1337_v44, %v6904_v23 }
 0x239   : > { %v1735_v62 = vrot.slane %v5481_v37, %v6901_v17  ;;  %v5482_v0 = vcombine.high %v1640_v21, %v1647_v22  ;;  %v1684_v2 = vcombine.low %v6923_v8, %v6940_v27  ;;  %v1363_v12 = vrot.slane %v1356_v52, %v6901_v17 }
 0x23a   : > { %v1424_v4 = vcombine.low %v1328_v55, %v1335_v56  ;;  %v5477_v7 = vcombine.high %v1328_v55, %v1335_v56  ;;  %v1440_v10 = vcombine.low %v1344_v58, %v1351_v59  ;;  %v5478_v11 = vcombine.high %v1344_v58, %v1351_v59 }
 0x23b   : > { %v1371_v13 = vrot.slane %v5475_v54, %v6901_v17  ;;  %v1372_v14 = vcombine.low %v1276_v46, %v1283_v48  ;;  %v5476_v53 = vcombine.high %v1276_v46, %v1283_v48  ;;  %v1743_v21 = vrot.slane %v1736_v38, %v6901_v17 }
 0x23c   : > { %v1431_v15 = vrot.slane %v1424_v4, %v6901_v17  ;;  %v1439_v18 = vrot.slane %v5477_v7, %v6901_v17  ;;  %v1447_v19 = vrot.slane %v1440_v10, %v6901_v17  ;;  %v1455_v20 = vrot.slane %v5478_v11, %v6901_v17 }
 0x23d   : > { %v1751_v22 = vrot.slane %v5482_v0, %v6901_v17  ;;  %v1700_v24 = vcombine.low %v6943_v9, %v6946_v28  ;;  %v1379_v25 = vrot.slane %v1372_v14, %v6901_v17  ;;  %v1387_v26 = vrot.slane %v5476_v53, %v6901_v17 }
 0x23e   : > { %v1388_v57 = vcombine.low %v1363_v12, %v1371_v13  ;;  %v1752_v29 = vcombine.low %v1727_v61, %v1735_v62  ;;  %v1456_v30 = vcombine.low %v1431_v15, %v1439_v18  ;;  %v1457_v31 = vcombine.high %v1431_v15, %v1439_v18 }
 0x23f   : > { %v1472_v32 = vcombine.low %v1447_v19, %v1455_v20  ;;  %v1692_v33 = vrot.slane %v1684_v2, %v6904_v23  ;;  %v1708_v34 = vrot.slane %v1700_v24, %v6904_v23  ;;  %v1768_v16 = vcombine.low %v1743_v21, %v1751_v22 }
 0x240   : > { %v1760_v35 = vrot.slane %v1752_v29, %v6904_v23  ;;  %v1685_v36 = vcombine.high %v6923_v8, %v6940_v27  ;;  %v1473_v37 = vcombine.high %v1447_v19, %v1455_v20  ;;  %v1701_v38 = vcombine.high %v6943_v9, %v6946_v28 }
 0x241   : > { %v1753_v39 = vcombine.high %v1727_v61, %v1735_v62  ;;  %v1769_v40 = vcombine.high %v1743_v21, %v1751_v22  ;;  %v1389_v41 = vcombine.high %v1363_v12, %v1371_v13  ;;  %v1404_v42 = vcombine.low %v1379_v25, %v1387_v26 }
 0x242   : > { %v1776_v43 = vrot.slane %v1768_v16, %v6904_v23  ;;  %v1699_v44 = vrot.slane %v1685_v36, %v6904_v23  ;;  %v1405_v46 = vcombine.high %v1379_v25, %v1387_v26  ;;  %v1715_v48 = vrot.slane %v1701_v38, %v6904_v23  ;;  %v7012_v16 = vpop.f32.mrf.mxu0 }
 0x243   : > { %v1767_v52 = vrot.slane %v1753_v39, %v6904_v23  ;;  %v1783_v54 = vrot.slane %v1769_v40, %v6904_v23  ;;  %v1464_v8 = vrot.slane %v1456_v30, %v6904_v23  ;;  %v1480_v27 = vrot.slane %v1472_v32, %v6904_v23  ;;  %v1807_v32 = vpop.permute.xlu0 %1806 }
 0x244   : > { %v1716_v9 = vcombine.low %v1692_v33, %v1708_v34  ;;  %v1784_v28 = vcombine.low %v1760_v35, %v1776_v43  ;;  %v1471_v55 = vrot.slane %v1457_v31, %v6904_v23  ;;  %v1487_v56 = vrot.slane %v1473_v37, %v6904_v23  ;;  %v1795_v31 = vpop.permute.xlu1 %1794 }
 0x245   : > { %v1718_v58 = vcombine.low %v1699_v44, %v1715_v48  ;;  %v1786_v59 = vcombine.low %v1767_v52, %v1783_v54  ;;  %v1396_v61 = vrot.slane %v1388_v57, %v6904_v23  ;;  %v1412_v62 = vrot.slane %v1404_v42, %v6904_v23  ;;  %v1071_v42 = vpop.f32.mrf.mxu0 }
 0x246   : > { %v1788_v0 = vpack.c.bf16 %v1784_v28, %v1716_v9  ;;  %v1403_v2 = vrot.slane %v1389_v41, %v6904_v23  ;;  %v1419_v4 = vrot.slane %v1405_v46, %v6904_v23  ;;  %v1488_v10 = vcombine.low %v1464_v8, %v1480_v27 }
 0x247   : > { %v1790_v7 = vpack.c.bf16 %v1786_v59, %v1718_v58  ;;  %v1785_v12 = vcombine.high %v1760_v35, %v1776_v43  ;;  %v1490_v14 = vcombine.low %v1471_v55, %v1487_v56  ;;  %v1420_v53 = vcombine.low %v1396_v61, %v1412_v62 }
 0x248   : > { %v2093_v11 = vsel %vm2088_vm1, %v1788_v0, 0  ;;  %v1717_v15 = vcombine.high %v1692_v33, %v1708_v34  ;;  %v1422_v18 = vcombine.low %v1403_v2, %v1419_v4  ;;  %v1787_v24 = vcombine.high %v1767_v52, %v1783_v54  ;;  %v1801_v37 = vpop.permute.xlu1 %1800 }
 0x249   : > { %5680 = vmatpush3.bf16.xpose.msra.mxu0 %v2093_v11  ;;  %v2187_v13 = vsel %vm2088_vm1, %v1790_v7, 0  ;;  %v1492_v19 = vpack.c.bf16 %v1488_v10, %v1420_v53  ;;  %v1489_v25 = vcombine.high %v1464_v8, %v1480_v27  ;;  %v1719_v26 = vcombine.high %v1699_v44, %v1715_v48 }
 0x24a   : > { %5692 = vmatpush3.bf16.xpose.msra.mxu1 %v2187_v13  ;;  %5685 = vmatprep.subr.bf16.mxu0 %v6435_v60  ;;  %v1789_v20 = vpack.c.bf16 %v1785_v12, %v1717_v15  ;;  %v1494_v21 = vpack.c.bf16 %v1490_v14, %v1422_v18  ;;  %v1421_v57 = vcombine.high %v1396_v61, %v1412_v62 }
 0x24b   : > { %5703 = vmatprep.subr.bf16.mxu1 %v6435_v60  ;;  %v1791_v29 = vpack.c.bf16 %v1787_v24, %v1719_v26  ;;  %v1828_v34 = vcombine.low %v1795_v31, %v1807_v32  ;;  %v1829_v35 = vcombine.high %v1795_v31, %v1807_v32  ;;  %v1491_v36 = vcombine.high %v1471_v55, %v1487_v56  ;;  %v1797_v56 = vpop.permute.xlu0 %1796 }
 0x24c   : > { %v2140_v22 = vsel %vm2088_vm1, %v1789_v20, 0  ;;  %v1493_v30 = vpack.c.bf16 %v1489_v25, %v1421_v57  ;;  %v1423_v38 = vcombine.high %v1403_v2, %v1419_v4  ;;  %v1812_v39 = vcombine.low %v6878_v1, %v1801_v37  ;;  %v1803_v54 = vpop.permute.xlu1 %1802 }
 0x24d   : > { %v2234_v33 = vsel %vm2088_vm1, %v1791_v29, 0  ;;  %v1813_v40 = vcombine.high %v6878_v1, %v1801_v37  ;;  %v1836_v41 = vrot.slane %v1828_v34, %v6901_v17  ;;  %v1843_v43 = vrot.slane %v1829_v35, %v6901_v17 }
 0x24e   : > { %v7020_v44 = vadd.f32 %v1071_v42, %v6835_v51  ;;  %v1495_v46 = vpack.c.bf16 %v1491_v36, %v1423_v38  ;;  %v1820_v48 = vrot.slane %v1812_v39, %v6901_v17  ;;  %v1880_v1 = vcombine.low %v6886_v5, %v1803_v54 }
 0x24f   : > { %v1827_v52 = vrot.slane %v1813_v40, %v6901_v17  ;;  %v1881_v8 = vcombine.high %v6886_v5, %v1803_v54 }
 0x250   : > { %5682 = vmatmul.mubr.msk.bf16.vlgmr.msra.gmra.mxu0 %vm2088_vm1, %v1492_v19  ;;  %3148 = vrot.lane.b32.xlu1 %v7020_v44, %s6432_s5  ;;  %v1844_v27 = vcombine.low %v1820_v48, %v1836_v41  ;;  %v1845_v9 = vcombine.high %v1820_v48, %v1836_v41  ;;  %v1888_v61 = vrot.slane %v1880_v1, %v6901_v17  ;;  %v1809_v2 = vpop.permute.xlu1 %1808 }
 0x251   : > { %5694 = vmatmul.mubr.msk.bf16.vlgmr.msra.gmra.mxu1 %vm2088_vm1, %v1494_v21  ;;  %5686 = vmatpush3.bf16.xpose.msra.mxu0 %v2140_v22  ;;  %v1860_v28 = vcombine.low %v1827_v52, %v1843_v43  ;;  %v1861_v55 = vcombine.high %v1827_v52, %v1843_v43  ;;  %v1895_v62 = vrot.slane %v1881_v8, %v6901_v17 }
 0x252   : > { %5687 = vmatprep.mubr.msk.bf16.mxu0 %vm6436_vm0, %v6435_v60  ;;  %5697 = vmatprep.subr.bf16.mxu0 %v6435_v60  ;;  %v1852_v58 = vrot.slane %v1844_v27, %v6904_v23  ;;  %v1859_v59 = vrot.slane %v1845_v9, %v6904_v23  ;;  %v1896_v10 = vcombine.low %v1797_v56, %v1809_v2 }
 0x253   : > { %5705 = vmatprep.mubr.msk.bf16.mxu1 %vm6436_vm0, %v6435_v60  ;;  %v1868_v0 = vrot.slane %v1860_v28, %v6904_v23  ;;  %v1875_v5 = vrot.slane %v1861_v55, %v6904_v23  ;;  %v1897_v11 = vcombine.high %v1797_v56, %v1809_v2 }
 0x254   : > { %v1948_v4 = vcombine.low %v1852_v58, %v1859_v59  ;;  %v5483_v7 = vcombine.high %v1852_v58, %v1859_v59  ;;  %v1904_v15 = vrot.slane %v1896_v10, %v6901_v17 }
 0x255   : > { %v1964_v12 = vcombine.low %v1868_v0, %v1875_v5  ;;  %v5484_v13 = vcombine.high %v1868_v0, %v1875_v5  ;;  %v1911_v18 = vrot.slane %v1897_v11, %v6901_v17 }
 0x256   : > { %v1955_v14 = vrot.slane %v1948_v4, %v6901_v17  ;;  %v1963_v53 = vrot.slane %v5483_v7, %v6901_v17  ;;  %v1912_v21 = vcombine.low %v1888_v61, %v1904_v15  ;;  %v1913_v22 = vcombine.high %v1888_v61, %v1904_v15 }
 0x257   : > { %v1971_v19 = vrot.slane %v1964_v12, %v6901_v17  ;;  %v1979_v20 = vrot.slane %v5484_v13, %v6901_v17  ;;  %v1928_v24 = vcombine.low %v1895_v62, %v1911_v18  ;;  %v1929_v25 = vcombine.high %v1895_v62, %v1911_v18  ;;  %v1073_v13 = vpop.f32.mrf.mxu0 }
 0x258   : > { %5688 = vmatmul.mubr.msk.bf16.vlgmr.msra.gmra.mxu0 %vm2088_vm1, %v1493_v30  ;;  %v1980_v26 = vcombine.low %v1955_v14, %v1963_v53  ;;  %v1920_v29 = vrot.slane %v1912_v21, %v6904_v23  ;;  %v1927_v30 = vrot.slane %v1913_v22, %v6904_v23  ;;  %v1981_v9 = vcombine.high %v1955_v14, %v1963_v53 }
 0x259   : > { %5698 = vmatpush3.bf16.xpose.msra.mxu0 %v2234_v33  ;;  %5699 = vmatprep.mubr.msk.bf16.mxu0 %vm6436_vm0, %v6435_v60  ;;  %v1996_v57 = vcombine.low %v1971_v19, %v1979_v20  ;;  %v1936_v31 = vrot.slane %v1928_v24, %v6904_v23  ;;  %v1943_v32 = vrot.slane %v1929_v25, %v6904_v23  ;;  %v1075_v14 = vpop.f32.mrf.mxu0 }
 0x25a   : > { %5709 = vmatprep.subr.bf16.mxu0 %v6435_v60  ;;  %v2016_v33 = vcombine.low %v1920_v29, %v1927_v30  ;;  %v5485_v34 = vcombine.high %v1920_v29, %v1927_v30  ;;  %v1988_v37 = vrot.slane %v1980_v26, %v6904_v23  ;;  %v1997_v28 = vcombine.high %v1971_v19, %v1979_v20 }
 0x25b   : > { %v2032_v35 = vcombine.low %v1936_v31, %v1943_v32  ;;  %v5486_v36 = vcombine.high %v1936_v31, %v1943_v32  ;;  %v2004_v38 = vrot.slane %v1996_v57, %v6904_v23  ;;  %v1995_v61 = vrot.slane %v1981_v9, %v6904_v23 }
 0x25c   : > { %v2023_v39 = vrot.slane %v2016_v33, %v6901_v17  ;;  %v2031_v40 = vrot.slane %v5485_v34, %v6901_v17  ;;  %v2011_v62 = vrot.slane %v1997_v28, %v6904_v23 }
 0x25d   : > { %v2039_v41 = vrot.slane %v2032_v35, %v6901_v17  ;;  %v2047_v42 = vrot.slane %v5486_v36, %v6901_v17  ;;  %v2012_v48 = vcombine.low %v1988_v37, %v2004_v38  ;;  %v2013_v1 = vcombine.high %v1988_v37, %v2004_v38 }
 0x25e   : > { %v2048_v43 = vcombine.low %v2023_v39, %v2031_v40  ;;  %v2049_v55 = vcombine.high %v2023_v39, %v2031_v40  ;;  %v2014_v2 = vcombine.low %v1995_v61, %v2011_v62  ;;  %v2015_v4 = vcombine.high %v1995_v61, %v2011_v62 }
 0x25f   : > { %v2065_v56 = vcombine.high %v2039_v41, %v2047_v42  ;;  %v7078_v40 = vadd.f32 %v1075_v14, %v6835_v51  ;;  %v7091_v51 = vadd.f32 %v1073_v13, %v6831_v50 }
 0x260   : > { %5700 = vmatmul.mubr.msk.bf16.vlgmr.msra.gmra.mxu0 %vm2088_vm1, %v1495_v46  ;;  %v2064_v46 = vcombine.low %v2039_v41, %v2047_v42  ;;  %v2056_v52 = vrot.slane %v2048_v43, %v6904_v23  ;;  %v2063_v0 = vrot.slane %v2049_v55, %v6904_v23  ;;  %v7101_v43 = vadd.f32 %v7012_v16, %v6831_v50 }
 0x261   : > { %5711 = vmatprep.mubr.msk.bf16.mxu0 %vm6436_vm0, %v6435_v60  ;;  %v2079_v5 = vrot.slane %v2065_v56, %v6904_v23 }
 0x262   : > { %v2072_v54 = vrot.slane %v2064_v46, %v6904_v23 }
 0x263   : > { %v2082_v7 = vcombine.low %v2063_v0, %v2079_v5  ;;  %v2083_v10 = vcombine.high %v2063_v0, %v2079_v5 }
 0x264   : > { %v2080_v8 = vcombine.low %v2056_v52, %v2072_v54  ;;  %v2081_v27 = vcombine.high %v2056_v52, %v2072_v54 }
 0x265   : > { %v7061_v11 = vpack.c.bf16 %v2082_v7, %v2014_v2  ;;  %v7063_v12 = vpack.c.bf16 %v2083_v10, %v2015_v4 }
 0x266   : > { %v2084_v58 = vpack.c.bf16 %v2080_v8, %v2012_v48  ;;  %v2085_v59 = vpack.c.bf16 %v2081_v27, %v2013_v1 }
 0x268   : > { %5704 = vmatpush3.bf16.msra.mxu1 %v2084_v58  ;;  %5710 = vmatpush3.bf16.msra.mxu0 %v2085_v59 }
 0x269   : > { %5715 = vmatprep.subr.bf16.mxu1 %v6435_v60  ;;  %5721 = vmatprep.subr.bf16.mxu0 %v6435_v60 }
 0x2c2   : > { %v7107_v46 = vpop.permute.xlu1 %3148 }
 0x310   : > { %v2129_v53 = vpop.f32.mrf.mxu0 }
 0x311   : > { %v2223_v15 = vpop.f32.mrf.mxu1  ;;  %v2278_v18 = vsel %vm2277_vm2, %v2129_v53, -inf }
 0x312   : > { %v2290_v19 = vsel %vm2277_vm2, %v2223_v15, -inf  ;;  %2279 = vmax.xlane.f32.xlu0 %v2278_v18  ;;  %v5683_v20 = vpop.f32.mrf.mxu0 }
 0x313   : > { %2291 = vmax.xlane.f32.xlu1 %v2290_v19  ;;  %v5695_v21 = vpop.f32.mrf.mxu1 }
 0x314   : > { %v2132_v22 = vpop.f32.mrf.mxu0 }
 0x315   : > { %v2226_v24 = vpop.f32.mrf.mxu1  ;;  %v2281_v25 = vsel %vm2277_vm2, %v2132_v22, -inf }
 0x316   : > { %v2293_v26 = vsel %vm2277_vm2, %v2226_v24, -inf  ;;  %v5684_v57 = vpop.f32.mrf.mxu0 }
 0x317   : > { %v5696_v29 = vpop.f32.mrf.mxu1  ;;  %2294 = vmax.xlane.f32.xlu0 %v2293_v26  ;;  %2282 = vmax.xlane.f32.xlu1 %v2281_v25 }
 0x318   : > { %v2176_v30 = vpop.f32.mrf.mxu0 }
 0x319   : > { %v2284_v31 = vsel %vm2277_vm2, %v2176_v30, -inf }
 0x31a   : > { %v5689_v32 = vpop.f32.mrf.mxu0 }
 0x31b   : > { %2285 = vmax.xlane.f32.xlu0 %v2284_v31 }
 0x31c   : > { %v2179_v33 = vpop.f32.mrf.mxu0 }
 0x31d   : > { %v2287_v34 = vsel %vm2277_vm2, %v2179_v33, -inf }
 0x31e   : > { %v5690_v35 = vpop.f32.mrf.mxu0 }
 0x31f   : > { %2288 = vmax.xlane.f32.xlu0 %v2287_v34 }
 0x320   : > { %v7071_v36 = vpop.f32.mrf.mxu0 }
 0x321   : > { %v2296_v41 = vsel %vm2277_vm2, %v7071_v36, -inf }
 0x322   : > { %v5701_v37 = vpop.f32.mrf.mxu0 }
 0x324   : > { %v7073_v38 = vpop.f32.mrf.mxu0 }
 0x325   : > { %v2299_v42 = vsel %vm2277_vm2, %v7073_v38, -inf }
 0x326   : > { %v5702_v39 = vpop.f32.mrf.mxu0 }
 0x328   : > { %3154 = vrot.lane.b32.xlu1 %v7020_v44, %s6433_s10 }
 0x335   : > { %3150 = vrot.lane.b32.xlu0 %v7078_v40, %s6432_s5 }
 0x34c   : > { %2297 = vmax.xlane.f32.xlu1 %v2296_v41 }
 0x354   : > { %2300 = vmax.xlane.f32.xlu0 %v2299_v42 }
 0x35d   : > { %3156 = vrot.lane.b32.xlu1 %v7078_v40, %s6433_s10 }
 0x361   : > { %3162 = vrot.lane.b32.xlu1 %v7078_v40, %s6434_s30 }
 0x365   : > { %2854 = vrot.lane.b32.xlu1 %v7091_v51, %s6432_s5 }
 0x369   : > { %2860 = vrot.lane.b32.xlu1 %v7091_v51, %s6433_s10 }
 0x36a   : > { %3160 = vrot.lane.b32.xlu0 %v7020_v44, %s6434_s30 }
 0x36e   : > { %2852 = vrot.lane.b32.xlu0 %v7101_v43, %s6432_s5 }
 0x372   : > { %2858 = vrot.lane.b32.xlu0 %v7101_v43, %s6433_s10 }
 0x39b   : > { %v2280_v48 = vpop.xlane.xlu0 %2279 }
 0x39c   : > { %v2292_v52 = vpop.xlane.xlu1 %2291  ;;  %v2302_v54 = vsub.f32 %v2129_v53, %v2280_v48 }
 0x39d   : > { %v2306_v1 = vsub.f32 %v2223_v15, %v2292_v52 }
 0x39e   : > { %v2310_v8 = vmul.f32 1.442695, %v2302_v54 }
 0x39f   : > { %v2318_v27 = vmul.f32 1.442695, %v2306_v1 }
 0x3a0   : > { %6027 = vpow2.f32 %v2310_v8  ;;  %v2283_v9 = vpop.xlane.xlu1 %2282  ;;  %v2295_v28 = vpop.xlane.xlu0 %2294 }
 0x3a1   : > { %6029 = vpow2.f32 %v2318_v27  ;;  %v2303_v50 = vsub.f32 %v2132_v22, %v2283_v9  ;;  %v2307_v16 = vsub.f32 %v2226_v24, %v2295_v28 }
 0x3a3   : > { %v2312_v55 = vmul.f32 1.442695, %v2303_v50  ;;  %v2320_v56 = vmul.f32 1.442695, %v2307_v16 }
 0x3a4   : > { %v2286_v58 = vpop.xlane.xlu0 %2285  ;;  %v3155_v22 = vpop.permute.xlu1 %3154 }
 0x3a5   : > { %6031 = vpow2.f32 %v2312_v55  ;;  %v2304_v59 = vsub.f32 %v2176_v30, %v2286_v58  ;;  %v3166_v52 = vcombine.low %v7020_v44, %v3155_v22  ;;  %v3167_v54 = vcombine.high %v7020_v44, %v3155_v22 }
 0x3a6   : > { %6033 = vpow2.f32 %v2320_v56 }
 0x3a7   : > { %v2314_v61 = vmul.f32 1.442695, %v2304_v59  ;;  %v3174_v44 = vrot.slane %v3166_v52, %v6901_v17  ;;  %v3181_v58 = vrot.slane %v3167_v54, %v6901_v17 }
 0x3a8   : > { %v2289_v62 = vpop.xlane.xlu0 %2288 }
 0x3a9   : > { %6035 = vpow2.f32 %v2314_v61  ;;  %v2305_v0 = vsub.f32 %v2179_v33, %v2289_v62 }
 0x3ab   : > { %v2316_v5 = vmul.f32 1.442695, %v2305_v0 }
 0x3ac   : > { %v3151_v57 = vpop.permute.xlu0 %3150 }
 0x3ad   : > { %v7109_v2 = vpop.eup %6027  ;;  %6037 = vpow2.f32 %v2316_v5 }
 0x3ae   : > { %v7111_v4 = vpop.eup %6029  ;;  %v2326_v7 = vsel %vm2277_vm2, %v7109_v2, 0.0 }
 0x3af   : > { %v2338_v10 = vsel %vm2277_vm2, %v7111_v4, 0.0  ;;  %2327 = vadd.xlane.f32.xlu1 %v2326_v7 }
 0x3b0   : > { %2339 = vadd.xlane.f32.xlu0 %v2338_v10 }
 0x3b2   : > { %v7117_v13 = vpop.eup %6031 }
 0x3b3   : > { %v7119_v14 = vpop.eup %6033  ;;  %v2329_v53 = vsel %vm2277_vm2, %v7117_v13, 0.0 }
 0x3b4   : > { %2330 = vadd.xlane.f32.xlu0 %v2329_v53  ;;  %v2341_v15 = vsel %vm2277_vm2, %v7119_v14, 0.0 }
 0x3b5   : > { %2342 = vadd.xlane.f32.xlu1 %v2341_v15 }
 0x3b6   : > { %v7125_v18 = vpop.eup %6035 }
 0x3b7   : > { %v2332_v19 = vsel %vm2277_vm2, %v7125_v18, 0.0 }
 0x3b9   : > { %2333 = vadd.xlane.f32.xlu1 %v2332_v19 }
 0x3ba   : > { %v7129_v20 = vpop.eup %6037 }
 0x3bb   : > { %v2335_v21 = vsel %vm2277_vm2, %v7129_v20, 0.0 }
 0x3bc   : > { %2336 = vadd.xlane.f32.xlu0 %v2335_v21 }
 0x3ca   : > { %2866 = vrot.lane.b32.xlu1 %v7091_v51, %s6434_s30 }
 0x3d5   : > { %v2298_v24 = vpop.xlane.xlu1 %2297 }
 0x3d6   : > { %v2308_v25 = vsub.f32 %v7071_v36, %v2298_v24 }
 0x3d8   : > { %v2322_v26 = vmul.f32 1.442695, %v2308_v25 }
 0x3d9   : > { %v3157_v29 = vpop.permute.xlu1 %3156 }
 0x3da   : > { %6039 = vpow2.f32 %v2322_v26  ;;  %v3234_v30 = vcombine.low %v7078_v40, %v3157_v29  ;;  %v3235_v31 = vcombine.high %v7078_v40, %v3157_v29 }
 0x3dc   : > { %v3242_v39 = vrot.slane %v3234_v30, %v6901_v17  ;;  %v3249_v41 = vrot.slane %v3235_v31, %v6901_v17 }
 0x3dd   : > { %v3163_v32 = vpop.permute.xlu1 %3162  ;;  %v2301_v33 = vpop.xlane.xlu0 %2300 }
 0x3de   : > { %v3250_v34 = vcombine.low %v3151_v57, %v3163_v32  ;;  %v3251_v35 = vcombine.high %v3151_v57, %v3163_v32  ;;  %v2309_v37 = vsub.f32 %v7073_v38, %v2301_v33 }
 0x3e0   : > { %v3258_v36 = vrot.slane %v3250_v34, %v6901_v17  ;;  %v3265_v42 = vrot.slane %v3251_v35, %v6901_v17  ;;  %v2324_v48 = vmul.f32 1.442695, %v2309_v37 }
 0x3e1   : > { %v3161_v40 = vpop.permute.xlu0 %3160 }
 0x3e2   : > { %v3266_v1 = vcombine.low %v3242_v39, %v3258_v36  ;;  %v3267_v8 = vcombine.high %v3242_v39, %v3258_v36  ;;  %v3282_v27 = vcombine.low %v3249_v41, %v3265_v42  ;;  %v3283_v9 = vcombine.high %v3249_v41, %v3265_v42 }
 0x3e3   : > { %6041 = vpow2.f32 %v2324_v48  ;;  %v3182_v38 = vcombine.low %v7107_v46, %v3161_v40  ;;  %v3183_v28 = vcombine.high %v7107_v46, %v3161_v40 }
 0x3e4   : > { %v3274_v50 = vrot.slane %v3266_v1, %v6904_v23  ;;  %v3281_v16 = vrot.slane %v3267_v8, %v6904_v23  ;;  %v3290_v55 = vrot.slane %v3282_v27, %v6904_v23  ;;  %v3297_v56 = vrot.slane %v3283_v9, %v6904_v23 }
 0x3e5   : > { %v3190_v59 = vrot.slane %v3182_v38, %v6901_v17  ;;  %v3197_v61 = vrot.slane %v3183_v28, %v6901_v17 }
 0x3e6   : > { %v3370_v62 = vcombine.low %v3274_v50, %v3281_v16  ;;  %v5505_v0 = vcombine.high %v3274_v50, %v3281_v16  ;;  %v3386_v5 = vcombine.low %v3290_v55, %v3297_v56  ;;  %v5506_v46 = vcombine.high %v3290_v55, %v3297_v56 }
 0x3e7   : > { %v7155_v7 = vpop.eup %6039  ;;  %v3198_v10 = vcombine.low %v3174_v44, %v3190_v59  ;;  %v3199_v53 = vcombine.high %v3174_v44, %v3190_v59  ;;  %v3214_v15 = vcombine.low %v3181_v58, %v3197_v61  ;;  %v3215_v19 = vcombine.high %v3181_v58, %v3197_v61 }
 0x3e8   : > { %v3377_v21 = vrot.slane %v3370_v62, %v6901_v17  ;;  %v3385_v57 = vrot.slane %v5505_v0, %v6901_v17  ;;  %v3393_v29 = vrot.slane %v3386_v5, %v6901_v17  ;;  %v3401_v30 = vrot.slane %v5506_v46, %v6901_v17 }
 0x3e9   : > { %v3206_v22 = vrot.slane %v3198_v10, %v6904_v23  ;;  %v3213_v24 = vrot.slane %v3199_v53, %v6904_v23  ;;  %v3222_v25 = vrot.slane %v3214_v15, %v6904_v23  ;;  %v3229_v26 = vrot.slane %v3215_v19, %v6904_v23 }
 0x3ea   : > { %v2344_v31 = vsel %vm2277_vm2, %v7155_v7, 0.0  ;;  %v3402_v42 = vcombine.low %v3377_v21, %v3385_v57  ;;  %v3418_v48 = vcombine.low %v3393_v29, %v3401_v30  ;;  %v3403_v52 = vcombine.high %v3377_v21, %v3385_v57 }
 0x3eb   : > { %v3302_v32 = vcombine.low %v3206_v22, %v3213_v24  ;;  %v5503_v33 = vcombine.high %v3206_v22, %v3213_v24  ;;  %v3318_v34 = vcombine.low %v3222_v25, %v3229_v26  ;;  %v5504_v35 = vcombine.high %v3222_v25, %v3229_v26  ;;  %2345 = vadd.xlane.f32.xlu0 %v2344_v31  ;;  %v2855_v25 = vpop.permute.xlu1 %2854  ;;  %v7191_v26 = vpop.permute.xlu0 %2852 }
 0x3ec   : > { %v3410_v9 = vrot.slane %v3402_v42, %v6904_v23  ;;  %v3426_v38 = vrot.slane %v3418_v48, %v6904_v23  ;;  %v3417_v28 = vrot.slane %v3403_v52, %v6904_v23  ;;  %v3419_v50 = vcombine.high %v3393_v29, %v3401_v30 }
 0x3ed   : > { %v3309_v37 = vrot.slane %v3302_v32, %v6901_v17  ;;  %v3317_v39 = vrot.slane %v5503_v33, %v6901_v17  ;;  %v3325_v41 = vrot.slane %v3318_v34, %v6901_v17  ;;  %v3333_v36 = vrot.slane %v5504_v35, %v6901_v17 }
 0x3ee   : > { %v3433_v59 = vrot.slane %v3419_v50, %v6904_v23  ;;  %v3434_v62 = vcombine.low %v3410_v9, %v3426_v38  ;;  %v3435_v5 = vcombine.high %v3410_v9, %v3426_v38 }
 0x3ef   : > { %v3334_v54 = vcombine.low %v3309_v37, %v3317_v39  ;;  %v3350_v40 = vcombine.low %v3325_v41, %v3333_v36  ;;  %v3335_v1 = vcombine.high %v3309_v37, %v3317_v39  ;;  %v3351_v8 = vcombine.high %v3325_v41, %v3333_v36  ;;  %v2861_v57 = vpop.permute.xlu1 %2860  ;;  %v7193_v29 = vpop.permute.xlu0 %2858 }
 0x3f0   : > { %v7171_v27 = vpop.eup %6041  ;;  %v3436_v10 = vcombine.low %v3417_v28, %v3433_v59  ;;  %v3437_v15 = vcombine.high %v3417_v28, %v3433_v59  ;;  %v2939_v28 = vcombine.high %v7091_v51, %v2861_v57 }
 0x3f1   : > { %v2347_v16 = vsel %vm2277_vm2, %v7171_v27, 0.0  ;;  %v3342_v55 = vrot.slane %v3334_v54, %v6904_v23  ;;  %v3358_v56 = vrot.slane %v3350_v40, %v6904_v23  ;;  %v3349_v44 = vrot.slane %v3335_v1, %v6904_v23 }
 0x3f2   : > { %2348 = vadd.xlane.f32.xlu0 %v2347_v16  ;;  %v3365_v58 = vrot.slane %v3351_v8, %v6904_v23 }
 0x3f3   : > { %v3366_v61 = vcombine.low %v3342_v55, %v3358_v56  ;;  %v3367_v0 = vcombine.high %v3342_v55, %v3358_v56  ;;  %v2953_v55 = vrot.slane %v2939_v28, %v6901_v17 }
 0x3f4   : > { %v3368_v46 = vcombine.low %v3349_v44, %v3365_v58  ;;  %v3369_v53 = vcombine.high %v3349_v44, %v3365_v58 }
 0x3f5   : > { %v3438_v19 = vpack.c.bf16 %v3434_v62, %v3366_v61  ;;  %v7183_v21 = vpack.c.bf16 %v3435_v5, %v3367_v0 }
 0x3f6   : > { %v7185_v22 = vpack.c.bf16 %v3436_v10, %v3368_v46  ;;  %v7187_v24 = vpack.c.bf16 %v3437_v15, %v3369_v53  ;;  %v2870_v10 = vcombine.low %v7101_v43, %v7193_v29  ;;  %v2871_v53 = vcombine.high %v7101_v43, %v7193_v29 }
 0x408   : > { %2864 = vrot.lane.b32.xlu0 %v7101_v43, %s6434_s30 }
 0x438   : > { %v2328_v30 = vpop.xlane.xlu1 %2327 }
 0x439   : > { %v2340_v31 = vpop.xlane.xlu0 %2339  ;;  %6043 = vrcp.f32 %v2328_v30 }
 0x43d   : > { %v2331_v32 = vpop.xlane.xlu0 %2330 }
 0x43e   : > { %v2343_v33 = vpop.xlane.xlu1 %2342  ;;  %6045 = vrcp.f32 %v2331_v32 }
 0x43f   : > { %6047 = vrcp.f32 %v2343_v33  ;;  %v2878_v33 = vrot.slane %v2870_v10, %v6901_v17 }
 0x440   : > { %6049 = vrcp.f32 %v2340_v31 }
 0x442   : > { %v2334_v34 = vpop.xlane.xlu1 %2333 }
 0x443   : > { %6051 = vrcp.f32 %v2334_v34  ;;  %v2885_v34 = vrot.slane %v2871_v53, %v6901_v17 }
 0x445   : > { %v2337_v35 = vpop.xlane.xlu0 %2336 }
 0x446   : > { %6053 = vrcp.f32 %v2337_v35  ;;  %v6044_v37 = vpop.eup %6043 }
 0x447   : > { %v2358_v41 = vmul.f32 %v6044_v37, %v7109_v2 }
 0x44b   : > { %v6046_v39 = vpop.eup %6045 }
 0x44c   : > { %v2359_v36 = vmul.f32 %v6046_v39, %v7117_v13  ;;  %v6048_v48 = vpop.eup %6047 }
 0x44d   : > { %v6050_v52 = vpop.eup %6049  ;;  %v2363_v40 = vmul.f32 %v6048_v48, %v7119_v14 }
 0x44e   : > { %v2366_v42 = vpack.c.bf16 %v2359_v36, %v2358_v41  ;;  %v2362_v8 = vmul.f32 %v6050_v52, %v7111_v4  ;;  %v2867_v4 = vpop.permute.xlu1 %2866 }
 0x44f   : > { %v2954_v14 = vcombine.low %v2855_v25, %v2867_v4 }
 0x450   : > { %5706 = vmatmul.mubr.msk.bf16.vlgmr.msra.gmra.mxu1 %vm2277_vm2, %v2366_v42  ;;  %v6052_v54 = vpop.eup %6051  ;;  %v2368_v38 = vpack.c.bf16 %v2363_v40, %v2362_v8 }
 0x451   : > { %5716 = vmatpush3.bf16.msra.mxu1 %v7061_v11  ;;  %5717 = vmatprep.mubr.msk.bf16.mxu1 %vm6436_vm0, %v6435_v60  ;;  %v2360_v2 = vmul.f32 %v6052_v54, %v7125_v18  ;;  %v3742_v11 = vsel %vm2088_vm1, %v3438_v19, 0  ;;  %v2955_v18 = vcombine.high %v2855_v25, %v2867_v4 }
 0x452   : > { %5727 = vmatprep.subr.bf16.mxu1 %v6435_v60 }
 0x453   : > { %v6054_v1 = vpop.eup %6053  ;;  %v2969_v50 = vrot.slane %v2955_v18, %v6901_v17 }
 0x454   : > { %v2361_v13 = vmul.f32 %v6054_v1, %v7129_v20  ;;  %v2938_v20 = vcombine.low %v7091_v51, %v2861_v57 }
 0x455   : > { %v2986_v58 = vcombine.low %v2953_v55, %v2969_v50  ;;  %v2987_v59 = vcombine.high %v2953_v55, %v2969_v50 }
 0x456   : > { %v2367_v9 = vpack.c.bf16 %v2361_v13, %v2360_v2  ;;  %v2946_v16 = vrot.slane %v2938_v20, %v6901_v17 }
 0x457   : > { %v2994_v5 = vrot.slane %v2986_v58, %v6904_v23  ;;  %v3001_v51 = vrot.slane %v2987_v59, %v6904_v23 }
 0x458   : > { %5712 = vmatmul.mubr.msk.bf16.vlgmr.msra.gmra.mxu0 %vm2277_vm2, %v2367_v9  ;;  %5718 = vmatmul.mubr.msk.bf16.vlgmr.msra.gmra.mxu1 %vm2277_vm2, %v2368_v38 }
 0x459   : > { %5722 = vmatpush3.bf16.msra.mxu0 %v7063_v12  ;;  %5728 = vmatpush3.bf16.xpose.msra.mxu1 %v3742_v11  ;;  %v2962_v12 = vrot.slane %v2954_v14, %v6901_v17  ;;  %v3090_v25 = vcombine.low %v2994_v5, %v3001_v51  ;;  %v5502_v57 = vcombine.high %v2994_v5, %v3001_v51 }
 0x45a   : > { %5723 = vmatprep.mubr.msk.bf16.mxu0 %vm6436_vm0, %v6435_v60  ;;  %5733 = vmatprep.subr.bf16.mxu0 %v6435_v60 }
 0x45b   : > { %5729 = vmatprep.mubr.msk.bf16.mxu1 %vm6436_vm0, %v6435_v60  ;;  %5739 = vmatprep.subr.bf16.mxu1 %v6435_v60  ;;  %v2970_v56 = vcombine.low %v2946_v16, %v2962_v12  ;;  %v2971_v44 = vcombine.high %v2946_v16, %v2962_v12  ;;  %v3097_v29 = vrot.slane %v3090_v25, %v6901_v17 }
 0x45c   : > { %v3105_v41 = vrot.slane %v5502_v57, %v6901_v17 }
 0x45d   : > { %v2978_v62 = vrot.slane %v2970_v56, %v6904_v23  ;;  %v2985_v0 = vrot.slane %v2971_v44, %v6904_v23 }
 0x45e   : > { %v3122_v13 = vcombine.low %v3097_v29, %v3105_v41 }
 0x45f   : > { %v3074_v15 = vcombine.low %v2978_v62, %v2985_v0  ;;  %v5501_v19 = vcombine.high %v2978_v62, %v2985_v0 }
 0x460   : > { %v3130_v56 = vrot.slane %v3122_v13, %v6904_v23 }
 0x461   : > { %v3081_v39 = vrot.slane %v3074_v15, %v6901_v17  ;;  %v3089_v43 = vrot.slane %v5501_v19, %v6901_v17 }
 0x463   : > { %v3106_v2 = vcombine.low %v3081_v39, %v3089_v43  ;;  %v3107_v51 = vcombine.high %v3081_v39, %v3089_v43 }
 0x465   : > { %v3114_v55 = vrot.slane %v3106_v2, %v6904_v23 }
 0x467   : > { %v3138_v10 = vcombine.low %v3114_v55, %v3130_v56  ;;  %v3139_v57 = vcombine.high %v3114_v55, %v3130_v56 }
 0x474   : > { %v2346_v61 = vpop.xlane.xlu0 %2345 }
 0x475   : > { %6055 = vrcp.f32 %v2346_v61 }
 0x47b   : > { %v2349_v46 = vpop.xlane.xlu0 %2348 }
 0x47c   : > { %6057 = vrcp.f32 %v2349_v46 }
 0x47f   : > { %v2865_v30 = vpop.permute.xlu0 %2864 }
 0x480   : > { %v2886_v31 = vcombine.low %v7191_v26, %v2865_v30  ;;  %v2887_v32 = vcombine.high %v7191_v26, %v2865_v30  ;;  %v3121_v30 = vrot.slane %v3107_v51, %v6904_v23 }
 0x482   : > { %v2894_v35 = vrot.slane %v2886_v31, %v6901_v17  ;;  %v2901_v37 = vrot.slane %v2887_v32, %v6901_v17  ;;  %v6056_v8 = vpop.eup %6055  ;;  %v3836_v31 = vsel %vm2088_vm1, %v7185_v22, 0 }
 0x483   : > { %v2364_v50 = vmul.f32 %v6056_v8, %v7155_v7  ;;  %v3789_v7 = vsel %vm2088_vm1, %v7183_v21, 0 }
 0x484   : > { %v2902_v36 = vcombine.low %v2878_v33, %v2894_v35  ;;  %v2903_v42 = vcombine.high %v2878_v33, %v2894_v35  ;;  %v2918_v48 = vcombine.low %v2885_v34, %v2901_v37  ;;  %v2919_v26 = vcombine.high %v2885_v34, %v2901_v37 }
 0x485   : > { %v3883_v34 = vsel %vm2088_vm1, %v7187_v24, 0 }
 0x486   : > { %v2910_v52 = vrot.slane %v2902_v36, %v6904_v23  ;;  %v2917_v54 = vrot.slane %v2903_v42, %v6904_v23  ;;  %v2926_v40 = vrot.slane %v2918_v48, %v6904_v23  ;;  %v2933_v1 = vrot.slane %v2919_v26, %v6904_v23 }
 0x488   : > { %v3006_v9 = vcombine.low %v2910_v52, %v2917_v54  ;;  %v5499_v38 = vcombine.high %v2910_v52, %v2917_v54  ;;  %v3022_v11 = vcombine.low %v2926_v40, %v2933_v1  ;;  %v5500_v4 = vcombine.high %v2926_v40, %v2933_v1 }
 0x489   : > { %v6058_v14 = vpop.eup %6057 }
 0x48a   : > { %v3013_v18 = vrot.slane %v3006_v9, %v6901_v17  ;;  %v3021_v20 = vrot.slane %v5499_v38, %v6901_v17  ;;  %v3029_v28 = vrot.slane %v3022_v11, %v6901_v17  ;;  %v3037_v12 = vrot.slane %v5500_v4, %v6901_v17 }
 0x48b   : > { %v2365_v16 = vmul.f32 %v6058_v14, %v7171_v27  ;;  %v3123_v27 = vcombine.high %v3097_v29, %v3105_v41 }
 0x48c   : > { %v3038_v44 = vcombine.low %v3013_v18, %v3021_v20  ;;  %v3054_v58 = vcombine.low %v3029_v28, %v3037_v12  ;;  %v3039_v61 = vcombine.high %v3013_v18, %v3021_v20  ;;  %v3055_v0 = vcombine.high %v3029_v28, %v3037_v12 }
 0x48d   : > { %v2369_v59 = vpack.c.bf16 %v2365_v16, %v2364_v50  ;;  %v3137_v21 = vrot.slane %v3123_v27, %v6904_v23 }
 0x48e   : > { %v3046_v62 = vrot.slane %v3038_v44, %v6904_v23  ;;  %v3062_v5 = vrot.slane %v3054_v58, %v6904_v23  ;;  %v3053_v15 = vrot.slane %v3039_v61, %v6904_v23  ;;  %v3069_v19 = vrot.slane %v3055_v0, %v6904_v23 }
 0x48f   : > { %5724 = vmatmul.mubr.msk.bf16.vlgmr.msra.gmra.mxu0 %vm2277_vm2, %v2369_v59  ;;  %v3140_v35 = vcombine.low %v3121_v30, %v3137_v21  ;;  %v3141_v39 = vcombine.high %v3121_v30, %v3137_v21 }
 0x490   : > { %5734 = vmatpush3.bf16.xpose.msra.mxu0 %v3789_v7  ;;  %v3070_v46 = vcombine.low %v3046_v62, %v3062_v5  ;;  %5735 = vmatprep.mubr.msk.bf16.mxu0 %vm6436_vm0, %v6435_v60  ;;  %v3071_v53 = vcombine.high %v3046_v62, %v3062_v5  ;;  %v3072_v33 = vcombine.low %v3053_v15, %v3069_v19 }
 0x491   : > { %5745 = vmatprep.subr.bf16.mxu0 %v6435_v60  ;;  %v3073_v37 = vcombine.high %v3053_v15, %v3069_v19 }
 0x492   : > { %v3142_v25 = vpack.c.bf16 %v3138_v10, %v3070_v46  ;;  %v3143_v32 = vpack.c.bf16 %v3139_v57, %v3071_v53  ;;  %v3144_v22 = vpack.c.bf16 %v3140_v35, %v3072_v33 }
 0x493   : > { %v3145_v43 = vpack.c.bf16 %v3141_v39, %v3073_v37 }
 0x494   : > { %5730 = vmatmul.mubr.msk.bf16.vlgmr.msra.gmra.mxu1 %vm2088_vm1, %v3142_v25 }
 0x495   : > { %5740 = vmatpush3.bf16.xpose.msra.mxu1 %v3836_v31  ;;  %5741 = vmatprep.mubr.msk.bf16.mxu1 %vm6436_vm0, %v6435_v60 }
 0x496   : > { %5751 = vmatprep.subr.bf16.mxu1 %v6435_v60 }
 0x497   : > { %5736 = vmatmul.mubr.msk.bf16.vlgmr.msra.gmra.mxu0 %vm2088_vm1, %v3143_v32 }
 0x498   : > { %5746 = vmatpush3.bf16.xpose.msra.mxu0 %v3883_v34  ;;  %5747 = vmatprep.mubr.msk.bf16.mxu0 %vm6436_vm0, %v6435_v60 }
 0x499   : > { %5757 = vmatprep.subr.bf16.mxu0 %v6435_v60 }
 0x49c   : > { %5742 = vmatmul.mubr.msk.bf16.vlgmr.msra.gmra.mxu1 %vm2088_vm1, %v3144_v22 }
 0x49d   : > { %5753 = vmatprep.mubr.msk.bf16.mxu1 %vm6436_vm0, %v6435_v60 }
 0x49f   : > { %5748 = vmatmul.mubr.msk.bf16.vlgmr.msra.gmra.mxu0 %vm2088_vm1, %v3145_v43 }
 0x4a0   : > { %5759 = vmatprep.mubr.msk.bf16.mxu0 %vm6436_vm0, %v6435_v60 }
 0x510   : > { %v2407_v24 = vpop.f32.mrf.mxu1 }
 0x512   : > { %v5707_v29 = vpop.f32.mrf.mxu1 }
 0x514   : > { %v2410_v41 = vpop.f32.mrf.mxu1 }
 0x516   : > { %v5708_v36 = vpop.f32.mrf.mxu1 }
 0x518   : > { %v2451_v42 = vpop.f32.mrf.mxu0  ;;  %v2495_v48 = vpop.f32.mrf.mxu1 }
 0x519   : > { %v2546_v26 = vcombine.low %v2407_v24, %v2495_v48  ;;  %v2547_v52 = vcombine.high %v2407_v24, %v2495_v48 }
 0x51a   : > { %v5713_v54 = vpop.f32.mrf.mxu0  ;;  %v5719_v40 = vpop.f32.mrf.mxu1 }
 0x51b   : > { %v2554_v20 = vrot.slane %v2546_v26, %v6901_v17  ;;  %v2561_v28 = vrot.slane %v2547_v52, %v6901_v17 }
 0x51c   : > { %v2454_v1 = vpop.f32.mrf.mxu0  ;;  %v2498_v2 = vpop.f32.mrf.mxu1 }
 0x51d   : > { %v2614_v13 = vcombine.low %v2410_v41, %v2498_v2  ;;  %v2615_v8 = vcombine.high %v2410_v41, %v2498_v2 }
 0x51e   : > { %v5714_v9 = vpop.f32.mrf.mxu0  ;;  %v5720_v38 = vpop.f32.mrf.mxu1 }
 0x51f   : > { %v2622_v53 = vrot.slane %v2614_v13, %v6901_v17  ;;  %v2629_v15 = vrot.slane %v2615_v8, %v6901_v17 }
 0x54f   : > { %v2539_v11 = vpop.f32.mrf.mxu0 }
 0x550   : > { %v2562_v4 = vcombine.low %v2451_v42, %v2539_v11  ;;  %v2563_v14 = vcombine.high %v2451_v42, %v2539_v11 }
 0x551   : > { %v5725_v18 = vpop.f32.mrf.mxu0 }
 0x552   : > { %v2570_v12 = vrot.slane %v2562_v4, %v6901_v17  ;;  %v2577_v50 = vrot.slane %v2563_v14, %v6901_v17 }
 0x553   : > { %v2542_v16 = vpop.f32.mrf.mxu0 }
 0x554   : > { %v2578_v55 = vcombine.low %v2554_v20, %v2570_v12  ;;  %v2579_v56 = vcombine.high %v2554_v20, %v2570_v12  ;;  %v2594_v44 = vcombine.low %v2561_v28, %v2577_v50  ;;  %v2595_v58 = vcombine.high %v2561_v28, %v2577_v50  ;;  %v7286_v59 = vpop.f32.mrf.mxu1 }
 0x555   : > { %v2630_v61 = vcombine.low %v2454_v1, %v2542_v16  ;;  %v2631_v62 = vcombine.high %v2454_v1, %v2542_v16  ;;  %v5726_v0 = vpop.f32.mrf.mxu0  ;;  %v3926_v5 = vsel %vm2277_vm2, %v7286_v59, -inf }
 0x556   : > { %v2586_v51 = vrot.slane %v2578_v55, %v6904_v23  ;;  %v2593_v7 = vrot.slane %v2579_v56, %v6904_v23  ;;  %v2602_v27 = vrot.slane %v2594_v44, %v6904_v23  ;;  %v2609_v46 = vrot.slane %v2595_v58, %v6904_v23  ;;  %3927 = vmax.xlane.f32.xlu0 %v3926_v5  ;;  %v5731_v10 = vpop.f32.mrf.mxu1 }
 0x557   : > { %v2638_v19 = vrot.slane %v2630_v61, %v6901_v17  ;;  %v2645_v25 = vrot.slane %v2631_v62, %v6901_v17  ;;  %v7298_v57 = vpop.f32.mrf.mxu0 }
 0x558   : > { %v2682_v30 = vcombine.low %v2586_v51, %v2593_v7  ;;  %v5495_v21 = vcombine.high %v2586_v51, %v2593_v7  ;;  %v2698_v31 = vcombine.low %v2602_v27, %v2609_v46  ;;  %v5496_v32 = vcombine.high %v2602_v27, %v2609_v46  ;;  %v7300_v33 = vpop.f32.mrf.mxu1 }
 0x559   : > { %v2646_v34 = vcombine.low %v2622_v53, %v2638_v19  ;;  %v2647_v35 = vcombine.high %v2622_v53, %v2638_v19  ;;  %v2662_v37 = vcombine.low %v2629_v15, %v2645_v25  ;;  %v2663_v22 = vcombine.high %v2629_v15, %v2645_v25  ;;  %v5737_v39 = vpop.f32.mrf.mxu0 }
 0x55a   : > { %v2689_v43 = vrot.slane %v2682_v30, %v6901_v17  ;;  %v2697_v24 = vrot.slane %v5495_v21, %v6901_v17  ;;  %v2705_v29 = vrot.slane %v2698_v31, %v6901_v17  ;;  %v2713_v41 = vrot.slane %v5496_v32, %v6901_v17  ;;  %v5732_v36 = vpop.f32.mrf.mxu1 }
 0x55b   : > { %v2654_v42 = vrot.slane %v2646_v34, %v6904_v23  ;;  %v2661_v48 = vrot.slane %v2647_v35, %v6904_v23  ;;  %v2670_v26 = vrot.slane %v2662_v37, %v6904_v23  ;;  %v2677_v52 = vrot.slane %v2663_v22, %v6904_v23  ;;  %v7310_v54 = vpop.f32.mrf.mxu0 }
 0x55c   : > { %v3932_v40 = vsel %vm2277_vm2, %v7298_v57, -inf  ;;  %v3929_v1 = vsel %vm2277_vm2, %v7300_v33, -inf  ;;  %v7316_v2 = vpop.f32.mrf.mxu1  ;;  %v2715_v13 = vcombine.high %v2689_v43, %v2697_v24  ;;  %v2731_v28 = vcombine.high %v2705_v29, %v2713_v41 }
 0x55d   : > { %v2750_v8 = vcombine.low %v2654_v42, %v2661_v48  ;;  %v5497_v9 = vcombine.high %v2654_v42, %v2661_v48  ;;  %v2766_v38 = vcombine.low %v2670_v26, %v2677_v52  ;;  %v5498_v11 = vcombine.high %v2670_v26, %v2677_v52  ;;  %3933 = vmax.xlane.f32.xlu0 %v3932_v40  ;;  %v5738_v4 = vpop.f32.mrf.mxu0 }
 0x55e   : > { %3930 = vmax.xlane.f32.xlu1 %v3929_v1  ;;  %v3938_v14 = vsel %vm2277_vm2, %v7316_v2, -inf  ;;  %v5743_v18 = vpop.f32.mrf.mxu1  ;;  %v2729_v20 = vrot.slane %v2715_v13, %v6904_v23  ;;  %v2714_v12 = vcombine.low %v2689_v43, %v2697_v24  ;;  %v3935_v58 = vsel %vm2277_vm2, %v7310_v54, -inf }
 0x55f   : > { %v2757_v50 = vrot.slane %v2750_v8, %v6901_v17  ;;  %v2765_v16 = vrot.slane %v5497_v9, %v6901_v17  ;;  %v2773_v55 = vrot.slane %v2766_v38, %v6901_v17  ;;  %v2781_v56 = vrot.slane %v5498_v11, %v6901_v17  ;;  %v7325_v44 = vpop.f32.mrf.mxu0 }
 0x560   : > { %v7329_v61 = vpop.f32.mrf.mxu1  ;;  %v2745_v62 = vrot.slane %v2731_v28, %v6904_v23  ;;  %v7333_v0 = vrot.slane %v2714_v12, %v6904_v23  ;;  %v2730_v5 = vcombine.low %v2705_v29, %v2713_v41  ;;  %v3944_v39 = vsel %vm2277_vm2, %v7325_v44, -inf }
 0x561   : > { %3936 = vmax.xlane.f32.xlu0 %v3935_v58  ;;  %v5749_v51 = vpop.f32.mrf.mxu0  ;;  %v3941_v7 = vsel %vm2277_vm2, %v7329_v61, -inf  ;;  %v2783_v27 = vcombine.high %v2757_v50, %v2765_v16  ;;  %v2799_v46 = vcombine.high %v2773_v55, %v2781_v56  ;;  %v2782_v10 = vcombine.low %v2757_v50, %v2765_v16 }
 0x562   : > { %3939 = vmax.xlane.f32.xlu1 %v3938_v14  ;;  %v5744_v53 = vpop.f32.mrf.mxu1  ;;  %v2748_v15 = vcombine.low %v2729_v20, %v2745_v62  ;;  %v7338_v19 = vrot.slane %v2730_v5, %v6904_v23  ;;  %v2798_v25 = vcombine.low %v2773_v55, %v2781_v56  ;;  %v2749_v30 = vcombine.high %v2729_v20, %v2745_v62 }
 0x563   : > { %v3922_v21 = vpop.f32.mrf.mxu0  ;;  %v2797_v31 = vrot.slane %v2783_v27, %v6904_v23  ;;  %v2813_v32 = vrot.slane %v2799_v46, %v6904_v23  ;;  %v7343_v34 = vrot.slane %v2782_v10, %v6904_v23 }
 0x564   : > { %v2746_v35 = vcombine.low %v7333_v0, %v7338_v19  ;;  %v2747_v37 = vcombine.high %v7333_v0, %v7338_v19  ;;  %v7350_v22 = vrot.slane %v2798_v25, %v6904_v23  ;;  %v3947_v26 = vsel %vm2277_vm2, %v3922_v21, -inf }
 0x565   : > { %3942 = vmax.xlane.f32.xlu0 %v3941_v7  ;;  %v5750_v43 = vpop.f32.mrf.mxu0  ;;  %v2816_v24 = vcombine.low %v2797_v31, %v2813_v32  ;;  %v2817_v29 = vcombine.high %v2797_v31, %v2813_v32 }
 0x566   : > { %3945 = vmax.xlane.f32.xlu1 %v3944_v39  ;;  %v2815_v41 = vcombine.high %v7343_v34, %v7350_v22  ;;  %v2814_v36 = vcombine.low %v7343_v34, %v7350_v22 }
 0x567   : > { %v7358_v42 = vpack.i.bf16 %v2816_v24, %v2748_v15  ;;  %v7360_v48 = vpack.i.bf16 %v2817_v29, %v2749_v30 }
 0x568   : > { %v7363_v52 = vpack.i.bf16 %v2815_v41, %v2747_v37 }
 0x569   : > { %3948 = vmax.xlane.f32.xlu0 %v3947_v26 }
 0x577   : > { %3444 = vrot.lane.b32.xlu1 %v6876_v63, %s6432_s5 }
 0x57b   : > { %3450 = vrot.lane.b32.xlu1 %v6876_v63, %s6433_s10 }
 0x57f   : > { %3452 = vrot.lane.b32.xlu1 %v6882_v3, %s6433_s10  ;;  %3446 = vrot.lane.b32.xlu0 %v6882_v3, %s6432_s5 }
 0x583   : > { %3456 = vrot.lane.b32.xlu0 %v6876_v63, %s6434_s30 }
 0x5df   : > { %v3928_v40 = vpop.xlane.xlu0 %3927 }
 0x5e0   : > { %v3950_v1 = vsub.f32 %v7286_v59, %v3928_v40 }
 0x5e2   : > { %v3958_v13 = vmul.f32 1.442695, %v3950_v1 }
 0x5e4   : > { %6059 = vpow2.f32 %v3958_v13 }
 0x5e6   : > { %v3934_v8 = vpop.xlane.xlu0 %3933 }
 0x5e7   : > { %v3952_v9 = vsub.f32 %v7298_v57, %v3934_v8  ;;  %v3931_v38 = vpop.xlane.xlu1 %3930 }
 0x5e8   : > { %v3951_v11 = vsub.f32 %v7300_v33, %v3931_v38 }
 0x5e9   : > { %v3962_v4 = vmul.f32 1.442695, %v3952_v9 }
 0x5ea   : > { %v3960_v14 = vmul.f32 1.442695, %v3951_v11  ;;  %v3937_v18 = vpop.xlane.xlu0 %3936 }
 0x5eb   : > { %6061 = vpow2.f32 %v3962_v4  ;;  %v3953_v20 = vsub.f32 %v7310_v54, %v3937_v18  ;;  %v3940_v28 = vpop.xlane.xlu1 %3939 }
 0x5ec   : > { %6063 = vpow2.f32 %v3960_v14  ;;  %v3954_v12 = vsub.f32 %v7316_v2, %v3940_v28 }
 0x5ed   : > { %v3964_v50 = vmul.f32 1.442695, %v3953_v20 }
 0x5ee   : > { %v3966_v59 = vmul.f32 1.442695, %v3954_v12  ;;  %v3943_v16 = vpop.xlane.xlu0 %3942 }
 0x5ef   : > { %v3946_v55 = vpop.xlane.xlu1 %3945  ;;  %v3955_v31 = vsub.f32 %v7329_v61, %v3943_v16 }
 0x5f0   : > { %6065 = vpow2.f32 %v3966_v59  ;;  %v3956_v57 = vsub.f32 %v7325_v44, %v3946_v55 }
 0x5f1   : > { %v7381_v56 = vpop.eup %6059  ;;  %6067 = vpow2.f32 %v3964_v50  ;;  %v3968_v32 = vmul.f32 1.442695, %v3955_v31 }
 0x5f2   : > { %v3970_v33 = vmul.f32 1.442695, %v3956_v57  ;;  %v3949_v58 = vpop.xlane.xlu0 %3948  ;;  %v3974_v62 = vsel %vm2277_vm2, %v7381_v56, 0.0 }
 0x5f3   : > { %v3957_v54 = vsub.f32 %v3922_v21, %v3949_v58  ;;  %3975 = vadd.xlane.f32.xlu1 %v3974_v62  ;;  %v3445_v43 = vpop.permute.xlu1 %3444 }
 0x5f4   : > { %6069 = vpow2.f32 %v3970_v33 }
 0x5f5   : > { %v3972_v5 = vmul.f32 1.442695, %v3957_v54 }
 0x5f6   : > { %v3447_v24 = vpop.permute.xlu0 %3446 }
 0x5f7   : > { %6071 = vpow2.f32 %v3972_v5  ;;  %v3451_v61 = vpop.permute.xlu1 %3450 }
 0x5f8   : > { %v7385_v2 = vpop.eup %6061  ;;  %6073 = vpow2.f32 %v3968_v32  ;;  %v3463_v40 = vcombine.high %v6876_v63, %v3451_v61 }
 0x5f9   : > { %v7387_v51 = vpop.eup %6063  ;;  %v3980_v7 = vsel %vm2277_vm2, %v7385_v2, 0.0 }
 0x5fa   : > { %3981 = vadd.xlane.f32.xlu1 %v3980_v7  ;;  %v3977_v44 = vsel %vm2277_vm2, %v7387_v51, 0.0  ;;  %v3457_v29 = vpop.permute.xlu0 %3456  ;;  %v3477_v9 = vrot.slane %v3463_v40, %v6901_v17 }
 0x5fb   : > { %3978 = vadd.xlane.f32.xlu0 %v3977_v44  ;;  %v3478_v41 = vcombine.low %v3445_v43, %v3457_v29  ;;  %v3479_v26 = vcombine.high %v3445_v43, %v3457_v29  ;;  %v3453_v1 = vpop.permute.xlu1 %3452 }
 0x5fc   : > { %v3530_v59 = vcombine.low %v6882_v3, %v3453_v1  ;;  %v3531_v16 = vcombine.high %v6882_v3, %v3453_v1 }
 0x5fd   : > { %v7393_v27 = vpop.eup %6065  ;;  %v3486_v13 = vrot.slane %v3478_v41, %v6901_v17  ;;  %v3493_v8 = vrot.slane %v3479_v26, %v6901_v17 }
 0x5fe   : > { %v3986_v46 = vsel %vm2277_vm2, %v7393_v27, 0.0  ;;  %v7397_v10 = vpop.eup %6067  ;;  %v3538_v44 = vrot.slane %v3530_v59, %v6901_v17 }
 0x5ff   : > { %3987 = vadd.xlane.f32.xlu0 %v3986_v46  ;;  %v3983_v53 = vsel %vm2277_vm2, %v7397_v10, 0.0  ;;  %v3510_v4 = vcombine.low %v3477_v9, %v3493_v8  ;;  %v3511_v14 = vcombine.high %v3477_v9, %v3493_v8  ;;  %v3545_v46 = vrot.slane %v3531_v16, %v6901_v17 }
 0x601   : > { %v7401_v15 = vpop.eup %6069  ;;  %v3525_v28 = vrot.slane %v3511_v14, %v6904_v23 }
 0x602   : > { %v3992_v25 = vsel %vm2277_vm2, %v7401_v15, 0.0 }
 0x603   : > { %3984 = vadd.xlane.f32.xlu0 %v3983_v53 }
 0x604   : > { %v7405_v30 = vpop.eup %6071 }
 0x605   : > { %v3995_v21 = vsel %vm2277_vm2, %v7405_v30, 0.0  ;;  %v7414_v37 = vpop.eup %6073 }
 0x606   : > { %v3989_v39 = vsel %vm2277_vm2, %v7414_v37, 0.0 }
 0x607   : > { %3993 = vadd.xlane.f32.xlu0 %v3992_v25 }
 0x60b   : > { %3996 = vadd.xlane.f32.xlu0 %v3995_v21  ;;  %3458 = vrot.lane.b32.xlu1 %v6882_v3, %s6434_s30 }
 0x621   : > { %5923 = vrot.lane.b32.xlu0 %v7358_v42, %s6433_s10  ;;  %v3462_v42 = vcombine.low %v6876_v63, %v3451_v61  ;;  %v3518_v63 = vrot.slane %v3510_v4, %v6904_v23 }
 0x623   : > { %v3614_v33 = vcombine.low %v3518_v63, %v3525_v28  ;;  %v5508_v58 = vcombine.high %v3518_v63, %v3525_v28 }
 0x625   : > { %v3621_v31 = vrot.slane %v3614_v33, %v6901_v17  ;;  %v3629_v32 = vrot.slane %v5508_v58, %v6901_v17 }
 0x62f   : > { %3990 = vadd.xlane.f32.xlu1 %v3989_v39 }
 0x640   : > { %5918 = vrot.lane.b32.xlu1 %v7363_v52, %s6434_s30  ;;  %v3470_v52 = vrot.slane %v3462_v42, %v6901_v17 }
 0x642   : > { %v3494_v38 = vcombine.low %v3470_v52, %v3486_v13  ;;  %v3495_v11 = vcombine.high %v3470_v52, %v3486_v13  ;;  %v3646_v13 = vcombine.low %v3621_v31, %v3629_v32 }
 0x644   : > { %5928 = vrot.lane.b32.xlu1 %v7360_v48, %s6432_s5  ;;  %v3502_v18 = vrot.slane %v3494_v38, %v6904_v23  ;;  %v3509_v20 = vrot.slane %v3495_v11, %v6904_v23  ;;  %v3654_v28 = vrot.slane %v3646_v13, %v6904_v23 }
 0x646   : > { %v3598_v55 = vcombine.low %v3502_v18, %v3509_v20  ;;  %v5507_v57 = vcombine.high %v3502_v18, %v3509_v20 }
 0x648   : > { %v3605_v53 = vrot.slane %v3598_v55, %v6901_v17  ;;  %v3613_v21 = vrot.slane %v5507_v57, %v6901_v17 }
 0x64a   : > { %v3630_v1 = vcombine.low %v3605_v53, %v3613_v21  ;;  %v3631_v11 = vcombine.high %v3605_v53, %v3613_v21 }
 0x64c   : > { %v3638_v63 = vrot.slane %v3630_v1, %v6904_v23 }
 0x67c   : > { %v3976_v48 = vpop.xlane.xlu1 %3975 }
 0x683   : > { %v3982_v12 = vpop.xlane.xlu1 %3981 }
 0x684   : > { %v3979_v50 = vpop.xlane.xlu0 %3978 }
 0x685   : > { %6075 = vrcp.f32 %v3979_v50 }
 0x686   : > { %6077 = vrcp.f32 %v3976_v48 }
 0x687   : > { %v3459_v62 = vpop.permute.xlu1 %3458  ;;  %6079 = vrcp.f32 %v3982_v12  ;;  %v3647_v12 = vcombine.high %v3621_v31, %v3629_v32  ;;  %v3663_v31 = vcombine.high %v3638_v63, %v3654_v28 }
 0x688   : > { %v3546_v54 = vcombine.low %v3447_v24, %v3459_v62  ;;  %v3547_v5 = vcombine.high %v3447_v24, %v3459_v62  ;;  %v7434_v7 = vpop.xlane.xlu0 %3987 }
 0x689   : > { %v3661_v53 = vrot.slane %v3647_v12, %v6904_v23 }
 0x68a   : > { %v3554_v25 = vrot.slane %v3546_v54, %v6901_v17  ;;  %v3561_v3 = vrot.slane %v3547_v5, %v6901_v17 }
 0x68c   : > { %v3562_v39 = vcombine.low %v3538_v44, %v3554_v25  ;;  %v3563_v43 = vcombine.high %v3538_v44, %v3554_v25  ;;  %v3578_v24 = vcombine.low %v3545_v46, %v3561_v3  ;;  %v3579_v61 = vcombine.high %v3545_v46, %v3561_v3  ;;  %v3985_v29 = vpop.xlane.xlu0 %3984 }
 0x68d   : > { %6081 = vrcp.f32 %v3985_v29  ;;  %v3645_v46 = vrot.slane %v3631_v11, %v6904_v23  ;;  %v3662_v3 = vcombine.low %v3638_v63, %v3654_v28 }
 0x68e   : > { %v3570_v41 = vrot.slane %v3562_v39, %v6904_v23  ;;  %v3577_v26 = vrot.slane %v3563_v43, %v6904_v23  ;;  %v3586_v42 = vrot.slane %v3578_v24, %v6904_v23  ;;  %v3593_v40 = vrot.slane %v3579_v61, %v6904_v23 }
 0x68f   : > { %v3664_v1 = vcombine.low %v3645_v46, %v3661_v53  ;;  %v3665_v13 = vcombine.high %v3645_v46, %v3661_v53 }
 0x690   : > { %v3666_v8 = vcombine.low %v3570_v41, %v3577_v26  ;;  %v5509_v52 = vcombine.high %v3570_v41, %v3577_v26  ;;  %v3682_v9 = vcombine.low %v3586_v42, %v3593_v40  ;;  %v5510_v48 = vcombine.high %v3586_v42, %v3593_v40  ;;  %v3994_v38 = vpop.xlane.xlu0 %3993 }
 0x691   : > { %6083 = vrcp.f32 %v3994_v38 }
 0x692   : > { %v3673_v4 = vrot.slane %v3666_v8, %v6901_v17  ;;  %v3681_v14 = vrot.slane %v5509_v52, %v6901_v17  ;;  %v3689_v18 = vrot.slane %v3682_v9, %v6901_v17  ;;  %v3697_v20 = vrot.slane %v5510_v48, %v6901_v17  ;;  %v6076_v33 = vpop.eup %6075 }
 0x693   : > { %v6078_v44 = vpop.eup %6077  ;;  %v4007_v39 = vmul.f32 %v6076_v33, %v7387_v51  ;;  %v5980_v33 = vld [vmem:[%s6791_s9 + $0x30] sm:$0xff]  }
 0x694   : > { %v3997_v50 = vpop.xlane.xlu0 %3996  ;;  %v3698_v59 = vcombine.low %v3673_v4, %v3681_v14  ;;  %v3714_v16 = vcombine.low %v3689_v18, %v3697_v20  ;;  %v3699_v55 = vcombine.high %v3673_v4, %v3681_v14  ;;  %v3715_v57 = vcombine.high %v3689_v18, %v3697_v20  ;;  %v6080_v25 = vpop.eup %6079 }
 0x695   : > { %6085 = vrcp.f32 %v3997_v50  ;;  %v4006_v26 = vmul.f32 %v6078_v44, %v7381_v56  ;;  %v4008_v42 = vmul.f32 %v6080_v25, %v7385_v2 }
 0x696   : > { %v3706_v58 = vrot.slane %v3698_v59, %v6904_v23  ;;  %v3722_v62 = vrot.slane %v3714_v16, %v6904_v23  ;;  %v3713_v54 = vrot.slane %v3699_v55, %v6904_v23  ;;  %v3729_v5 = vrot.slane %v3715_v57, %v6904_v23  ;;  %v5979_v57 = vld [vmem:[%s6791_s9 + $0x38] sm:$0xff]  }
 0x697   : > { %v4014_v8 = vpack.c.bf16 %v4007_v39, %v4006_v26  ;;  %6087 = vrcp.f32 %v7434_v7 }
 0x698   : > { %v3730_v21 = vcombine.low %v3706_v58, %v3722_v62  ;;  %v3731_v32 = vcombine.high %v3706_v58, %v3722_v62  ;;  %v3732_v29 = vcombine.low %v3713_v54, %v3729_v5  ;;  %v3733_v41 = vcombine.high %v3713_v54, %v3729_v5  ;;  %v5924_v14 = vpop.permute.xlu0 %5923  ;;  %v5981_v58 = vld [vmem:[%s6791_s9 + $0x28] sm:$0xff]   ;;  %v5982_v62 = vld [vmem:[%s6791_s9 + $0x20] sm:$0xff]  }
 0x699   : > { %v5925_v63 = vunpack.i.l.bf16 %v5924_v14 }
 0x69a   : > { %v6082_v43 = vpop.eup %6081  ;;  %v3734_v24 = vpack.c.bf16 %v3730_v21, %v3662_v3  ;;  %v3735_v61 = vpack.c.bf16 %v3731_v32, %v3663_v31  ;;  %v3736_v51 = vpack.c.bf16 %v3732_v29, %v3664_v1  ;;  %v3737_v9 = vpack.c.bf16 %v3733_v41, %v3665_v13 }
 0x69b   : > { %v4009_v40 = vmul.f32 %v6082_v43, %v7397_v10 }
 0x69c   : > { %5752 = vmatpush3.bf16.msra.mxu1 %v3734_v24  ;;  %5758 = vmatpush3.bf16.msra.mxu0 %v3735_v61 }
 0x69d   : > { %v4015_v52 = vpack.c.bf16 %v4009_v40, %v4008_v42  ;;  %5763 = vmatprep.subr.bf16.mxu1 %v6435_v60  ;;  %5769 = vmatprep.subr.bf16.mxu0 %v6435_v60 }
 0x69e   : > { %v6084_v56 = vpop.eup %6083 }
 0x69f   : > { %5754 = vmatmul.mubr.msk.bf16.vlgmr.msra.gmra.mxu1 %vm2277_vm2, %v4014_v8  ;;  %5760 = vmatmul.mubr.msk.bf16.vlgmr.msra.gmra.mxu0 %vm2277_vm2, %v4015_v52  ;;  %v4012_v10 = vmul.f32 %v6084_v56, %v7401_v15 }
 0x6a0   : > { %5764 = vmatpush3.bf16.msra.mxu1 %v3736_v51  ;;  %5770 = vmatpush3.bf16.msra.mxu0 %v3737_v9 }
 0x6a1   : > { %5771 = vmatprep.mubr.msk.bf16.mxu0 %vm6436_vm0, %v6435_v60  ;;  %5765 = vmatprep.mubr.msk.bf16.mxu1 %vm6436_vm0, %v6435_v60 }
 0x6a2   : > { %v6086_v2 = vpop.eup %6085  ;;  %5775 = vmatprep.subr.bf16.mxu1 %v5979_v57 }
 0x6a3   : > { %v4013_v48 = vmul.f32 %v6086_v2, %v7405_v30  ;;  %v5926_v30 = vunpack.i.h.bf16 %v5924_v14 }
 0x6a4   : > { %v6088_v19 = vpop.eup %6087 }
 0x6a5   : > { %v4017_v38 = vpack.c.bf16 %v4013_v48, %v4012_v10  ;;  %v4010_v59 = vmul.f32 %v6088_v19, %v7393_v27  ;;  %v5983_v27 = vld [vmem:[%s6791_s9 + $0x18] sm:$0xff]  }
 0x6a7   : > { %5772 = vmatmul.mubr.msk.bf16.vlgmr.msra.gmra.mxu0 %vm2277_vm2, %v4017_v38 }
 0x6a8   : > { %4839 = vmatprep.mubr.bf16.mxu0 %v6431_v6 }
 0x6b8   : > { %v3991_v11 = vpop.xlane.xlu1 %3990 }
 0x6b9   : > { %6089 = vrcp.f32 %v3991_v11 }
 0x6bc   : > { %v5919_v4 = vpop.permute.xlu1 %5918 }
 0x6bd   : > { %v5921_v18 = vunpack.i.h.bf16 %v5919_v4  ;;  %v5920_v20 = vunpack.i.l.bf16 %v5919_v4 }
 0x6bf   : > { %v2843_v60 = vsel %vm2088_vm1, %v2814_v36, %v5921_v18  ;;  %v2842_v15 = vsel %vm2088_vm1, %v2746_v35, %v5920_v20 }
 0x6c0   : > { %v5929_v7 = vpop.permute.xlu1 %5928  ;;  %v2845_v50 = vsel %vm2844_vm3, %v2842_v15, %v5925_v63  ;;  %v2846_v34 = vsel %vm2844_vm3, %v2843_v60, %v5926_v30 }
 0x6c1   : > { %v5931_v28 = vunpack.i.h.bf16 %v5929_v7  ;;  %v5930_v12 = vunpack.i.l.bf16 %v5929_v7 }
 0x6c3   : > { %v2848_v22 = vsel %vm2847_vm4, %v2845_v50, %v5930_v12  ;;  %v2849_v0 = vsel %vm2847_vm4, %v2846_v34, %v5931_v28 }
 0x6c4   : > { %v4496_v35 = vpack.c.bf16 %v2849_v0, %v2848_v22 }
 0x6c6   : > { %v6090_v36 = vpop.eup %6089 }
 0x6c7   : > { %v4011_v16 = vmul.f32 %v6090_v36, %v7414_v37  ;;  %v5984_v37 = vld [vmem:[%s6791_s9 + $0x10] sm:$0xff]  }
 0x6c9   : > { %v4016_v55 = vpack.c.bf16 %v4011_v16, %v4010_v59 }
 0x6cb   : > { %5766 = vmatmul.mubr.msk.bf16.vlgmr.msra.gmra.mxu1 %vm2277_vm2, %v4016_v55 }
 0x6cc   : > { %5791 = vmatprep.mubr.bf16.mxu1 %v4496_v35  ;;  %5776 = vmatpush3.bf16.msra.mxu1 %v5979_v57 }
 0x6cd   : > { %5777 = vmatprep.subr.bf16.mxu1 %v5980_v33 }
 0x6d0   : > { %5778 = vmatpush3.bf16.msra.mxu1 %v5980_v33 }
 0x6d1   : > { %5779 = vmatprep.subr.bf16.mxu1 %v5981_v58 }
 0x6d4   : > { %5780 = vmatpush3.bf16.msra.mxu1 %v5981_v58 }
 0x6d5   : > { %5781 = vmatprep.subr.bf16.mxu1 %v5982_v62 }
 0x6d8   : > { %5782 = vmatpush3.bf16.msra.mxu1 %v5982_v62 }
 0x6d9   : > { %5783 = vmatprep.subr.bf16.mxu1 %v5983_v27 }
 0x6dc   : > { %5784 = vmatpush3.bf16.msra.mxu1 %v5983_v27 }
 0x6dd   : > { %5785 = vmatprep.subr.bf16.mxu1 %v5984_v37 }
 0x6e0   : > { %5786 = vmatpush3.bf16.msra.mxu1 %v5984_v37 }
 0x75f   : > { %v4055_v54 = vpop.f32.mrf.mxu1  ;;  %v4099_v5 = vpop.f32.mrf.mxu0 }
 0x761   : > { %v5755_v44 = vpop.f32.mrf.mxu1  ;;  %v5761_v46 = vpop.f32.mrf.mxu0 }
 0x763   : > { %v4058_v53 = vpop.f32.mrf.mxu1  ;;  %v4102_v25 = vpop.f32.mrf.mxu0 }
 0x765   : > { %v5756_v3 = vpop.f32.mrf.mxu1  ;;  %v5762_v21 = vpop.f32.mrf.mxu0 }
 0x766   : > { %v5985_v3 = vld [vmem:[%s6791_s9 + $0x8] sm:$0xff]  }
 0x767   : > { %v4187_v31 = vpop.f32.mrf.mxu0  ;;  %5787 = vmatprep.subr.bf16.mxu1 %v5985_v3 }
 0x768   : > { %v4210_v24 = vcombine.low %v4099_v5, %v4187_v31  ;;  %v4211_v61 = vcombine.high %v4099_v5, %v4187_v31  ;;  %5788 = vmatpush3.bf16.msra.mxu1 %v5985_v3 }
 0x769   : > { %v5773_v32 = vpop.f32.mrf.mxu0 }
 0x76a   : > { %v4218_v40 = vrot.slane %v4210_v24, %v6901_v17  ;;  %v4225_v1 = vrot.slane %v4211_v61, %v6901_v17 }
 0x76b   : > { %v4190_v39 = vpop.f32.mrf.mxu0 }
 0x76c   : > { %v4278_v52 = vcombine.low %v4102_v25, %v4190_v39  ;;  %v4279_v51 = vcombine.high %v4102_v25, %v4190_v39 }
 0x76d   : > { %v5774_v43 = vpop.f32.mrf.mxu0 }
 0x76e   : > { %v4286_v15 = vrot.slane %v4278_v52, %v6901_v17  ;;  %v4293_v30 = vrot.slane %v4279_v51, %v6901_v17 }
 0x78b   : > { %v4143_v29 = vpop.f32.mrf.mxu1 }
 0x78c   : > { %v4194_v41 = vcombine.low %v4055_v54, %v4143_v29  ;;  %v4195_v26 = vcombine.high %v4055_v54, %v4143_v29 }
 0x78d   : > { %v5767_v42 = vpop.f32.mrf.mxu1 }
 0x78e   : > { %v4202_v13 = vrot.slane %v4194_v41, %v6901_v17  ;;  %v4209_v8 = vrot.slane %v4195_v26, %v6901_v17 }
 0x78f   : > { %v4146_v9 = vpop.f32.mrf.mxu1 }
 0x790   : > { %v4226_v56 = vcombine.low %v4202_v13, %v4218_v40  ;;  %v4227_v2 = vcombine.high %v4202_v13, %v4218_v40  ;;  %v4242_v10 = vcombine.low %v4209_v8, %v4225_v1  ;;  %v4243_v48 = vcombine.high %v4209_v8, %v4225_v1  ;;  %v5986_v13 = vld [vmem:[%s6791_s9] sm:$0xff]  }
 0x791   : > { %v4262_v38 = vcombine.low %v4058_v53, %v4146_v9  ;;  %v4263_v11 = vcombine.high %v4058_v53, %v4146_v9  ;;  %v5768_v4 = vpop.f32.mrf.mxu1  ;;  %5789 = vmatprep.subr.bf16.mxu1 %v5986_v13 }
 0x792   : > { %v4234_v14 = vrot.slane %v4226_v56, %v6904_v23  ;;  %v4241_v18 = vrot.slane %v4227_v2, %v6904_v23  ;;  %v4250_v20 = vrot.slane %v4242_v10, %v6904_v23  ;;  %v4257_v60 = vrot.slane %v4243_v48, %v6904_v23  ;;  %5790 = vmatpush3.bf16.msra.mxu1 %v5986_v13  ;;  %v6001_v13 = vld [vmem:[%s6793_s12 + $0x34] ss:$8 sps:$4 sm:$0xff]  }
 0x793   : > { %v4270_v63 = vrot.slane %v4262_v38, %v6901_v17  ;;  %v4277_v7 = vrot.slane %v4263_v11, %v6901_v17 }
 0x794   : > { %v4330_v28 = vcombine.low %v4234_v14, %v4241_v18  ;;  %v5519_v12 = vcombine.high %v4234_v14, %v4241_v18  ;;  %v4346_v50 = vcombine.low %v4250_v20, %v4257_v60  ;;  %v5520_v34 = vcombine.high %v4250_v20, %v4257_v60 }
 0x795   : > { %v4294_v22 = vcombine.low %v4270_v63, %v4286_v15  ;;  %v4295_v0 = vcombine.high %v4270_v63, %v4286_v15  ;;  %v4310_v19 = vcombine.low %v4277_v7, %v4293_v30  ;;  %v4311_v35 = vcombine.high %v4277_v7, %v4293_v30 }
 0x796   : > { %v4337_v36 = vrot.slane %v4330_v28, %v6901_v17  ;;  %v4345_v59 = vrot.slane %v5519_v12, %v6901_v17  ;;  %v4353_v16 = vrot.slane %v4346_v50, %v6901_v17  ;;  %v4361_v55 = vrot.slane %v5520_v34, %v6901_v17 }
 0x797   : > { %v4302_v57 = vrot.slane %v4294_v22, %v6904_v23  ;;  %v4309_v33 = vrot.slane %v4295_v0, %v6904_v23  ;;  %v4318_v58 = vrot.slane %v4310_v19, %v6904_v23  ;;  %v4325_v62 = vrot.slane %v4311_v35, %v6904_v23 }
 0x798   : > { %v4363_v27 = vcombine.high %v4337_v36, %v4345_v59  ;;  %v4379_v37 = vcombine.high %v4353_v16, %v4361_v55  ;;  %v4362_v54 = vcombine.low %v4337_v36, %v4345_v59  ;;  %v4378_v5 = vcombine.low %v4353_v16, %v4361_v55  ;;  %v5523_v16 = vld [vmem:[%s7775_s13] ss:$0 sm:$0xff] }
 0x799   : > { %v4398_v44 = vcombine.low %v4302_v57, %v4309_v33  ;;  %v5521_v46 = vcombine.high %v4302_v57, %v4309_v33  ;;  %v4414_v53 = vcombine.low %v4318_v58, %v4325_v62  ;;  %v5522_v25 = vcombine.high %v4318_v58, %v4325_v62  ;;  %v6107_v58 = vld [vmem:[#allocation2 + $0x10] sm:$0xff] }
 0x79a   : > { %v4370_v21 = vrot.slane %v4362_v54, %v6904_v23  ;;  %v4386_v31 = vrot.slane %v4378_v5, %v6904_v23  ;;  %v4377_v61 = vrot.slane %v4363_v27, %v6904_v23  ;;  %v4393_v29 = vrot.slane %v4379_v37, %v6904_v23  ;;  %v6108_v5 = vld [vmem:[#allocation2] sm:$0xff] }
 0x79b   : > { %v4405_v32 = vrot.slane %v4398_v44, %v6901_v17  ;;  %v4413_v39 = vrot.slane %v5521_v46, %v6901_v17  ;;  %v4421_v43 = vrot.slane %v4414_v53, %v6901_v17  ;;  %v4429_v24 = vrot.slane %v5522_v25, %v6901_v17  ;;  %v6109_v53 = vld [vmem:[#allocation2 + $0x18] sm:$0xff] }
 0x79c   : > { %v4394_v41 = vcombine.low %v4370_v21, %v4386_v31  ;;  %v4396_v9 = vcombine.low %v4377_v61, %v4393_v29  ;;  %v4395_v2 = vcombine.high %v4370_v21, %v4386_v31  ;;  %v4397_v14 = vcombine.high %v4377_v61, %v4393_v29  ;;  %v6110_v31 = vld [vmem:[#allocation2 + $0x8] sm:$0xff]  ;;  %v5987_v61 = vld [vmem:[%s6793_s12 + $0x70] ss:$8 sps:$4 sm:$0xff]  }
 0x79d   : > { %v4431_v26 = vcombine.high %v4405_v32, %v4413_v39  ;;  %v4447_v42 = vcombine.high %v4421_v43, %v4429_v24  ;;  %v4430_v40 = vcombine.low %v4405_v32, %v4413_v39  ;;  %v4446_v1 = vcombine.low %v4421_v43, %v4429_v24  ;;  %v5989_v24 = vld [vmem:[%s6793_s12 + $0x74] ss:$8 sps:$4 sm:$0xff]   ;;  %v5992_v29 = vld [vmem:[%s6793_s12 + $0x64] ss:$8 sps:$4 sm:$0xff]  }
 0x79e   : > { %4807 = vmatprep.subr.bf16.mxu0 %v5989_v24 }
 0x79f   : > { %v4445_v8 = vrot.slane %v4431_v26, %v6904_v23  ;;  %v4461_v52 = vrot.slane %v4447_v42, %v6904_v23  ;;  %v4438_v51 = vrot.slane %v4430_v40, %v6904_v23  ;;  %v4454_v17 = vrot.slane %v4446_v1, %v6904_v23  ;;  %4808 = vmatpush1.bf16.msra.mxu0 %v5987_v61  ;;  %v5995_v26 = vld [vmem:[%s6793_s12 + $0x54] ss:$8 sps:$4 sm:$0xff]   ;;  %v5993_v42 = vld [vmem:[%s6793_s12 + $0x50] ss:$8 sps:$4 sm:$0xff]   ;;  %v5998_v40 = vld [vmem:[%s6793_s12 + $0x44] ss:$8 sps:$4 sm:$0xff]  }
 0x7a0   : > { %4809 = vmatprep.subr.bf16.mxu0 %v5992_v29  ;;  %v5996_v1 = vld [vmem:[%s6793_s12 + $0x40] ss:$8 sps:$4 sm:$0xff]   ;;  %v5532_v61 = vld [vmem:[%s879_s6] ss:$0 sm:$0xff] }
 0x7a1   : > { %v4464_v56 = vcombine.low %v4445_v8, %v4461_v52  ;;  %v4463_v10 = vcombine.high %v4438_v51, %v4454_v17  ;;  %v4462_v48 = vcombine.low %v4438_v51, %v4454_v17  ;;  %v4465_v4 = vcombine.high %v4445_v8, %v4461_v52  ;;  %v5999_v8 = vld [vmem:[%s6793_s12 + $0x30] ss:$8 sps:$4 sm:$0xff]   ;;  %v6004_v52 = vld [vmem:[%s6793_s12 + $0x24] ss:$8 sps:$4 sm:$0xff]   ;;  %v6002_v51 = vld [vmem:[%s6793_s12 + $0x20] ss:$8 sps:$4 sm:$0xff]  }
 0x7a2   : > { %v6007_v17 = vld [vmem:[%s6793_s12 + $0x14] ss:$8 sps:$4 sm:$0xff]  }
 0x7a3   : > { %v5937_v38 = vpack.i.bf16 %v4464_v56, %v4396_v9  ;;  %v5932_v11 = vpack.i.bf16 %v4463_v10, %v4395_v2  ;;  %v5942_v18 = vpack.i.bf16 %v4465_v4, %v4397_v14  ;;  %v6005_v9 = vld [vmem:[%s6793_s12 + $0x10] ss:$8 sps:$4 sm:$0xff]   ;;  %v6010_v56 = vld [vmem:[%s6793_s12 + $0x4] ss:$8 sps:$4 sm:$0xff]   ;;  %v6008_v2 = vld [vmem:[%s6793_s12] ss:$8 sps:$4 sm:$0xff]  }
 0x7a4   : > { %v6011_v10 = vld [vmem:[%s6795_s1 + $0x78] sm:$0xff]   ;;  %v6015_v4 = vld [vmem:[%s6795_s1 + $0x68] sm:$0xff]  }
 0x7a5   : > { %5938 = vrot.lane.b32.xlu0 %v5937_v38, %s6433_s10  ;;  %5933 = vrot.lane.b32.xlu1 %v5932_v11, %s6434_s30  ;;  %v6013_v38 = vld [vmem:[%s6795_s1 + $0x70] sm:$0xff]   ;;  %v6016_v14 = vld [vmem:[%s6795_s1 + $0x28] sm:$0xff]  }
 0x7a6   : > { %5631 = vmatprep.subr.bf16.mxu1 %v6011_v10  ;;  %v6014_v11 = vld [vmem:[%s6795_s1 + $0x30] sm:$0xff]  }
 0x7a9   : > { %5943 = vrot.lane.b32.xlu1 %v5942_v18, %s6432_s5  ;;  %v6017_v18 = vld [vmem:[%s6795_s1 + $0x60] sm:$0xff]  }
 0x817   : > { %v5939_v20 = vpop.permute.xlu0 %5938  ;;  %v5934_v23 = vpop.permute.xlu1 %5933 }
 0x818   : > { %v5936_v60 = vunpack.i.h.bf16 %v5934_v23  ;;  %v5935_v15 = vunpack.i.l.bf16 %v5934_v23  ;;  %v5941_v30 = vunpack.i.h.bf16 %v5939_v20  ;;  %v5940_v63 = vunpack.i.l.bf16 %v5939_v20  ;;  %v6018_v20 = vld [vmem:[%s6795_s1 + $0x20] sm:$0xff]   ;;  %v6019_v23 = vld [vmem:[%s6795_s1 + $0x58] sm:$0xff]  }
 0x81a   : > { %v4490_v7 = vsel %vm2088_vm1, %v4394_v41, %v5935_v15  ;;  %v4491_v28 = vsel %vm2088_vm1, %v4462_v48, %v5936_v60  ;;  %v5990_v41 = vld [vmem:[%s6793_s12 + $0x60] ss:$8 sps:$4 sm:$0xff]   ;;  %v6012_v48 = vld [vmem:[%s6795_s1 + $0x38] sm:$0xff]  }
 0x81b   : > { %v5944_v12 = vpop.permute.xlu1 %5943  ;;  %v4492_v22 = vsel %vm2844_vm3, %v4490_v7, %v5940_v63  ;;  %v4493_v0 = vsel %vm2844_vm3, %v4491_v28, %v5941_v30  ;;  %4810 = vmatpush1.bf16.msra.mxu0 %v5990_v41  ;;  %v6020_v60 = vld [vmem:[%s6795_s1 + $0x18] sm:$0xff]  }
 0x81c   : > { %v5946_v50 = vunpack.i.h.bf16 %v5944_v12  ;;  %v5945_v34 = vunpack.i.l.bf16 %v5944_v12  ;;  %4811 = vmatprep.subr.bf16.mxu0 %v5995_v26 }
 0x81e   : > { %v4494_v19 = vsel %vm2847_vm4, %v4492_v22, %v5945_v34  ;;  %v4495_v35 = vsel %vm2847_vm4, %v4493_v0, %v5946_v50 }
 0x81f   : > { %v4497_v36 = vpack.c.bf16 %v4495_v35, %v4494_v19  ;;  %4812 = vmatpush1.bf16.msra.mxu0 %v5993_v42 }
 0x820   : > { %4813 = vmatprep.subr.bf16.mxu0 %v5998_v40  ;;  %v5533_v40 = vld [vmem:[%s882_s11] ss:$0 sm:$0xff] }
 0x821   : > { %5792 = vmatmul.mubr.bf16.vlgmr.msra.gmra.mxu1 %v4497_v36 }
 0x822   : > { %5632 = vmatpush3.bf16.msra.mxu1 %v6012_v48 }
 0x823   : > { %4814 = vmatpush1.bf16.msra.mxu0 %v5996_v1  ;;  %5633 = vmatprep.subr.bf16.mxu1 %v6013_v38  ;;  %v6021_v38 = vld [vmem:[%s6795_s1 + $0x50] sm:$0xff]  }
 0x824   : > { %4815 = vmatprep.subr.bf16.mxu0 %v6001_v13 }
 0x826   : > { %5634 = vmatpush3.bf16.msra.mxu1 %v6014_v11  ;;  %v6022_v11 = vld [vmem:[%s6795_s1 + $0x10] sm:$0xff]  }
 0x827   : > { %4816 = vmatpush1.bf16.msra.mxu0 %v5999_v8  ;;  %5635 = vmatprep.subr.bf16.mxu1 %v6015_v4  ;;  %v6023_v4 = vld [vmem:[%s6795_s1 + $0x48] sm:$0xff]  }
 0x828   : > { %4817 = vmatprep.subr.bf16.mxu0 %v6004_v52 }
 0x82a   : > { %5636 = vmatpush3.bf16.msra.mxu1 %v6016_v14  ;;  %v6024_v14 = vld [vmem:[%s6795_s1 + $0x8] sm:$0xff]  }
 0x82b   : > { %4818 = vmatpush1.bf16.msra.mxu0 %v6002_v51  ;;  %5637 = vmatprep.subr.bf16.mxu1 %v6017_v18  ;;  %v6025_v18 = vld [vmem:[%s6795_s1 + $0x40] sm:$0xff]  }
 0x82c   : > { %4819 = vmatprep.subr.bf16.mxu0 %v6007_v17 }
 0x82e   : > { %5638 = vmatpush3.bf16.msra.mxu1 %v6018_v20  ;;  %v4715_v20 = vld [vmem:[%s6766_s14] sm:$0x3] }
 0x82f   : > { %4820 = vmatpush1.bf16.msra.mxu0 %v6005_v9  ;;  %5639 = vmatprep.subr.bf16.mxu1 %v6019_v23 }
 0x830   : > { %4821 = vmatprep.subr.bf16.mxu0 %v6010_v56 }
 0x832   : > { %5640 = vmatpush3.bf16.msra.mxu1 %v6020_v60  ;;  %v4724_v60 = vrot.slane %v4715_v20, %v941_v49 }
 0x833   : > { %4822 = vmatpush1.bf16.msra.mxu0 %v6008_v2  ;;  %5641 = vmatprep.subr.bf16.mxu1 %v6021_v38 }
 0x836   : > { %5642 = vmatpush3.bf16.msra.mxu1 %v6022_v11 }
 0x837   : > { %5643 = vmatprep.subr.bf16.mxu1 %v6023_v4 }
 0x83a   : > { %5644 = vmatpush3.bf16.msra.mxu1 %v6024_v14 }
 0x83b   : > { %5645 = vmatprep.subr.bf16.mxu1 %v6025_v18 }
 0x8e1   : > { %v5793_v59 = vpop.f32.mrf.mxu1 }
 0x8e2   : > { %v4612_v54 = vadd.f32 %v5793_v59, %v5523_v16 }
 0x8e3   : > { %v4603_v55 = vpop.f32.mrf.mxu1 }
 0x8e4   : > { %v4604_v57 = vadd.f32 %v5523_v16, %v4603_v55  ;;  %v7554_v25 = vadd.f32 %v6109_v53, %v4612_v54 }
 0x8e5   : > { %v5794_v33 = vpop.f32.mrf.mxu1 }
 0x8e6   : > { %v7546_v62 = vadd.f32 %v6107_v58, %v4604_v57  ;;  %v4615_v3 = vadd.f32 %v5794_v33, %v5523_v16  ;;  %v4639_v39 = vmul.f32 %v7554_v25, %v7554_v25 }
 0x8e7   : > { %v4606_v27 = vpop.f32.mrf.mxu1 }
 0x8e8   : > { %v4607_v37 = vadd.f32 %v5523_v16, %v4606_v27  ;;  %4624 = vadd.xlane.f32.xlu0 %v7546_v62  ;;  %v4637_v46 = vmul.f32 %v7546_v62, %v7546_v62  ;;  %v7559_v32 = vadd.f32 %v6110_v31, %v4615_v3 }
 0x8ea   : > { %v7549_v44 = vadd.f32 %v6108_v5, %v4607_v37  ;;  %v4640_v43 = vmul.f32 %v7559_v32, %v7559_v32 }
 0x8ec   : > { %4626 = vadd.xlane.f32.xlu1 %v7549_v44  ;;  %4641 = vadd.xlane.f32.xlu0 %v4637_v46  ;;  %v4638_v21 = vmul.f32 %v7549_v44, %v7549_v44 }
 0x8f0   : > { %4628 = vadd.xlane.f32.xlu1 %v7554_v25  ;;  %4643 = vadd.xlane.f32.xlu0 %v4638_v21 }
 0x8f4   : > { %4645 = vadd.xlane.f32.xlu1 %v4639_v39  ;;  %4630 = vadd.xlane.f32.xlu0 %v7559_v32 }
 0x8f8   : > { %4647 = vadd.xlane.f32.xlu0 %v4640_v43 }
 0x971   : > { %v4625_v15 = vpop.xlane.xlu0 %4624 }
 0x972   : > { %v4633_v30 = vmul.f32 0.0078125, %v4625_v15  ;;  %v4720_v15 = vrot.slane %v4715_v20, %v937_v47 }
 0x974   : > { %v4653_v28 = vmul.f32 %v4633_v30, %v4633_v30  ;;  %v4661_v39 = vsub.f32 %v7546_v62, %v4633_v30 }
 0x975   : > { %v4627_v63 = vpop.xlane.xlu1 %4626  ;;  %v4642_v7 = vpop.xlane.xlu0 %4641 }
 0x976   : > { %v4634_v12 = vmul.f32 0.0078125, %v4627_v63  ;;  %v4649_v50 = vmul.f32 0.0078125, %v4642_v7 }
 0x978   : > { %v4657_v34 = vsub.f32 %v4649_v50, %v4653_v28  ;;  %v4654_v19 = vmul.f32 %v4634_v12, %v4634_v12  ;;  %v4662_v29 = vsub.f32 %v7549_v44, %v4634_v12 }
 0x979   : > { %v4629_v22 = vpop.xlane.xlu1 %4628  ;;  %v4644_v0 = vpop.xlane.xlu0 %4643 }
 0x97a   : > { %v4665_v35 = vadd.f32 1e-05, %v4657_v34  ;;  %v4635_v36 = vmul.f32 0.0078125, %v4629_v22  ;;  %v4650_v59 = vmul.f32 0.0078125, %v4644_v0 }
 0x97c   : > { %6091 = vrsqrt.f32 %v4665_v35  ;;  %v4658_v16 = vsub.f32 %v4650_v59, %v4654_v19  ;;  %v4655_v33 = vmul.f32 %v4635_v36, %v4635_v36  ;;  %v4663_v62 = vsub.f32 %v7554_v25, %v4635_v36 }
 0x97d   : > { %v4646_v55 = vpop.xlane.xlu1 %4645  ;;  %v4631_v57 = vpop.xlane.xlu0 %4630 }
 0x97e   : > { %v4666_v58 = vadd.f32 1e-05, %v4658_v16  ;;  %v4651_v27 = vmul.f32 0.0078125, %v4646_v55  ;;  %v4636_v37 = vmul.f32 0.0078125, %v4631_v57 }
 0x980   : > { %6093 = vrsqrt.f32 %v4666_v58  ;;  %v4659_v54 = vsub.f32 %v4651_v27, %v4655_v33  ;;  %v4656_v53 = vmul.f32 %v4636_v37, %v4636_v37  ;;  %v4664_v44 = vsub.f32 %v7559_v32, %v4636_v37 }
 0x981   : > { %v4648_v5 = vpop.xlane.xlu0 %4647 }
 0x982   : > { %v4667_v46 = vadd.f32 1e-05, %v4659_v54  ;;  %v4652_v3 = vmul.f32 0.0078125, %v4648_v5 }
 0x984   : > { %6095 = vrsqrt.f32 %v4667_v46  ;;  %v4660_v21 = vsub.f32 %v4652_v3, %v4656_v53 }
 0x986   : > { %v4668_v31 = vadd.f32 1e-05, %v4660_v21  ;;  %v5550_v21 = vld [vmem:[%s876_s19] ss:$0 sm:$0xff] }
 0x988   : > { %6097 = vrsqrt.f32 %v4668_v31 }
 0x989   : > { %v6092_v43 = vpop.eup %6091 }
 0x98a   : > { %v4673_v24 = vmul.f32 %v6092_v43, %v4661_v39 }
 0x98c   : > { %v4683_v42 = vmul.f32 %v5532_v61, %v4673_v24 }
 0x98d   : > { %v6094_v41 = vpop.eup %6093 }
 0x98e   : > { %v4674_v26 = vmul.f32 %v6094_v41, %v4662_v29  ;;  %v7605_v8 = vadd.f32 %v5533_v40, %v4683_v42 }
 0x990   : > { %v4684_v1 = vmul.f32 %v5532_v61, %v4674_v26 }
 0x991   : > { %v6096_v13 = vpop.eup %6095 }
 0x992   : > { %v7607_v52 = vadd.f32 %v5533_v40, %v4684_v1  ;;  %v4675_v51 = vmul.f32 %v6096_v13, %v4663_v62 }
 0x994   : > { %v4697_v17 = vpack.c.bf16 %v7607_v52, %v7605_v8  ;;  %v4685_v25 = vmul.f32 %v5532_v61, %v4675_v51 }
 0x995   : > { %v6098_v9 = vpop.eup %6097 }
 0x996   : > { %4840 = vmatmul.mubr.bf16.vlgmr.msra.gmra.mxu0 %v4697_v17  ;;  %v4676_v56 = vmul.f32 %v6098_v9, %v4664_v44  ;;  %v7613_v10 = vadd.f32 %v5533_v40, %v4685_v25 }
 0x997   : > { %4849 = vmatprep.mubr.bf16.mxu0 %v6431_v6  ;;  %v6026_v6 = vld [vmem:[%s6795_s1] sm:$0xff]  }
 0x998   : > { %v4686_v2 = vmul.f32 %v5532_v61, %v4676_v56  ;;  %5646 = vmatpush3.bf16.msra.mxu1 %v6026_v6 }
 0x99a   : > { %v7615_v48 = vadd.f32 %v5533_v40, %v4686_v2 }
 0x99c   : > { %v4698_v32 = vpack.c.bf16 %v7615_v48, %v7613_v10 }
 0x99e   : > { %4850 = vmatmul.mubr.bf16.gmra.mxu0 %v4698_v32 }
 0xa56   : > { %v4841_v23 = vpop.f32.mrf.mxu0 }
 0xa57   : > { %v4842_v12 = vadd.f32 %v4841_v23, %v4720_v15 }
 0xa58   : > { %v4843_v30 = vpop.f32.mrf.mxu0 }
 0xa59   : > { %v4844_v7 = vadd.f32 %v4843_v30, %v4724_v60  ;;  %v4860_v36 = vmax.f32 %v4842_v12, 0.0 }
 0xa5a   : > { %v4845_v63 = vpop.f32.mrf.mxu0 }
 0xa5b   : > { %v4846_v28 = vadd.f32 %v4845_v63, %v4720_v15  ;;  %v4861_v19 = vmax.f32 %v4844_v7, 0.0 }
 0xa5c   : > { %v4847_v50 = vpop.f32.mrf.mxu0 }
 0xa5d   : > { %v4848_v34 = vadd.f32 %v4847_v50, %v4724_v60  ;;  %v4862_v22 = vmax.f32 %v4846_v28, 0.0 }
 0xa5e   : > { %v4851_v0 = vpop.f32.mrf.mxu0 }
 0xa5f   : > { %v4863_v35 = vmax.f32 %v4848_v34, 0.0  ;;  %v4868_v55 = vpack.c.bf16 %v4862_v22, %v4860_v36  ;;  %v4852_v47 = vadd.f32 %v4851_v0, %v4720_v15 }
 0xa60   : > { %v4853_v59 = vpop.f32.mrf.mxu0 }
 0xa61   : > { %v4869_v16 = vpack.c.bf16 %v4863_v35, %v4861_v19  ;;  %v4854_v49 = vadd.f32 %v4853_v59, %v4724_v60  ;;  %v4864_v5 = vmax.f32 %v4852_v47, 0.0  ;;  %v5567_v47 = vld [vmem:[%s885_s8] ss:$0 sm:$0xff]  ;;  %s7781_s8 = sld [smem:[#allocation21_spill]] }
 0xa62   : > { %v4855_v57 = vpop.f32.mrf.mxu0 }
 0xa63   : > { %v4856_v45 = vadd.f32 %v4855_v57, %v4720_v15  ;;  %5039 = vmatprep.mubr.bf16.mxu1 %v4869_v16  ;;  %v4865_v37 = vmax.f32 %v4854_v49, 0.0 }
 0xa64   : > { %v4857_v33 = vpop.f32.mrf.mxu0  ;;  %5040 = vmatmul.mubr.bf16.vlgmr.msra.gmra.mxu1 %v4868_v55 }
 0xa65   : > { %v4858_v58 = vadd.f32 %v4857_v33, %v4724_v60  ;;  %v4866_v27 = vmax.f32 %v4856_v45, 0.0 }
 0xa67   : > { %v4867_v54 = vmax.f32 %v4858_v58, 0.0  ;;  %v4870_v53 = vpack.c.bf16 %v4866_v27, %v4864_v5  ;;  %v5568_v58 = vld [vmem:[%s888_s4] ss:$0 sm:$0xff]  ;;  %p5569_p12 = scmp.ne.s32.totalorder %s7781_s8, 1 }
 0xa69   : > { %v4871_v46 = vpack.c.bf16 %v4867_v54, %v4865_v37 }
 0xa6b   : > { %5047 = vmatprep.mubr.bf16.mxu1 %v4871_v46 }
 0xa6c   : > { %5048 = vmatmul.mubr.bf16.gmra.mxu1 %v4870_v53 }
 0xb24   : > { %v5647_v3 = vpop.f32.mrf.mxu1 }
 0xb26   : > { %v5648_v31 = vpop.f32.mrf.mxu1 }
 0xb27   : > { %v5649_v39 = vadd.f32 %v5648_v31, %v5647_v3 }
 0xb28   : > { %v5650_v43 = vpop.f32.mrf.mxu1 }
 0xb29   : > { %v5042_v24 = vadd.f32 %v5649_v39, %v5550_v21 }
 0xb2a   : > { %v5651_v61 = vpop.f32.mrf.mxu1 }
 0xb2b   : > { %v5652_v29 = vadd.f32 %v5651_v61, %v5650_v43  ;;  %v5056_v41 = vadd.f32 %v5042_v24, %v7605_v8 }
 0xb2c   : > { %v5653_v26 = vpop.f32.mrf.mxu1 }
 0xb2d   : > { %v5045_v42 = vadd.f32 %v5652_v29, %v5550_v21  ;;  %5062 = vadd.xlane.f32.xlu1 %v5056_v41  ;;  %v5074_v13 = vmul.f32 %v5056_v41, %v5056_v41 }
 0xb2e   : > { %v5654_v40 = vpop.f32.mrf.mxu1 }
 0xb2f   : > { %v5655_v62 = vadd.f32 %v5654_v40, %v5653_v26  ;;  %v5057_v1 = vadd.f32 %v5045_v42, %v7607_v52 }
 0xb30   : > { %v5656_v51 = vpop.f32.mrf.mxu1 }
 0xb31   : > { %v5050_v44 = vadd.f32 %v5655_v62, %v5550_v21  ;;  %5064 = vadd.xlane.f32.xlu0 %v5057_v1  ;;  %5078 = vadd.xlane.f32.xlu1 %v5074_v13  ;;  %v5075_v56 = vmul.f32 %v5057_v1, %v5057_v1 }
 0xb32   : > { %v5657_v17 = vpop.f32.mrf.mxu1 }
 0xb33   : > { %v5658_v9 = vadd.f32 %v5657_v17, %v5656_v51  ;;  %v5058_v25 = vadd.f32 %v5050_v44, %v7613_v10 }
 0xb35   : > { %v5053_v2 = vadd.f32 %v5658_v9, %v5550_v21  ;;  %5080 = vadd.xlane.f32.xlu0 %v5075_v56  ;;  %5066 = vadd.xlane.f32.xlu1 %v5058_v25  ;;  %v5076_v32 = vmul.f32 %v5058_v25, %v5058_v25 }
 0xb37   : > { %v5059_v8 = vadd.f32 %v5053_v2, %v7615_v48 }
 0xb39   : > { %5068 = vadd.xlane.f32.xlu0 %v5059_v8  ;;  %5082 = vadd.xlane.f32.xlu1 %v5076_v32  ;;  %v5077_v38 = vmul.f32 %v5059_v8, %v5059_v8 }
 0xb3d   : > { %5084 = vadd.xlane.f32.xlu0 %v5077_v38 }
 0xbb6   : > { %v5063_v52 = vpop.xlane.xlu1 %5062 }
 0xbb7   : > { %v5070_v11 = vmul.f32 0.0078125, %v5063_v52 }
 0xbb9   : > { %v5090_v18 = vmul.f32 %v5070_v11, %v5070_v11  ;;  %v5098_v49 = vsub.f32 %v5056_v41, %v5070_v11 }
 0xbba   : > { %v5079_v4 = vpop.xlane.xlu1 %5078  ;;  %v5065_v14 = vpop.xlane.xlu0 %5064 }
 0xbbb   : > { %v5086_v6 = vmul.f32 0.0078125, %v5079_v4  ;;  %v5071_v20 = vmul.f32 0.0078125, %v5065_v14 }
 0xbbd   : > { %v5094_v23 = vsub.f32 %v5086_v6, %v5090_v18  ;;  %v5091_v30 = vmul.f32 %v5071_v20, %v5071_v20  ;;  %v5099_v37 = vsub.f32 %v5057_v1, %v5071_v20 }
 0xbbe   : > { %v5067_v60 = vpop.xlane.xlu1 %5066  ;;  %v5081_v10 = vpop.xlane.xlu0 %5080 }
 0xbbf   : > { %v5102_v15 = vadd.f32 1e-05, %v5094_v23  ;;  %v5072_v63 = vmul.f32 0.0078125, %v5067_v60  ;;  %v5087_v7 = vmul.f32 0.0078125, %v5081_v10 }
 0xbc1   : > { %6099 = vrsqrt.f32 %v5102_v15  ;;  %v5095_v48 = vsub.f32 %v5087_v7, %v5091_v30  ;;  %v5092_v50 = vmul.f32 %v5072_v63, %v5072_v63  ;;  %v5100_v53 = vsub.f32 %v5058_v25, %v5072_v63 }
 0xbc2   : > { %v5083_v28 = vpop.xlane.xlu1 %5082  ;;  %v5069_v12 = vpop.xlane.xlu0 %5068 }
 0xbc3   : > { %v5103_v34 = vadd.f32 1e-05, %v5095_v48  ;;  %v5088_v22 = vmul.f32 0.0078125, %v5083_v28  ;;  %v5073_v0 = vmul.f32 0.0078125, %v5069_v12 }
 0xbc5   : > { %6101 = vrsqrt.f32 %v5103_v34  ;;  %v5096_v19 = vsub.f32 %v5088_v22, %v5092_v50  ;;  %v5093_v59 = vmul.f32 %v5073_v0, %v5073_v0  ;;  %v5101_v24 = vsub.f32 %v5059_v8, %v5073_v0 }
 0xbc6   : > { %v5085_v35 = vpop.xlane.xlu0 %5084 }
 0xbc7   : > { %v5104_v36 = vadd.f32 1e-05, %v5096_v19  ;;  %v5089_v16 = vmul.f32 0.0078125, %v5085_v35 }
 0xbc9   : > { %6103 = vrsqrt.f32 %v5104_v36  ;;  %v5097_v55 = vsub.f32 %v5089_v16, %v5093_v59 }
 0xbcb   : > { %v5105_v57 = vadd.f32 1e-05, %v5097_v55 }
 0xbcd   : > { %6105 = vrsqrt.f32 %v5105_v57 }
 0xbce   : > { %v6100_v45 = vpop.eup %6099 }
 0xbcf   : > { %v5110_v33 = vmul.f32 %v6100_v45, %v5098_v49 }
 0xbd1   : > { %v5120_v27 = vmul.f32 %v5567_v47, %v5110_v33 }
 0xbd2   : > { %v6102_v54 = vpop.eup %6101 }
 0xbd3   : > { %v5130_v5 = vadd.f32 %v5568_v58, %v5120_v27  ;;  %v5111_v46 = vmul.f32 %v6102_v54, %v5099_v37 }
 0xbd5   : > { %5134 = vst [vmem:[#allocation2 + $0x10] sm:$0xff] %v5130_v5  ;;  %v5121_v3 = vmul.f32 %v5567_v47, %v5111_v46 }
 0xbd6   : > { %v6104_v21 = vpop.eup %6103 }
 0xbd7   : > { %v5131_v31 = vadd.f32 %v5568_v58, %v5121_v3  ;;  %v5112_v39 = vmul.f32 %v6104_v21, %v5100_v53 }
 0xbd9   : > { %5135 = vst [vmem:[#allocation2] sm:$0xff] %v5131_v31  ;;  %v5122_v43 = vmul.f32 %v5567_v47, %v5112_v39 }
 0xbda   : > { %v6106_v61 = vpop.eup %6105 }
 0xbdb   : > { %v5132_v29 = vadd.f32 %v5568_v58, %v5122_v43  ;;  %v5113_v41 = vmul.f32 %v6106_v61, %v5101_v24 }
 0xbdd   : > { %5136 = vst [vmem:[#allocation2 + $0x18] sm:$0xff] %v5132_v29  ;;  %v5123_v26 = vmul.f32 %v5567_v47, %v5113_v41  ;;  %5141 = sbr.rel (%p5569_p12) target bundleno = 3044 (0xbe4), region = 124 }
 0xbdf   : > { %v5133_v42 = vadd.f32 %v5568_v58, %v5123_v26 }
 0xbe1   : > { %5137 = vst [vmem:[#allocation2 + $0x8] sm:$0xff] %v5133_v42 }
 0xbe2   : > { %5142 = vst [vmem:[#allocation14] sm:$0xff] %v5130_v5  ;;  %5143 = vst [vmem:[#allocation14 + $0x8] sm:$0xff] %v5131_v31 }
 0xbe3   : > { %5144 = vst [vmem:[#allocation14 + $0x10] sm:$0xff] %v5132_v29  ;;  %5145 = vst [vmem:[#allocation14 + $0x18] sm:$0xff] %v5133_v42 }
 0xbe4 PF: > { %p5850_p13 = scmp.eq.s32.totalorder %s6556_s27, 1  ;;  %s6439_s26 = smov [#allocation14]  }
 0xbe5   : > { %s5156_s4 = sshll.u32 %s6439_s26, 4  ;;  %s5157_s4 = int_to_ptr.vmem [resolvable:$true] %s5156_s4 }
 0xbe6   : > { %s6331_s16 = scalar_lea.vmem %s5157_s4, 512  ;;  %p6338_p9 = scmp.lt.s32.totalorder %s5157_s4, %s5157_s4 }
 0xbe7   : > { %p6332_p2 = scmp.ne.s32.totalorder %s5157_s4, %s6331_s16  ;;  %p6339_p4 = scmp.lt.s32.totalorder %s6331_s16, %s6331_s16 }
 0xbe9   : > { %p6333_p5 = pnand %p6332_p2, %p5850_p13  ;;  %p6340_p11 = por %p6339_p4, %p6338_p9 }
 0xbeb   : > { %p6334_p7 = pneg %p6333_p5 }
 0xbed   : > { %p6341_p10 = pnand %p6340_p11, %p6334_p7 }
 0xbef   : > { %6344 = shalt.err (!%p6341_p10)
}
 0xbf0   : > { %s6440_s9 = smov 128   ;;  %s6441_s12 = smov 8  }
 0xbf1   : > { %s7782_s10 = sld [smem:[#allocation42_spill]] }
 0xbf7   : > { %5816 = dma.vmem_to_hbm [thread:$0]  (%p5850_p13), %s5157_s4, 512, %s7782_s10, [#allocation5], %s6440_s9, %s6440_s9, %s6441_s12  }
 0xbf8   : > { %6392 = dma.done.wait (%p5850_p13), [#allocation5], 512  }
 0xbf9   : > { %6394 = vsyncadd (%p5850_p13), [#allocation5], 4294966784 }
 0xbfa PF: > { %s7783_s30 = sld [smem:[#allocation22_spill]]  ;;  %s7788_s24 = smov %s6413_s25 }
 0xbfb   : > { %s7784_s21 = sld [smem:[#allocation19_spill]] }
 0xbfc   : > { %s7785_s22 = sld [smem:[#allocation20_spill]] }
 0xbfd   : > { %s7786_s23 = sld [smem:[#allocation25_spill]] }
 0xbfe   : > { %s7787_s7 = sld [smem:[#allocation24_spill]] }
 0xc00   : > { %s29_s26 = sadd.s32 1, %s7783_s30  }
 0xc01   : > { %p26_p3 = scmp.ge.s32.totalorder %s29_s26, 4  }
 0xc03   :  { %28 = sbr.rel (!%p26_p3) target bundleno = 23 (0x17), region = 218 }
 0xc04   : > { %s7789_s25 = smov %s7787_s7 }
 0xc08   :  { %5172 = vsyncpa [#allocation4], 1 }
 0xc09   :  { %5174 = vsyncpa [#allocation4 + $0x1], 1 }
 0xc0a   :  { %5175 = vsyncpa [#allocation7], 1 }
 0xc0b   :  { %5176 = vsyncpa [#allocation5], 1 }
 0xc0c   :  { %5178 = vsyncpa [#allocation5 + $0x1], 1 }

</bundles_post_ra>
